<compile_context>
chip_gen: v7x
topology: tpu7x:2x2x1
jax: 0.10.0
libtpu: 0.0.40
codegen_flags: <defaults>
</compile_context>

<pallas_src>
import functools

import jax
import jax.numpy as jnp
from jax.experimental import pallas as pl
from jax.experimental.pallas import tpu as pltpu

BN_EPS = 1e-5
LANES = 128

try:  # generation-aware VMEM cap (v7x: 64 MiB physical, v5e/v6e: 128 MiB)
    _VMEM_CAP = int(pltpu.get_tpu_info().vmem_capacity_bytes)
except Exception:  # pragma: no cover - fall back to the smallest generation
    _VMEM_CAP = 64 * 2**20


def _round_up(x, m):
    return (x + m - 1) // m * m


def _vmem_limit(vmem_est):
    limit = max(32 * 2**20, 2 * int(vmem_est))
    # leave >=16 MiB headroom for Mosaic internal scratch on every generation.
    return int(max(16 * 2**20, min(limit, _VMEM_CAP - 16 * 2**20)))


def _pick_tile_m(M, tm):
    m8 = _round_up(max(M, 1), 8)
    tm = max(8, min(tm, m8))
    if tm >= 256:
        tm = _round_up(tm, 256)      # fill the 256-row MXU on v6e/v7x
    elif tm >= 128:
        tm = 128
    else:
        tm = m8                      # tiny problem: single tile
    Mp = _round_up(M, tm)
    return tm, Mp, Mp // tm


def _resident_spec(block_shape, index_map):
    """BlockSpec for a grid-invariant input; single-buffered to save VMEM."""
    try:
        return pl.BlockSpec(block_shape, index_map, pipeline_mode=pl.Buffered(1))
    except Exception:  # pragma: no cover - older jax without pipeline_mode
        return pl.BlockSpec(block_shape, index_map)


# --------------------------------------------------------------------------
# Layout helpers: the block-internal format is NHWC, channels zero-padded to a
# multiple of 128 lanes, bf16.
# --------------------------------------------------------------------------
def _to_nhwc_padded(x_nchw, compute_dtype=jnp.bfloat16):
    N, C, H, W = x_nchw.shape
    Cp = _round_up(C, LANES)
    x = jnp.transpose(x_nchw, (0, 2, 3, 1)).astype(compute_dtype)
    if Cp != C:
        x = jnp.pad(x, ((0, 0), (0, 0), (0, 0), (0, Cp - C)))
    return x


def _from_nhwc_padded(x_nhwc, C, out_dtype=jnp.float32):
    return jnp.transpose(x_nhwc[..., :C], (0, 3, 1, 2)).astype(out_dtype)


# --------------------------------------------------------------------------
# Pass 1: tiled MXU matmul (the convolution) + per-tile partial batch stats.
# Each grid step is independent ("parallel"): it writes its own bf16 conv tile
# and an (8, C) block holding that tile's f32 column sum / sum-of-squares.
# --------------------------------------------------------------------------
def _conv_stats_kernel(p_ref, w_ref, conv_ref, psum_ref, psumsq_ref):
    acc = jnp.dot(p_ref[...], w_ref[...], preferred_element_type=jnp.float32)
    conv_ref[...] = acc.astype(conv_ref.dtype)                 # bf16 HBM stream
    s = jnp.sum(acc, axis=0, keepdims=True)                    # (1, C) f32
    ss = jnp.sum(acc * acc, axis=0, keepdims=True)
    psum_ref[...] = jnp.broadcast_to(s, psum_ref.shape)        # (8, C) block
    psumsq_ref[...] = jnp.broadcast_to(ss, psumsq_ref.shape)


# --------------------------------------------------------------------------
# Pass 2: pure FMA epilogue  y = conv*scale + shift [+ residual] [relu],
# scale/shift precomputed once per conv (so no per-tile rsqrt here).
# --------------------------------------------------------------------------
def _bn_act_kernel(*refs, relu, has_residual):
    if has_residual:
        conv_ref, scale_ref, shift_ref, res_ref, o_ref = refs
    else:
        conv_ref, scale_ref, shift_ref, o_ref = refs
        res_ref = None
    y = conv_ref[...].astype(jnp.float32) * scale_ref[...] + shift_ref[...]
    if has_residual:
        y = y + res_ref[...].astype(jnp.float32)
    if relu:
        y = jnp.maximum(y, 0.0)
    o_ref[...] = y.astype(o_ref.dtype)


# --------------------------------------------------------------------------
# Fused Conv2d(bias=False) + BatchNorm2d(batch stats) + optional residual +
# optional ReLU, operating on the padded-NHWC bf16 block-internal format.
# --------------------------------------------------------------------------
def conv_bn_act_nhwc(x, w_oihw, gamma, beta, *, stride=1, padding=0, relu=True,
                     residual=None, tm=1024, compute_dtype=jnp.bfloat16):
    """x: (N,H,W,Cp) compute_dtype, channel-padded (zeros beyond Cin).
    residual: (N,Hout,Wout,C128out) compute_dtype, channel-padded, or None.
    Returns (N,Hout,Wout,C128out) compute_dtype, padded out-channels are zero,
    so consecutive bottleneck layers chain without any layout round trips."""
    N, H, W, Cp = x.shape
    Cout, Cin, KH, KW = w_oihw.shape
    assert Cp >= Cin and Cp % LANES == 0

    if padding:
        x = jnp.pad(x, ((0, 0), (padding, padding), (padding, padding), (0, 0)))
    Hp, Wp = x.shape[1], x.shape[2]
    Hout = (Hp - KH) // stride + 1
    Wout = (Wp - KW) // stride + 1
    M = N * Hout * Wout
    K = KH * KW * Cp                       # always a multiple of 128
    C128 = _round_up(Cout, LANES)

    # ---- im2col in bf16 (1x1 convs do not expand at all) --------------------
    if KH == 1 and KW == 1:
        patches = x[:, ::stride, ::stride, :]
    else:
        # TODO(synk): fold this (dy, dx) gather into the kernel via a K grid
        # axis / manual DMA so the KH*KW-expanded bf16 patch tensor is never
        # materialized in HBM for large 3x3 layers.
        cols = [x[:, dy:dy + stride * Hout:stride, dx:dx + stride * Wout:stride, :]
                for dy in range(KH) for dx in range(KW)]
        patches = jnp.concatenate(cols, axis=-1)
    patches = patches.reshape(M, K)

    tm, Mp, n_tiles = _pick_tile_m(M, tm)
    if Mp != M:
        patches = jnp.pad(patches, ((0, Mp - M), (0, 0)))

    # ---- weights -> (K, C128); padded in/out channels are zero --------------
    w_mat = jnp.transpose(w_oihw, (2, 3, 1, 0))                # (KH,KW,Cin,Cout)
    w_mat = jnp.pad(w_mat, ((0, 0), (0, 0), (0, Cp - Cin), (0, C128 - Cout)))
    w_mat = w_mat.reshape(K, C128).astype(compute_dtype)

    itemsize = jnp.dtype(compute_dtype).itemsize
    has_res = residual is not None
    vmem_p1 = (2 * tm * K + 2 * tm * C128 + 2 * K * C128) * itemsize \
        + 4 * 8 * C128 * 4
    vmem_p2 = (4 + 2 * int(has_res)) * tm * C128 * itemsize + 4 * C128 * 4
    vmem_limit = _vmem_limit(max(vmem_p1, vmem_p2))

    # ---- pass 1: conv matmul + per-tile partial stats ("parallel" M axis) ---
    conv_flat, psum, psumsq = pl.pallas_call(
        _conv_stats_kernel,
        out_shape=(
            jax.ShapeDtypeStruct((Mp, C128), compute_dtype),
            jax.ShapeDtypeStruct((8 * n_tiles, C128), jnp.float32),
            jax.ShapeDtypeStruct((8 * n_tiles, C128), jnp.float32),
        ),
        grid=(n_tiles,),
        in_specs=[
            pl.BlockSpec((tm, K), lambda i: (i, 0)),
            _resident_spec((K, C128), lambda i: (0, 0)),       # resident weight
        ],
        out_specs=(
            pl.BlockSpec((tm, C128), lambda i: (i, 0)),
            pl.BlockSpec((8, C128), lambda i: (i, 0)),
            pl.BlockSpec((8, C128), lambda i: (i, 0)),
        ),
        compiler_params=pltpu.CompilerParams(
            dimension_semantics=("parallel",),
            vmem_limit_bytes=vmem_limit),
        cost_estimate=pl.CostEstimate(
            flops=2 * Mp * K * C128,
            transcendentals=0,
            bytes_accessed=(Mp * K + K * C128 + Mp * C128) * itemsize
                           + 2 * 8 * n_tiles * C128 * 4),
    )(patches, w_mat)

    # ---- tiny per-channel reduction + scale/shift in XLA (once per conv) ----
    inv_m = 1.0 / float(M)
    csum = psum[0::8, :].sum(axis=0)                 # (C128,)  f32
    csumsq = psumsq[0::8, :].sum(axis=0)
    mean = csum * inv_m
    # TODO(synk): for very large M switch to a shifted / Welford-style merge;
    # plain E[x^2]-E[x]^2 in f32 can cancel for strongly non-centered activations.
    var = jnp.maximum(csumsq * inv_m - mean * mean, 0.0)
    inv_std = jax.lax.rsqrt(var + BN_EPS)
    gamma_p = jnp.pad(gamma.astype(jnp.float32), (0, C128 - Cout))
    beta_p = jnp.pad(beta.astype(jnp.float32), (0, C128 - Cout))
    scale = (gamma_p * inv_std).reshape(1, C128)
    shift = (beta_p - mean * gamma_p * inv_std).reshape(1, C128)

    # ---- pass 2: fused FMA (+ bf16 residual) (+ ReLU), bf16 in / bf16 out ---
    ins = [conv_flat, scale, shift]
    in_specs = [
        pl.BlockSpec((tm, C128), lambda i: (i, 0)),
        _resident_spec((1, C128), lambda i: (0, 0)),
        _resident_spec((1, C128), lambda i: (0, 0)),
    ]
    if has_res:
        assert residual.shape == (N, Hout, Wout, C128)
        res_flat = residual.reshape(M, C128).astype(compute_dtype)
        if Mp != M:
            res_flat = jnp.pad(res_flat, ((0, Mp - M), (0, 0)))
        ins.append(res_flat)
        in_specs.append(pl.BlockSpec((tm, C128), lambda i: (i, 0)))

    out_flat = pl.pallas_call(
        functools.partial(_bn_act_kernel, relu=relu, has_residual=has_res),
        out_shape=jax.ShapeDtypeStruct((Mp, C128), compute_dtype),
        grid=(n_tiles,),
        in_specs=in_specs,
        out_specs=pl.BlockSpec((tm, C128), lambda i: (i, 0)),
        compiler_params=pltpu.CompilerParams(
            dimension_semantics=("parallel",),
            vmem_limit_bytes=vmem_limit),
        cost_estimate=pl.CostEstimate(
            flops=(2 + 2 * int(has_res) + int(relu)) * Mp * C128,
            transcendentals=0,
            bytes_accessed=(2 + int(has_res)) * Mp * C128 * itemsize
                           + 2 * C128 * 4),
    )(*ins)

    return out_flat[:M].reshape(N, Hout, Wout, C128)


# --------------------------------------------------------------------------
# NCHW convenience wrapper (single fused Conv+BN+Act, matching PyTorch layout).
# --------------------------------------------------------------------------
def conv_bn_act(x_nchw, w_oihw, gamma, beta, *, stride=1, padding=0, relu=True,
                residual_nchw=None, tm=1024, compute_dtype=jnp.bfloat16):
    x = _to_nhwc_padded(x_nchw, compute_dtype)
    res = None
    if residual_nchw is not None:
        res = _to_nhwc_padded(residual_nchw, compute_dtype)
    y = conv_bn_act_nhwc(x, w_oihw, gamma, beta, stride=stride, padding=padding,
                         relu=relu, residual=res, tm=tm,
                         compute_dtype=compute_dtype)
    return _from_nhwc_padded(y, w_oihw.shape[0])


# --------------------------------------------------------------------------
# ResNet bottleneck block (expend_ratio = 4).  All layers chain in the padded
# NHWC bf16 format; NCHW conversion happens only at block entry and exit.
# --------------------------------------------------------------------------
def bottleneck_forward(x_nchw, params, *, stride, tm=1024,
                       compute_dtype=jnp.bfloat16):
    (w1, g1, b1), (w2, g2, b2), (w3, g3, b3), ds = params
    x = _to_nhwc_padded(x_nchw, compute_dtype)
    if ds is not None:                       # downsample shortcut: 1x1 conv + BN
        wd, gd, bd = ds
        shortcut = conv_bn_act_nhwc(x, wd, gd, bd, stride=stride, padding=0,
                                    relu=False, tm=tm,
                                    compute_dtype=compute_dtype)
    else:
        shortcut = x
    h = conv_bn_act_nhwc(x, w1, g1, b1, stride=1, padding=0, relu=True,
                         tm=tm, compute_dtype=compute_dtype)
    h = conv_bn_act_nhwc(h, w2, g2, b2, stride=stride, padding=1, relu=True,
                         tm=tm, compute_dtype=compute_dtype)
    h = conv_bn_act_nhwc(h, w3, g3, b3, stride=1, padding=0, relu=True,
                         residual=shortcut, tm=tm, compute_dtype=compute_dtype)
    return _from_nhwc_padded(h, w3.shape[0])
    # TODO(synk): the full ResNet_bottleneck stack (input block with PReLU and
    # MaxPool, layer1-3 assembly, fc/varg head) is not reproduced here; only the
    # bottleneck Conv+BN+Act building blocks are implemented as Pallas kernels.


# --------------------------------------------------------------------------
# Pure-JAX references (training-mode BatchNorm).  compute_dtype controls the
# conv input precision; store_dtype mimics the kernel's bf16 layer outputs.
# --------------------------------------------------------------------------
def ref_conv_bn_act(x, w, gamma, beta, *, stride=1, padding=0, relu=True,
                    residual=None, compute_dtype=jnp.float32,
                    store_dtype=jnp.float32):
    conv = jax.lax.conv_general_dilated(
        x.astype(compute_dtype), w.astype(compute_dtype),
        window_strides=(stride, stride),
        padding=((padding, padding), (padding, padding)),
        dimension_numbers=("NCHW", "OIHW", "NCHW"),
        preferred_element_type=jnp.float32)
    mean = conv.mean(axis=(0, 2, 3), keepdims=True)
    var = conv.var(axis=(0, 2, 3), keepdims=True)     # biased, as BN uses
    y = (conv - mean) * jax.lax.rsqrt(var + BN_EPS)
    y = y * gamma.reshape(1, -1, 1, 1) + beta.reshape(1, -1, 1, 1)
    if residual is not None:
        y = y + residual
    y = jnp.maximum(y, 0.0) if relu else y
    return y.astype(store_dtype).astype(jnp.float32)


def ref_bottleneck(x, params, *, stride, compute_dtype=jnp.float32,
                   store_dtype=jnp.float32):
    (w1, g1, b1), (w2, g2, b2), (w3, g3, b3), ds = params
    if ds is not None:
        wd, gd, bd = ds
        shortcut = ref_conv_bn_act(x, wd, gd, bd, stride=stride, padding=0,
                                   relu=False, compute_dtype=compute_dtype,
                                   store_dtype=store_dtype)
    else:
        shortcut = x
    h = ref_conv_bn_act(x, w1, g1, b1, stride=1, padding=0,
                        compute_dtype=compute_dtype, store_dtype=store_dtype)
    h = ref_conv_bn_act(h, w2, g2, b2, stride=stride, padding=1,
                        compute_dtype=compute_dtype, store_dtype=store_dtype)
    return ref_conv_bn_act(h, w3, g3, b3, stride=1, padding=0,
                           residual=shortcut, compute_dtype=compute_dtype,
                           store_dtype=store_dtype)


if __name__ == "__main__":
    key = jax.random.PRNGKey(0)
    keys = jax.random.split(key, 16)

    # ---- Test 1: fused Conv3x3(bias=False) + BatchNorm2d + ReLU -------------
    N, Cin, H, W = 2, 4, 16, 16
    Cout, KH, KW = 24, 3, 3
    x = jax.random.normal(keys[0], (N, Cin, H, W), jnp.float32)
    bound = 1.0 / (Cin * KH * KW) ** 0.5
    w = jax.random.uniform(keys[1], (Cout, Cin, KH, KW), jnp.float32, -bound, bound)
    gamma = jax.random.uniform(keys[2], (Cout,), jnp.float32, 0.5, 1.5)
    beta = jax.random.uniform(keys[3], (Cout,), jnp.float32, -0.5, 0.5)
    # TODO(synk): BatchNorm running_mean/running_var buffer updates (training
    # state) are not produced; only the normalized forward output is.

    cba = jax.jit(functools.partial(conv_bn_act, stride=1, padding=0))
    out = jax.block_until_ready(cba(x, w, gamma, beta))

    ref_m = ref_conv_bn_act(x, w, gamma, beta, stride=1, padding=0,
                            compute_dtype=jnp.bfloat16)
    ref_f = ref_conv_bn_act(x, w, gamma, beta, stride=1, padding=0)
    assert out.shape == (N, Cout, H - KH + 1, W - KW + 1)
    err_m = float(jnp.max(jnp.abs(out - ref_m)))
    err_f = float(jnp.max(jnp.abs(out - ref_f)))
    assert err_m < 8e-2, f"bf16-matched reference max abs error {err_m}"
    assert err_f < 1.5e-1, f"f32 reference max abs error {err_f}"

    # ---- Test 2: bottleneck block (1x1 -> 3x3 s2 -> 1x1 + downsample shortcut)
    inplanes, planes, stride, expansion = 16, 8, 2, 4
    xb = jax.random.normal(keys[4], (N, inplanes, H, W), jnp.float32)

    def make_cbn(kk, cin, cout, k):
        kw_, kg, kb = jax.random.split(kk, 3)
        bnd = 1.0 / (cin * k * k) ** 0.5
        return (jax.random.uniform(kw_, (cout, cin, k, k), jnp.float32, -bnd, bnd),
                jax.random.uniform(kg, (cout,), jnp.float32, 0.5, 1.5),
                jax.random.uniform(kb, (cout,), jnp.float32, -0.5, 0.5))

    params = (make_cbn(keys[5], inplanes, planes, 1),
              make_cbn(keys[6], planes, planes, 3),
              make_cbn(keys[7], planes, planes * expansion, 1),
              make_cbn(keys[8], inplanes, planes * expansion, 1))

    bottleneck = jax.jit(functools.partial(bottleneck_forward, stride=stride))
    outb = jax.block_until_ready(bottleneck(xb, params))

    refb = ref_bottleneck(xb, params, stride=stride,
                          compute_dtype=jnp.bfloat16, store_dtype=jnp.bfloat16)
    assert outb.shape == (N, planes * expansion, H // stride, W // stride)
    err_max = float(jnp.max(jnp.abs(outb - refb)))
    err_mean = float(jnp.mean(jnp.abs(outb - refb)))
    assert err_max < 1.5e-1, f"bottleneck max abs error {err_max}"
    assert err_mean < 2e-2, f"bottleneck mean abs error {err_mean}"

    print("KERNEL_OK")
</pallas_src>

<mosaic_0001>
module attributes {stable_mosaic.version = 11 : i64} {
  func.func @_bn_act_kernel(%arg0: i32, %arg1: memref<512x128xbf16, #tpu.memory_space<vmem>>, %arg2: memref<1x128xf32, #tpu.memory_space<vmem>>, %arg3: memref<1x128xf32, #tpu.memory_space<vmem>>, %arg4: memref<512x128xbf16, #tpu.memory_space<vmem>>) attributes {dimension_semantics = [#tpu.dimension_semantics<parallel>], iteration_bounds = array<i64: 1>, scalar_prefetch = 0 : i64, scratch_operands = 0 : i64, tpu.core_type = #tpu.core_type<tc>, window_params = [{transform_indices = @transform_0, window_bounds = array<i64: 512, 128>}, {pipeline_mode = #tpu.pipeline_mode<synchronous>, transform_indices = @transform_1, window_bounds = array<i64: 1, 128>}, {pipeline_mode = #tpu.pipeline_mode<synchronous>, transform_indices = @transform_2, window_bounds = array<i64: 1, 128>}, {transform_indices = @transform_3, window_bounds = array<i64: 512, 128>}]} {
    %c0 = arith.constant 0 : index
    %c0_0 = arith.constant 0 : index
    %0 = vector.load %arg1[%c0, %c0_0] : memref<512x128xbf16, #tpu.memory_space<vmem>>, vector<512x128xbf16>
    %1 = arith.extf %0 : vector<512x128xbf16> to vector<512x128xf32>
    %c0_1 = arith.constant 0 : index
    %c0_2 = arith.constant 0 : index
    %2 = vector.load %arg2[%c0_1, %c0_2] : memref<1x128xf32, #tpu.memory_space<vmem>>, vector<1x128xf32>
    %3 = vector.broadcast %2 : vector<1x128xf32> to vector<512x128xf32>
    %4 = arith.mulf %1, %3 : vector<512x128xf32>
    %c0_3 = arith.constant 0 : index
    %c0_4 = arith.constant 0 : index
    %5 = vector.load %arg3[%c0_3, %c0_4] : memref<1x128xf32, #tpu.memory_space<vmem>>, vector<1x128xf32>
    %6 = vector.broadcast %5 : vector<1x128xf32> to vector<512x128xf32>
    %7 = arith.addf %4, %6 : vector<512x128xf32>
    %cst = arith.constant 0.000000e+00 : f32
    %8 = vector.broadcast %cst : f32 to vector<512x128xf32>
    %9 = arith.maximumf %7, %8 : vector<512x128xf32>
    %10 = arith.truncf %9 : vector<512x128xf32> to vector<512x128xbf16>
    %c0_5 = arith.constant 0 : index
    %c0_6 = arith.constant 0 : index
    %11 = vector.load %arg4[%c0_5, %c0_6] : memref<512x128xbf16, #tpu.memory_space<vmem>>, vector<512x128xbf16>
    tpu.vector_store %arg4[%c0_5, %c0_6], %10 {strides = array<i32>} : memref<512x128xbf16, #tpu.memory_space<vmem>>, vector<512x128xbf16>,
    return
  }
  func.func @transform_0(%arg0: i32) -> (i32, i32) {
    %c0_i32 = arith.constant 0 : i32
    %c0_i32_0 = arith.constant 0 : i32
    return %arg0, %c0_i32 : i32, i32
  }
  func.func @transform_1(%arg0: i32) -> (i32, i32) {
    %c0_i32 = arith.constant 0 : i32
    %c0_i32_0 = arith.constant 0 : i32
    %c0_i32_1 = arith.constant 0 : i32
    return %c0_i32, %c0_i32_0 : i32, i32
  }
  func.func @transform_2(%arg0: i32) -> (i32, i32) {
    %c0_i32 = arith.constant 0 : i32
    %c0_i32_0 = arith.constant 0 : i32
    %c0_i32_1 = arith.constant 0 : i32
    return %c0_i32, %c0_i32_0 : i32, i32
  }
  func.func @transform_3(%arg0: i32) -> (i32, i32) {
    %c0_i32 = arith.constant 0 : i32
    %c0_i32_0 = arith.constant 0 : i32
    return %arg0, %c0_i32 : i32, i32
  }
}

module attributes {stable_mosaic.version = 11 : i64} {
  func.func @_conv_stats_kernel(%arg0: i32, %arg1: memref<512x1152xbf16, #tpu.memory_space<vmem>>, %arg2: memref<1152x128xbf16, #tpu.memory_space<vmem>>, %arg3: memref<512x128xbf16, #tpu.memory_space<vmem>>, %arg4: memref<8x128xf32, #tpu.memory_space<vmem>>, %arg5: memref<8x128xf32, #tpu.memory_space<vmem>>) attributes {dimension_semantics = [#tpu.dimension_semantics<parallel>], iteration_bounds = array<i64: 1>, scalar_prefetch = 0 : i64, scratch_operands = 0 : i64, tpu.core_type = #tpu.core_type<tc>, window_params = [{transform_indices = @transform_0, window_bounds = array<i64: 512, 1152>}, {pipeline_mode = #tpu.pipeline_mode<synchronous>, transform_indices = @transform_1, window_bounds = array<i64: 1152, 128>}, {transform_indices = @transform_2, window_bounds = array<i64: 512, 128>}, {transform_indices = @transform_3, window_bounds = array<i64: 8, 128>}, {transform_indices = @transform_4, window_bounds = array<i64: 8, 128>}]} {
    %c0 = arith.constant 0 : index
    %c0_0 = arith.constant 0 : index
    %0 = vector.load %arg1[%c0, %c0_0] : memref<512x1152xbf16, #tpu.memory_space<vmem>>, vector<512x1152xbf16>
    %c0_1 = arith.constant 0 : index
    %c0_2 = arith.constant 0 : index
    %1 = vector.load %arg2[%c0_1, %c0_2] : memref<1152x128xbf16, #tpu.memory_space<vmem>>, vector<1152x128xbf16>
    %cst = arith.constant dense<0.000000e+00> : vector<512x128xf32>
    %2 = tpu.matmul %0, %1, %cst {dimension_numbers = #tpu.dot_dimension_numbers<[1], [0], [0], [1], [0, 0, 1, 1], [], []>} : vector<512x1152xbf16>, vector<1152x128xbf16>, vector<512x128xf32> -> vector<512x128xf32>
    %3 = arith.truncf %2 : vector<512x128xf32> to vector<512x128xbf16>
    %c0_3 = arith.constant 0 : index
    %c0_4 = arith.constant 0 : index
    %4 = vector.load %arg3[%c0_3, %c0_4] : memref<512x128xbf16, #tpu.memory_space<vmem>>, vector<512x128xbf16>
    tpu.vector_store %arg3[%c0_3, %c0_4], %3 {strides = array<i32>} : memref<512x128xbf16, #tpu.memory_space<vmem>>, vector<512x128xbf16>,
    %cst_5 = arith.constant dense<0.000000e+00> : vector<128xf32>
    %5 = vector.multi_reduction <add>, %2, %cst_5 [0] : vector<512x128xf32> to vector<128xf32>
    %6 = vector.shape_cast %5 : vector<128xf32> to vector<1x128xf32>
    %7 = arith.mulf %2, %2 : vector<512x128xf32>
    %cst_6 = arith.constant dense<0.000000e+00> : vector<128xf32>
    %8 = vector.multi_reduction <add>, %7, %cst_6 [0] : vector<512x128xf32> to vector<128xf32>
    %9 = vector.shape_cast %8 : vector<128xf32> to vector<1x128xf32>
    %10 = vector.shape_cast %6 : vector<1x128xf32> to vector<1x128xf32>
    %11 = vector.broadcast %10 : vector<1x128xf32> to vector<8x128xf32>
    %c0_7 = arith.constant 0 : index
    %c0_8 = arith.constant 0 : index
    %12 = vector.load %arg4[%c0_7, %c0_8] : memref<8x128xf32, #tpu.memory_space<vmem>>, vector<8x128xf32>
    tpu.vector_store %arg4[%c0_7, %c0_8], %11 {strides = array<i32>} : memref<8x128xf32, #tpu.memory_space<vmem>>, vector<8x128xf32>,
    %13 = vector.shape_cast %9 : vector<1x128xf32> to vector<1x128xf32>
    %14 = vector.broadcast %13 : vector<1x128xf32> to vector<8x128xf32>
    %c0_9 = arith.constant 0 : index
    %c0_10 = arith.constant 0 : index
    %15 = vector.load %arg5[%c0_9, %c0_10] : memref<8x128xf32, #tpu.memory_space<vmem>>, vector<8x128xf32>
    tpu.vector_store %arg5[%c0_9, %c0_10], %14 {strides = array<i32>} : memref<8x128xf32, #tpu.memory_space<vmem>>, vector<8x128xf32>,
    return
  }
  func.func @transform_0(%arg0: i32) -> (i32, i32) {
    %c0_i32 = arith.constant 0 : i32
    %c0_i32_0 = arith.constant 0 : i32
    return %arg0, %c0_i32 : i32, i32
  }
  func.func @transform_1(%arg0: i32) -> (i32, i32) {
    %c0_i32 = arith.constant 0 : i32
    %c0_i32_0 = arith.constant 0 : i32
    %c0_i32_1 = arith.constant 0 : i32
    return %c0_i32, %c0_i32_0 : i32, i32
  }
  func.func @transform_2(%arg0: i32) -> (i32, i32) {
    %c0_i32 = arith.constant 0 : i32
    %c0_i32_0 = arith.constant 0 : i32
    return %arg0, %c0_i32 : i32, i32
  }
  func.func @transform_3(%arg0: i32) -> (i32, i32) {
    %c0_i32 = arith.constant 0 : i32
    %c0_i32_0 = arith.constant 0 : i32
    return %arg0, %c0_i32 : i32, i32
  }
  func.func @transform_4(%arg0: i32) -> (i32, i32) {
    %c0_i32 = arith.constant 0 : i32
    %c0_i32_0 = arith.constant 0 : i32
    return %arg0, %c0_i32 : i32, i32
  }
}

</mosaic_0001>

<bundles_post_ra>
// kernel: conv_bn_act.3
= control target key start
LH: loop header
LB: loop body
LE: loop exit
PB: predicated region body
PF: predicated region fallthrough
CT: control target
= control target key end

     0   :  { %s1502_s0 = inlined_call_operand.vmem [shape: bf16[512,128], index: 0, kind: input, shape index: {}]   ;;  %s1503_s1 = inlined_call_operand.vmem [shape: f32[1,128], index: 1, kind: input, shape index: {}]   ;;  %s1504_s2 = inlined_call_operand.vmem [shape: f32[1,128], index: 2, kind: input, shape index: {}]   ;;  %s1505_s3 = inlined_call_operand.vmem [shape: bf16[512,128], index: 3, kind: output, shape index: {}]  }
   0x1   :  { %v803_v0 = vld [vmem:[%s1502_s0] sm:$0xff]   ;;  %v1090_v4 = vld [vmem:[%s1502_s0 + $0x8] sm:$0xff]   ;;  %v1091_v5 = vld [vmem:[%s1502_s0 + $0x10] sm:$0xff]  }
   0x2   :  { %v1178_v1 = vld [vmem:[%s1503_s1] ss:$0 sm:$0xff]  ;;  %v804_v2 = vunpack.c.l.bf16 %v803_v0  ;;  %v805_v3 = vunpack.c.h.bf16 %v803_v0  ;;  %v1092_v6 = vld [vmem:[%s1502_s0 + $0x18] sm:$0xff]   ;;  %v808_v8 = vunpack.c.l.bf16 %v1090_v4  ;;  %v809_v9 = vunpack.c.h.bf16 %v1090_v4  ;;  %v1094_v33 = vld [vmem:[%s1502_s0 + $0x28] sm:$0xff]  }
   0x3   :  { %v1192_v7 = vld [vmem:[%s1504_s2] ss:$0 sm:$0xff]  ;;  %v812_v10 = vunpack.c.l.bf16 %v1091_v5  ;;  %v813_v11 = vunpack.c.h.bf16 %v1091_v5  ;;  %v816_v14 = vunpack.c.l.bf16 %v1092_v6  ;;  %v817_v15 = vunpack.c.h.bf16 %v1092_v6  ;;  %v1095_v38 = vld [vmem:[%s1502_s0 + $0x30] sm:$0xff]   ;;  %v1096_v43 = vld [vmem:[%s1502_s0 + $0x38] sm:$0xff]  }
   0x4   :  { %v149_v12 = vmul.f32 %v804_v2, %v1178_v1  ;;  %v150_v13 = vmul.f32 %v805_v3, %v1178_v1  ;;  %v151_v16 = vmul.f32 %v808_v8, %v1178_v1  ;;  %v152_v17 = vmul.f32 %v809_v9, %v1178_v1  ;;  %v1093_v28 = vld [vmem:[%s1502_s0 + $0x20] sm:$0xff]  }
   0x5   :  { %v153_v18 = vmul.f32 %v812_v10, %v1178_v1  ;;  %v154_v19 = vmul.f32 %v813_v11, %v1178_v1  ;;  %v155_v22 = vmul.f32 %v816_v14, %v1178_v1  ;;  %v156_v23 = vmul.f32 %v817_v15, %v1178_v1  ;;  %v1097_v0 = vld [vmem:[%s1502_s0 + $0x40] sm:$0xff]   ;;  %v1098_v11 = vld [vmem:[%s1502_s0 + $0x48] sm:$0xff]  }
   0x6   :  { %v220_v20 = vadd.f32 %v1192_v7, %v149_v12  ;;  %v221_v21 = vadd.f32 %v1192_v7, %v150_v13  ;;  %v222_v24 = vadd.f32 %v1192_v7, %v151_v16  ;;  %v223_v25 = vadd.f32 %v1192_v7, %v152_v17  ;;  %v1099_v16 = vld [vmem:[%s1502_s0 + $0x50] sm:$0xff]  }
   0x7   :  { %v224_v26 = vadd.f32 %v1192_v7, %v153_v18  ;;  %v225_v27 = vadd.f32 %v1192_v7, %v154_v19  ;;  %v226_v31 = vadd.f32 %v1192_v7, %v155_v22  ;;  %v227_v32 = vadd.f32 %v1192_v7, %v156_v23 }
   0x8   :  { %v284_v29 = vmax.f32 %v220_v20, 0.0  ;;  %v285_v30 = vmax.f32 %v221_v21, 0.0  ;;  %v286_v34 = vmax.f32 %v222_v24, 0.0  ;;  %v287_v35 = vmax.f32 %v223_v25, 0.0  ;;  %v1100_v25 = vld [vmem:[%s1502_s0 + $0x58] sm:$0xff]  }
   0x9   :  { %v288_v36 = vmax.f32 %v224_v26, 0.0  ;;  %v289_v37 = vmax.f32 %v225_v27, 0.0  ;;  %v290_v40 = vmax.f32 %v226_v31, 0.0  ;;  %v291_v41 = vmax.f32 %v227_v32, 0.0 }
   0xa   :  { %v933_v39 = vpack.c.bf16 %v285_v30, %v284_v29  ;;  %v820_v42 = vunpack.c.l.bf16 %v1093_v28  ;;  %v938_v44 = vpack.c.bf16 %v287_v35, %v286_v34  ;;  %v821_v46 = vunpack.c.h.bf16 %v1093_v28 }
   0xb   :  { %v943_v45 = vpack.c.bf16 %v289_v37, %v288_v36  ;;  %v824_v47 = vunpack.c.l.bf16 %v1094_v33  ;;  %v948_v48 = vpack.c.bf16 %v291_v41, %v290_v40  ;;  %v825_v50 = vunpack.c.h.bf16 %v1094_v33 }
   0xc   :  { %934 = vst [vmem:[%s1505_s3] sm:$0xff] %v933_v39   ;;  %v157_v49 = vmul.f32 %v820_v42, %v1178_v1  ;;  %v828_v51 = vunpack.c.l.bf16 %v1095_v38  ;;  %1121 = vst [vmem:[%s1505_s3 + $0x8] sm:$0xff] %v938_v44   ;;  %v158_v52 = vmul.f32 %v821_v46, %v1178_v1  ;;  %v829_v54 = vunpack.c.h.bf16 %v1095_v38  ;;  %v1101_v38 = vld [vmem:[%s1502_s0 + $0x60] sm:$0xff]  }
   0xd   :  { %1122 = vst [vmem:[%s1505_s3 + $0x10] sm:$0xff] %v943_v45   ;;  %v159_v53 = vmul.f32 %v824_v47, %v1178_v1  ;;  %v832_v55 = vunpack.c.l.bf16 %v1096_v43  ;;  %1123 = vst [vmem:[%s1505_s3 + $0x18] sm:$0xff] %v948_v48   ;;  %v160_v57 = vmul.f32 %v825_v50, %v1178_v1  ;;  %v833_v59 = vunpack.c.h.bf16 %v1096_v43 }
   0xe   :  { %v228_v56 = vadd.f32 %v1192_v7, %v157_v49  ;;  %v161_v58 = vmul.f32 %v828_v51, %v1178_v1  ;;  %v229_v60 = vadd.f32 %v1192_v7, %v158_v52  ;;  %v162_v62 = vmul.f32 %v829_v54, %v1178_v1  ;;  %v1102_v51 = vld [vmem:[%s1502_s0 + $0x68] sm:$0xff]  }
   0xf   :  { %v230_v61 = vadd.f32 %v1192_v7, %v159_v53  ;;  %v163_v63 = vmul.f32 %v832_v55, %v1178_v1  ;;  %v231_v3 = vadd.f32 %v1192_v7, %v160_v57  ;;  %v164_v5 = vmul.f32 %v833_v59, %v1178_v1 }
  0x10   :  { %v292_v2 = vmax.f32 %v228_v56, 0.0  ;;  %v232_v4 = vadd.f32 %v1192_v7, %v161_v58  ;;  %v293_v6 = vmax.f32 %v229_v60, 0.0  ;;  %v233_v9 = vadd.f32 %v1192_v7, %v162_v62  ;;  %v1103_v60 = vld [vmem:[%s1502_s0 + $0x70] sm:$0xff]  }
  0x11   :  { %v294_v8 = vmax.f32 %v230_v61, 0.0  ;;  %v234_v10 = vadd.f32 %v1192_v7, %v163_v63  ;;  %v295_v12 = vmax.f32 %v231_v3, 0.0  ;;  %v235_v14 = vadd.f32 %v1192_v7, %v164_v5 }
  0x12   :  { %v296_v13 = vmax.f32 %v232_v4, 0.0  ;;  %v836_v15 = vunpack.c.l.bf16 %v1097_v0  ;;  %v953_v17 = vpack.c.bf16 %v293_v6, %v292_v2  ;;  %v297_v18 = vmax.f32 %v233_v9, 0.0  ;;  %v1104_v2 = vld [vmem:[%s1502_s0 + $0x78] sm:$0xff]  }
  0x13   :  { %v298_v19 = vmax.f32 %v234_v10, 0.0  ;;  %v837_v20 = vunpack.c.h.bf16 %v1097_v0  ;;  %v958_v21 = vpack.c.bf16 %v295_v12, %v294_v8  ;;  %v299_v22 = vmax.f32 %v235_v14, 0.0  ;;  %v1105_v12 = vld [vmem:[%s1502_s0 + $0x80] sm:$0xff]  }
  0x14   :  { %v165_v23 = vmul.f32 %v836_v15, %v1178_v1  ;;  %v840_v24 = vunpack.c.l.bf16 %v1098_v11  ;;  %1124 = vst [vmem:[%s1505_s3 + $0x20] sm:$0xff] %v953_v17   ;;  %v963_v26 = vpack.c.bf16 %v297_v18, %v296_v13  ;;  %v841_v28 = vunpack.c.h.bf16 %v1098_v11 }
  0x15   :  { %v166_v27 = vmul.f32 %v837_v20, %v1178_v1  ;;  %v844_v29 = vunpack.c.l.bf16 %v1099_v16  ;;  %1125 = vst [vmem:[%s1505_s3 + $0x28] sm:$0xff] %v958_v21   ;;  %v968_v30 = vpack.c.bf16 %v299_v22, %v298_v19  ;;  %v845_v33 = vunpack.c.h.bf16 %v1099_v16 }
  0x16   :  { %v236_v31 = vadd.f32 %v1192_v7, %v165_v23  ;;  %v167_v32 = vmul.f32 %v840_v24, %v1178_v1  ;;  %1126 = vst [vmem:[%s1505_s3 + $0x30] sm:$0xff] %v963_v26   ;;  %v168_v35 = vmul.f32 %v841_v28, %v1178_v1  ;;  %v848_v37 = vunpack.c.l.bf16 %v1100_v25 }
  0x17   :  { %v237_v34 = vadd.f32 %v1192_v7, %v166_v27  ;;  %v169_v36 = vmul.f32 %v844_v29, %v1178_v1  ;;  %1127 = vst [vmem:[%s1505_s3 + $0x38] sm:$0xff] %v968_v30   ;;  %v170_v41 = vmul.f32 %v845_v33, %v1178_v1  ;;  %v849_v42 = vunpack.c.h.bf16 %v1100_v25  ;;  %v1106_v29 = vld [vmem:[%s1502_s0 + $0x88] sm:$0xff]  }
  0x18   :  { %v300_v39 = vmax.f32 %v236_v31, 0.0  ;;  %v238_v40 = vadd.f32 %v1192_v7, %v167_v32  ;;  %v239_v44 = vadd.f32 %v1192_v7, %v168_v35  ;;  %v171_v46 = vmul.f32 %v848_v37, %v1178_v1 }
  0x19   :  { %v301_v43 = vmax.f32 %v237_v34, 0.0  ;;  %v240_v45 = vadd.f32 %v1192_v7, %v169_v36  ;;  %v241_v48 = vadd.f32 %v1192_v7, %v170_v41  ;;  %v172_v49 = vmul.f32 %v849_v42, %v1178_v1  ;;  %v1107_v34 = vld [vmem:[%s1502_s0 + $0x90] sm:$0xff]  }
  0x1a   :  { %v302_v47 = vmax.f32 %v238_v40, 0.0  ;;  %v852_v50 = vunpack.c.l.bf16 %v1101_v38  ;;  %v303_v53 = vmax.f32 %v239_v44, 0.0  ;;  %v242_v55 = vadd.f32 %v1192_v7, %v171_v46 }
  0x1b   :  { %v973_v52 = vpack.c.bf16 %v301_v43, %v300_v39  ;;  %v304_v54 = vmax.f32 %v240_v45, 0.0  ;;  %v305_v56 = vmax.f32 %v241_v48, 0.0  ;;  %v243_v57 = vadd.f32 %v1192_v7, %v172_v49  ;;  %v1108_v43 = vld [vmem:[%s1502_s0 + $0x98] sm:$0xff]  }
  0x1c   :  { %v853_v58 = vunpack.c.h.bf16 %v1101_v38  ;;  %v173_v59 = vmul.f32 %v852_v50, %v1178_v1  ;;  %v978_v61 = vpack.c.bf16 %v303_v53, %v302_v47  ;;  %v306_v62 = vmax.f32 %v242_v55, 0.0 }
  0x1d   :  { %1128 = vst [vmem:[%s1505_s3 + $0x40] sm:$0xff] %v973_v52   ;;  %v856_v63 = vunpack.c.l.bf16 %v1102_v51  ;;  %v857_v0 = vunpack.c.h.bf16 %v1102_v51  ;;  %v983_v3 = vpack.c.bf16 %v305_v56, %v304_v54  ;;  %v307_v4 = vmax.f32 %v243_v57, 0.0  ;;  %v1109_v56 = vld [vmem:[%s1502_s0 + $0xa0] sm:$0xff]  }
  0x1e   :  { %v174_v5 = vmul.f32 %v853_v58, %v1178_v1  ;;  %v244_v6 = vadd.f32 %v1192_v7, %v173_v59  ;;  %1129 = vst [vmem:[%s1505_s3 + $0x48] sm:$0xff] %v978_v61   ;;  %v860_v10 = vunpack.c.l.bf16 %v1103_v60  ;;  %v861_v11 = vunpack.c.h.bf16 %v1103_v60 }
  0x1f   :  { %v175_v8 = vmul.f32 %v856_v63, %v1178_v1  ;;  %v176_v9 = vmul.f32 %v857_v0, %v1178_v1  ;;  %1130 = vst [vmem:[%s1505_s3 + $0x50] sm:$0xff] %v983_v3   ;;  %v988_v13 = vpack.c.bf16 %v307_v4, %v306_v62  ;;  %v864_v16 = vunpack.c.l.bf16 %v1104_v2 }
  0x20   :  { %v245_v14 = vadd.f32 %v1192_v7, %v174_v5  ;;  %v308_v15 = vmax.f32 %v244_v6, 0.0  ;;  %v177_v19 = vmul.f32 %v860_v10, %v1178_v1  ;;  %v178_v20 = vmul.f32 %v861_v11, %v1178_v1 }
  0x21   :  { %v246_v17 = vadd.f32 %v1192_v7, %v175_v8  ;;  %v247_v18 = vadd.f32 %v1192_v7, %v176_v9  ;;  %1131 = vst [vmem:[%s1505_s3 + $0x58] sm:$0xff] %v988_v13   ;;  %v865_v22 = vunpack.c.h.bf16 %v1104_v2  ;;  %v179_v23 = vmul.f32 %v864_v16, %v1178_v1  ;;  %v1110_v2 = vld [vmem:[%s1502_s0 + $0xa8] sm:$0xff]   ;;  %v1111_v16 = vld [vmem:[%s1502_s0 + $0xb0] sm:$0xff]  }
  0x22   :  { %v309_v21 = vmax.f32 %v245_v14, 0.0  ;;  %v868_v24 = vunpack.c.l.bf16 %v1105_v12  ;;  %v248_v27 = vadd.f32 %v1192_v7, %v177_v19  ;;  %v249_v28 = vadd.f32 %v1192_v7, %v178_v20 }
  0x23   :  { %v310_v25 = vmax.f32 %v246_v17, 0.0  ;;  %v311_v26 = vmax.f32 %v247_v18, 0.0  ;;  %v180_v31 = vmul.f32 %v865_v22, %v1178_v1  ;;  %v250_v32 = vadd.f32 %v1192_v7, %v179_v23 }
  0x24   :  { %v993_v30 = vpack.c.bf16 %v309_v21, %v308_v15  ;;  %v869_v33 = vunpack.c.h.bf16 %v1105_v12  ;;  %v312_v36 = vmax.f32 %v248_v27, 0.0  ;;  %v313_v37 = vmax.f32 %v249_v28, 0.0  ;;  %v1112_v21 = vld [vmem:[%s1502_s0 + $0xb8] sm:$0xff]  }
  0x25   :  { %v998_v35 = vpack.c.bf16 %v311_v26, %v310_v25  ;;  %v181_v38 = vmul.f32 %v868_v24, %v1178_v1  ;;  %v251_v39 = vadd.f32 %v1192_v7, %v180_v31  ;;  %v314_v40 = vmax.f32 %v250_v32, 0.0 }
  0x26   :  { %1132 = vst [vmem:[%s1505_s3 + $0x60] sm:$0xff] %v993_v30   ;;  %v182_v41 = vmul.f32 %v869_v33, %v1178_v1  ;;  %v872_v42 = vunpack.c.l.bf16 %v1106_v29  ;;  %v1003_v44 = vpack.c.bf16 %v313_v37, %v312_v36  ;;  %v873_v46 = vunpack.c.h.bf16 %v1106_v29 }
  0x27   :  { %1133 = vst [vmem:[%s1505_s3 + $0x68] sm:$0xff] %v998_v35   ;;  %v252_v45 = vadd.f32 %v1192_v7, %v181_v38  ;;  %v876_v47 = vunpack.c.l.bf16 %v1107_v34  ;;  %v315_v48 = vmax.f32 %v251_v39, 0.0  ;;  %v877_v51 = vunpack.c.h.bf16 %v1107_v34  ;;  %v1113_v34 = vld [vmem:[%s1502_s0 + $0xc0] sm:$0xff]  }
  0x28   :  { %v253_v49 = vadd.f32 %v1192_v7, %v182_v41  ;;  %v183_v50 = vmul.f32 %v872_v42, %v1178_v1  ;;  %1134 = vst [vmem:[%s1505_s3 + $0x70] sm:$0xff] %v1003_v44   ;;  %v184_v53 = vmul.f32 %v873_v46, %v1178_v1  ;;  %v880_v55 = vunpack.c.l.bf16 %v1108_v43 }
  0x29   :  { %v316_v52 = vmax.f32 %v252_v45, 0.0  ;;  %v185_v54 = vmul.f32 %v876_v47, %v1178_v1  ;;  %v1008_v57 = vpack.c.bf16 %v315_v48, %v314_v40  ;;  %v186_v60 = vmul.f32 %v877_v51, %v1178_v1  ;;  %v1114_v47 = vld [vmem:[%s1502_s0 + $0xc8] sm:$0xff]  }
  0x2a   :  { %v317_v58 = vmax.f32 %v253_v49, 0.0  ;;  %v254_v59 = vadd.f32 %v1192_v7, %v183_v50  ;;  %v255_v61 = vadd.f32 %v1192_v7, %v184_v53  ;;  %v881_v63 = vunpack.c.h.bf16 %v1108_v43 }
  0x2b   :  { %v256_v62 = vadd.f32 %v1192_v7, %v185_v54  ;;  %v187_v0 = vmul.f32 %v880_v55, %v1178_v1  ;;  %1135 = vst [vmem:[%s1505_s3 + $0x78] sm:$0xff] %v1008_v57   ;;  %v257_v5 = vadd.f32 %v1192_v7, %v186_v60  ;;  %v884_v6 = vunpack.c.l.bf16 %v1109_v56 }
  0x2c   :  { %v1013_v3 = vpack.c.bf16 %v317_v58, %v316_v52  ;;  %v318_v4 = vmax.f32 %v254_v59, 0.0  ;;  %v319_v8 = vmax.f32 %v255_v61, 0.0  ;;  %v188_v10 = vmul.f32 %v881_v63, %v1178_v1  ;;  %v1115_v52 = vld [vmem:[%s1502_s0 + $0xd0] sm:$0xff]   ;;  %v1116_v61 = vld [vmem:[%s1502_s0 + $0xd8] sm:$0xff]  }
  0x2d   :  { %v320_v9 = vmax.f32 %v256_v62, 0.0  ;;  %v258_v11 = vadd.f32 %v1192_v7, %v187_v0  ;;  %v321_v12 = vmax.f32 %v257_v5, 0.0  ;;  %v885_v13 = vunpack.c.h.bf16 %v1109_v56 }
  0x2e   :  { %1136 = vst [vmem:[%s1505_s3 + $0x80] sm:$0xff] %v1013_v3   ;;  %v189_v14 = vmul.f32 %v884_v6, %v1178_v1  ;;  %v888_v15 = vunpack.c.l.bf16 %v1110_v2  ;;  %v1018_v17 = vpack.c.bf16 %v319_v8, %v318_v4  ;;  %v259_v18 = vadd.f32 %v1192_v7, %v188_v10 }
  0x2f   :  { %v322_v19 = vmax.f32 %v258_v11, 0.0  ;;  %v889_v20 = vunpack.c.h.bf16 %v1110_v2  ;;  %v1023_v22 = vpack.c.bf16 %v321_v12, %v320_v9  ;;  %v190_v23 = vmul.f32 %v885_v13, %v1178_v1  ;;  %v1117_v12 = vld [vmem:[%s1502_s0 + $0xe0] sm:$0xff]  }
  0x30   :  { %v260_v24 = vadd.f32 %v1192_v7, %v189_v14  ;;  %v191_v25 = vmul.f32 %v888_v15, %v1178_v1  ;;  %1137 = vst [vmem:[%s1505_s3 + $0x88] sm:$0xff] %v1018_v17   ;;  %v323_v26 = vmax.f32 %v259_v18, 0.0  ;;  %v892_v28 = vunpack.c.l.bf16 %v1111_v16 }
  0x31   :  { %v192_v27 = vmul.f32 %v889_v20, %v1178_v1  ;;  %v893_v29 = vunpack.c.h.bf16 %v1111_v16  ;;  %1138 = vst [vmem:[%s1505_s3 + $0x90] sm:$0xff] %v1023_v22   ;;  %v261_v30 = vadd.f32 %v1192_v7, %v190_v23  ;;  %v896_v33 = vunpack.c.l.bf16 %v1112_v21 }
  0x32   :  { %v324_v31 = vmax.f32 %v260_v24, 0.0  ;;  %v262_v32 = vadd.f32 %v1192_v7, %v191_v25  ;;  %v1028_v35 = vpack.c.bf16 %v323_v26, %v322_v19  ;;  %v193_v37 = vmul.f32 %v892_v28, %v1178_v1 }
  0x33   :  { %v263_v36 = vadd.f32 %v1192_v7, %v192_v27  ;;  %v194_v38 = vmul.f32 %v893_v29, %v1178_v1  ;;  %v325_v39 = vmax.f32 %v261_v30, 0.0  ;;  %v897_v41 = vunpack.c.h.bf16 %v1112_v21  ;;  %v1118_v21 = vld [vmem:[%s1502_s0 + $0xe8] sm:$0xff]  }
  0x34   :  { %v326_v40 = vmax.f32 %v262_v32, 0.0  ;;  %v195_v42 = vmul.f32 %v896_v33, %v1178_v1  ;;  %1139 = vst [vmem:[%s1505_s3 + $0x98] sm:$0xff] %v1028_v35   ;;  %v264_v44 = vadd.f32 %v1192_v7, %v193_v37  ;;  %v900_v46 = vunpack.c.l.bf16 %v1113_v34 }
  0x35   :  { %v327_v43 = vmax.f32 %v263_v36, 0.0  ;;  %v265_v45 = vadd.f32 %v1192_v7, %v194_v38  ;;  %v1033_v48 = vpack.c.bf16 %v325_v39, %v324_v31  ;;  %v196_v49 = vmul.f32 %v897_v41, %v1178_v1  ;;  %v1120_v39 = vld [vmem:[%s1502_s0 + $0xf8] sm:$0xff]  }
  0x36   :  { %v266_v50 = vadd.f32 %v1192_v7, %v195_v42  ;;  %v901_v51 = vunpack.c.h.bf16 %v1113_v34  ;;  %v328_v54 = vmax.f32 %v264_v44, 0.0  ;;  %v197_v56 = vmul.f32 %v900_v46, %v1178_v1  ;;  %v1119_v34 = vld [vmem:[%s1502_s0 + $0xf0] sm:$0xff]  }
  0x37   :  { %v1038_v53 = vpack.c.bf16 %v327_v43, %v326_v40  ;;  %v329_v55 = vmax.f32 %v265_v45, 0.0  ;;  %1140 = vst [vmem:[%s1505_s3 + $0xa0] sm:$0xff] %v1033_v48   ;;  %v267_v57 = vadd.f32 %v1192_v7, %v196_v49  ;;  %v904_v60 = vunpack.c.l.bf16 %v1114_v47 }
  0x38   :  { %v330_v58 = vmax.f32 %v266_v50, 0.0  ;;  %v198_v59 = vmul.f32 %v901_v51, %v1178_v1  ;;  %v268_v63 = vadd.f32 %v1192_v7, %v197_v56  ;;  %v905_v0 = vunpack.c.h.bf16 %v1114_v47 }
  0x39   :  { %1141 = vst [vmem:[%s1505_s3 + $0xa8] sm:$0xff] %v1038_v53   ;;  %v1043_v62 = vpack.c.bf16 %v329_v55, %v328_v54  ;;  %v908_v2 = vunpack.c.l.bf16 %v1115_v52  ;;  %v331_v3 = vmax.f32 %v267_v57, 0.0  ;;  %v199_v5 = vmul.f32 %v904_v60, %v1178_v1 }
  0x3a   :  { %v269_v4 = vadd.f32 %v1192_v7, %v198_v59  ;;  %v909_v6 = vunpack.c.h.bf16 %v1115_v52  ;;  %v332_v8 = vmax.f32 %v268_v63, 0.0  ;;  %v200_v9 = vmul.f32 %v905_v0, %v1178_v1 }
  0x3b   :  { %1142 = vst [vmem:[%s1505_s3 + $0xb0] sm:$0xff] %v1043_v62   ;;  %v201_v10 = vmul.f32 %v908_v2, %v1178_v1  ;;  %v912_v11 = vunpack.c.l.bf16 %v1116_v61  ;;  %v1048_v13 = vpack.c.bf16 %v331_v3, %v330_v58  ;;  %v270_v15 = vadd.f32 %v1192_v7, %v199_v5 }
  0x3c   :  { %v333_v14 = vmax.f32 %v269_v4, 0.0  ;;  %v202_v16 = vmul.f32 %v909_v6, %v1178_v1  ;;  %v271_v17 = vadd.f32 %v1192_v7, %v200_v9  ;;  %v913_v19 = vunpack.c.h.bf16 %v1116_v61 }
  0x3d   :  { %v272_v18 = vadd.f32 %v1192_v7, %v201_v10  ;;  %v203_v20 = vmul.f32 %v912_v11, %v1178_v1  ;;  %1143 = vst [vmem:[%s1505_s3 + $0xb8] sm:$0xff] %v1048_v13   ;;  %v334_v23 = vmax.f32 %v270_v15, 0.0  ;;  %v916_v25 = vunpack.c.l.bf16 %v1117_v12 }
  0x3e   :  { %v1053_v22 = vpack.c.bf16 %v333_v14, %v332_v8  ;;  %v273_v24 = vadd.f32 %v1192_v7, %v202_v16  ;;  %v335_v26 = vmax.f32 %v271_v17, 0.0  ;;  %v204_v28 = vmul.f32 %v913_v19, %v1178_v1 }
  0x3f   :  { %v336_v27 = vmax.f32 %v272_v18, 0.0  ;;  %v274_v29 = vadd.f32 %v1192_v7, %v203_v20  ;;  %v917_v31 = vunpack.c.h.bf16 %v1117_v12  ;;  %v205_v32 = vmul.f32 %v916_v25, %v1178_v1 }
  0x40   :  { %1144 = vst [vmem:[%s1505_s3 + $0xc0] sm:$0xff] %v1053_v22   ;;  %v337_v30 = vmax.f32 %v273_v24, 0.0  ;;  %v920_v33 = vunpack.c.l.bf16 %v1118_v21  ;;  %v1058_v35 = vpack.c.bf16 %v335_v26, %v334_v23  ;;  %v275_v36 = vadd.f32 %v1192_v7, %v204_v28 }
  0x41   :  { %v338_v37 = vmax.f32 %v274_v29, 0.0  ;;  %v921_v38 = vunpack.c.h.bf16 %v1118_v21  ;;  %v206_v41 = vmul.f32 %v917_v31, %v1178_v1  ;;  %v276_v42 = vadd.f32 %v1192_v7, %v205_v32 }
  0x42   :  { %v1063_v40 = vpack.c.bf16 %v337_v30, %v336_v27  ;;  %v207_v43 = vmul.f32 %v920_v33, %v1178_v1  ;;  %1145 = vst [vmem:[%s1505_s3 + $0xc8] sm:$0xff] %v1058_v35   ;;  %v339_v44 = vmax.f32 %v275_v36, 0.0  ;;  %v924_v46 = vunpack.c.l.bf16 %v1119_v34 }
  0x43   :  { %v208_v45 = vmul.f32 %v921_v38, %v1178_v1  ;;  %v925_v47 = vunpack.c.h.bf16 %v1119_v34  ;;  %v277_v48 = vadd.f32 %v1192_v7, %v206_v41  ;;  %v340_v49 = vmax.f32 %v276_v42, 0.0 }
  0x44   :  { %1146 = vst [vmem:[%s1505_s3 + $0xd0] sm:$0xff] %v1063_v40   ;;  %v278_v50 = vadd.f32 %v1192_v7, %v207_v43  ;;  %v928_v51 = vunpack.c.l.bf16 %v1120_v39  ;;  %v1068_v52 = vpack.c.bf16 %v339_v44, %v338_v37  ;;  %v209_v54 = vmul.f32 %v924_v46, %v1178_v1 }
  0x45   :  { %v279_v53 = vadd.f32 %v1192_v7, %v208_v45  ;;  %v210_v55 = vmul.f32 %v925_v47, %v1178_v1  ;;  %v341_v56 = vmax.f32 %v277_v48, 0.0  ;;  %v929_v58 = vunpack.c.h.bf16 %v1120_v39 }
  0x46   :  { %v342_v57 = vmax.f32 %v278_v50, 0.0  ;;  %v211_v59 = vmul.f32 %v928_v51, %v1178_v1  ;;  %1147 = vst [vmem:[%s1505_s3 + $0xd8] sm:$0xff] %v1068_v52   ;;  %v280_v61 = vadd.f32 %v1192_v7, %v209_v54 }
  0x47   :  { %v343_v60 = vmax.f32 %v279_v53, 0.0  ;;  %v281_v62 = vadd.f32 %v1192_v7, %v210_v55  ;;  %v1073_v63 = vpack.c.bf16 %v341_v56, %v340_v49  ;;  %v212_v0 = vmul.f32 %v929_v58, %v1178_v1 }
  0x48   :  { %v282_v2 = vadd.f32 %v1192_v7, %v211_v59  ;;  %v344_v4 = vmax.f32 %v280_v61, 0.0 }
  0x49   :  { %v1078_v3 = vpack.c.bf16 %v343_v60, %v342_v57  ;;  %v345_v5 = vmax.f32 %v281_v62, 0.0  ;;  %1148 = vst [vmem:[%s1505_s3 + $0xe0] sm:$0xff] %v1073_v63   ;;  %v283_v6 = vadd.f32 %v1192_v7, %v212_v0 }
  0x4a   :  { %v346_v8 = vmax.f32 %v282_v2, 0.0 }
  0x4b   :  { %1149 = vst [vmem:[%s1505_s3 + $0xe8] sm:$0xff] %v1078_v3   ;;  %v1083_v9 = vpack.c.bf16 %v345_v5, %v344_v4  ;;  %v347_v10 = vmax.f32 %v283_v6, 0.0 }
  0x4d   :  { %1150 = vst [vmem:[%s1505_s3 + $0xf0] sm:$0xff] %v1083_v9   ;;  %v1088_v1 = vpack.c.bf16 %v347_v10, %v346_v8 }
  0x4f   :  { %1151 = vst [vmem:[%s1505_s3 + $0xf8] sm:$0xff] %v1088_v1  }

// kernel: conv_bn_act.2
= control target key start
LH: loop header
LB: loop body
LE: loop exit
PB: predicated region body
PF: predicated region fallthrough
CT: control target
= control target key end

     0   :  { %v6004_v0 = vmov 0   ;;  %s7714_s1 = inlined_call_operand.vmem [shape: bf16[1152,128], index: 1, kind: input, shape index: {}]   ;;  %s7715_s0 = inlined_call_operand.vmem [shape: bf16[512,1152], index: 0, kind: input, shape index: {}]   ;;  %s7716_s2 = inlined_call_operand.vmem [shape: bf16[512,128], index: 2, kind: output, shape index: {0}]   ;;  %s7717_s3 = inlined_call_operand.vmem [shape: f32[8,128], index: 3, kind: output, shape index: {1}]   ;;  %s7718_s4 = inlined_call_operand.vmem [shape: f32[8,128], index: 4, kind: output, shape index: {2}]  }
   0x1   :  { %2383 = vmatprep.subr.bf16.mxu1 %v6004_v0  ;;  %2672 = vmatprep.subr.bf16.mxu0 %v6004_v0  ;;  %v5516_v1 = vld [vmem:[%s7714_s1] sm:$0xff]   ;;  %v5518_v3 = vld [vmem:[%s7714_s1 + $0x8] sm:$0xff]   ;;  %v5520_v5 = vld [vmem:[%s7714_s1 + $0x10] sm:$0xff]  }
   0x2   :  { %v6038_v2 = vld [vmem:[%s7714_s1 + $0x80] sm:$0xff]   ;;  %2384 = vmatpush1.bf16.msra.mxu1 %v5516_v1  ;;  %v6048_v4 = vld [vmem:[%s7714_s1 + $0x88] sm:$0xff]   ;;  %v6059_v6 = vld [vmem:[%s7714_s1 + $0x90] sm:$0xff]  }
   0x3   :  { %2673 = vmatpush1.bf16.msra.mxu0 %v6038_v2  ;;  %2385 = vmatprep.subr.bf16.mxu1 %v6004_v0  ;;  %v5522_v7 = vld [vmem:[%s7714_s1 + $0x18] sm:$0xff]   ;;  %v5524_v9 = vld [vmem:[%s7714_s1 + $0x20] sm:$0xff]   ;;  %v5526_v11 = vld [vmem:[%s7714_s1 + $0x28] sm:$0xff]  }
   0x4   :  { %2674 = vmatprep.subr.bf16.mxu0 %v6004_v0  ;;  %v6070_v8 = vld [vmem:[%s7714_s1 + $0x98] sm:$0xff]   ;;  %v6081_v10 = vld [vmem:[%s7714_s1 + $0xa0] sm:$0xff]   ;;  %v6092_v12 = vld [vmem:[%s7714_s1 + $0xa8] sm:$0xff]  }
   0x5   :  { %v5528_v13 = vld [vmem:[%s7714_s1 + $0x30] sm:$0xff]   ;;  %v5530_v15 = vld [vmem:[%s7714_s1 + $0x38] sm:$0xff]   ;;  %v5532_v17 = vld [vmem:[%s7714_s1 + $0x40] sm:$0xff]  }
   0x6   :  { %2386 = vmatpush1.bf16.msra.mxu1 %v5518_v3  ;;  %v6103_v14 = vld [vmem:[%s7714_s1 + $0xb0] sm:$0xff]   ;;  %v6114_v16 = vld [vmem:[%s7714_s1 + $0xb8] sm:$0xff]   ;;  %v6125_v18 = vld [vmem:[%s7714_s1 + $0xc0] sm:$0xff]  }
   0x7   :  { %2675 = vmatpush1.bf16.msra.mxu0 %v6048_v4  ;;  %2387 = vmatprep.subr.bf16.mxu1 %v6004_v0  ;;  %v5550_v19 = vld [vmem:[%s7715_s0 + $0x4] ss:$36 sps:$4 sm:$0xff]   ;;  %v5553_v21 = vld [vmem:[%s7715_s0 + $0xc] ss:$36 sps:$4 sm:$0xff]   ;;  %v5538_v25 = vld [vmem:[%s7714_s1 + $0x58] sm:$0xff]  }
   0x8   :  { %2676 = vmatprep.subr.bf16.mxu0 %v6004_v0  ;;  %v5534_v20 = vld [vmem:[%s7714_s1 + $0x48] sm:$0xff]   ;;  %2415 = vmatprep.mubr.bf16.mxu1 %v5550_v19  ;;  %v5536_v23 = vld [vmem:[%s7714_s1 + $0x50] sm:$0xff]   ;;  %v6164_v26 = vld [vmem:[%s7714_s1 + $0xd8] sm:$0xff]  }
   0x9   :  { %v6142_v22 = vld [vmem:[%s7714_s1 + $0xc8] sm:$0xff]   ;;  %2704 = vmatprep.mubr.bf16.mxu0 %v5553_v21  ;;  %v6153_v24 = vld [vmem:[%s7714_s1 + $0xd0] sm:$0xff]   ;;  %v5540_v27 = vld [vmem:[%s7714_s1 + $0x60] sm:$0xff]  }
   0xa   :  { %2388 = vmatpush1.bf16.msra.mxu1 %v5520_v5  ;;  %v6175_v28 = vld [vmem:[%s7714_s1 + $0xe0] sm:$0xff]   ;;  %v5542_v29 = vld [vmem:[%s7714_s1 + $0x68] sm:$0xff]   ;;  %v5544_v31 = vld [vmem:[%s7714_s1 + $0x70] sm:$0xff]  }
   0xb   :  { %2677 = vmatpush1.bf16.msra.mxu0 %v6059_v6  ;;  %2389 = vmatprep.subr.bf16.mxu1 %v6004_v0  ;;  %v6186_v30 = vld [vmem:[%s7714_s1 + $0xe8] sm:$0xff]   ;;  %v6197_v32 = vld [vmem:[%s7714_s1 + $0xf0] sm:$0xff]   ;;  %v5546_v33 = vld [vmem:[%s7714_s1 + $0x78] sm:$0xff]  }
   0xc   :  { %2678 = vmatprep.subr.bf16.mxu0 %v6004_v0  ;;  %v6208_v34 = vld [vmem:[%s7714_s1 + $0xf8] sm:$0xff]   ;;  %v5548_v35 = vld [vmem:[%s7715_s0] ss:$36 sps:$4 sm:$0xff]   ;;  %v5551_v36 = vld [vmem:[%s7715_s0 + $0x8] ss:$36 sps:$4 sm:$0xff]  }
   0xd   :  { %v5554_v37 = vld [vmem:[%s7714_s1 + $0x100] sm:$0xff]   ;;  %v5556_v38 = vld [vmem:[%s7715_s0 + $0x4c] ss:$36 sps:$4 sm:$0xff]   ;;  %v5558_v39 = vld [vmem:[%s7715_s0 + $0x54] ss:$36 sps:$4 sm:$0xff]  }
   0xe   :  { %2390 = vmatpush1.bf16.msra.mxu1 %v5522_v7  ;;  %v5555_v40 = vld [vmem:[%s7714_s1 + $0x108] sm:$0xff]   ;;  %v5561_v42 = vld [vmem:[%s7715_s0 + $0x50] ss:$36 sps:$4 sm:$0xff]   ;;  %v5566_v45 = vld [vmem:[%s7715_s0 + $0x9c] ss:$36 sps:$4 sm:$0xff]  }
   0xf   :  { %2679 = vmatpush1.bf16.msra.mxu0 %v6070_v8  ;;  %2391 = vmatprep.subr.bf16.mxu1 %v6004_v0  ;;  %v5560_v41 = vld [vmem:[%s7715_s0 + $0x48] ss:$36 sps:$4 sm:$0xff]   ;;  %v5564_v43 = vld [vmem:[%s7715_s0 + $0x94] ss:$36 sps:$4 sm:$0xff]   ;;  %v5570_v49 = vld [vmem:[%s7714_s1 + $0x120] sm:$0xff]  }
  0x10   :  { %2680 = vmatprep.subr.bf16.mxu0 %v6004_v0  ;;  %v5562_v44 = vld [vmem:[%s7714_s1 + $0x110] sm:$0xff]   ;;  %v5563_v46 = vld [vmem:[%s7714_s1 + $0x118] sm:$0xff]   ;;  %v5574_v51 = vld [vmem:[%s7715_s0 + $0xe4] ss:$36 sps:$4 sm:$0xff]  }
  0x11   :  { %v5568_v47 = vld [vmem:[%s7715_s0 + $0x90] ss:$36 sps:$4 sm:$0xff]   ;;  %v5569_v48 = vld [vmem:[%s7715_s0 + $0x98] ss:$36 sps:$4 sm:$0xff]   ;;  %v5571_v52 = vld [vmem:[%s7714_s1 + $0x128] sm:$0xff]  }
  0x12   :  { %2392 = vmatpush1.bf16.msra.mxu1 %v5524_v9  ;;  %v5572_v50 = vld [vmem:[%s7715_s0 + $0xdc] ss:$36 sps:$4 sm:$0xff]   ;;  %v5580_v55 = vld [vmem:[%s7715_s0 + $0x124] ss:$36 sps:$4 sm:$0xff]   ;;  %v5578_v56 = vld [vmem:[%s7714_s1 + $0x130] sm:$0xff]  }
  0x13   :  { %2681 = vmatpush1.bf16.msra.mxu0 %v6081_v10  ;;  %2393 = vmatprep.subr.bf16.mxu1 %v6004_v0  ;;  %v5576_v53 = vld [vmem:[%s7715_s0 + $0xd8] ss:$36 sps:$4 sm:$0xff]   ;;  %v5577_v54 = vld [vmem:[%s7715_s0 + $0xe0] ss:$36 sps:$4 sm:$0xff]   ;;  %v5582_v57 = vld [vmem:[%s7715_s0 + $0x12c] ss:$36 sps:$4 sm:$0xff]  }
  0x14   :  { %2682 = vmatprep.subr.bf16.mxu0 %v6004_v0  ;;  %v5579_v58 = vld [vmem:[%s7714_s1 + $0x138] sm:$0xff]   ;;  %v5584_v59 = vld [vmem:[%s7715_s0 + $0x120] ss:$36 sps:$4 sm:$0xff]   ;;  %v5585_v60 = vld [vmem:[%s7715_s0 + $0x128] ss:$36 sps:$4 sm:$0xff]  }
  0x15   :  { %v5586_v61 = vld [vmem:[%s7714_s1 + $0x140] sm:$0xff]   ;;  %v5588_v62 = vld [vmem:[%s7715_s0 + $0x16c] ss:$36 sps:$4 sm:$0xff]   ;;  %v5590_v63 = vld [vmem:[%s7715_s0 + $0x174] ss:$36 sps:$4 sm:$0xff]  }
  0x16   :  { %2394 = vmatpush1.bf16.msra.mxu1 %v5526_v11  ;;  %v5587_v1 = vld [vmem:[%s7714_s1 + $0x148] sm:$0xff]   ;;  %v5593_v3 = vld [vmem:[%s7715_s0 + $0x170] ss:$36 sps:$4 sm:$0xff]   ;;  %v5595_v7 = vld [vmem:[%s7714_s1 + $0x158] sm:$0xff]  }
  0x17   :  { %2683 = vmatpush1.bf16.msra.mxu0 %v6092_v12  ;;  %2395 = vmatprep.subr.bf16.mxu1 %v6004_v0  ;;  %v5594_v5 = vld [vmem:[%s7714_s1 + $0x150] sm:$0xff]   ;;  %v5601_v9 = vld [vmem:[%s7715_s0 + $0x1b8] ss:$36 sps:$4 sm:$0xff]  }
  0x18   :  { %2684 = vmatprep.subr.bf16.mxu0 %v6004_v0  ;;  %v5604_v11 = vld [vmem:[%s7715_s0 + $0x1fc] ss:$36 sps:$4 sm:$0xff]   ;;  %v5614_v21 = vld [vmem:[%s7715_s0 + $0x10] ss:$36 sps:$4 sm:$0xff]  }
  0x19   :  { %v5611_v19 = vld [vmem:[%s7714_s1 + $0x178] sm:$0xff]  }
  0x1a   :  { %2396 = vmatpush1.bf16.msra.mxu1 %v5528_v13  ;;  %v5603_v13 = vld [vmem:[%s7714_s1 + $0x168] sm:$0xff]  }
  0x1b   :  { %2685 = vmatpush1.bf16.msra.mxu0 %v6103_v14  ;;  %2397 = vmatprep.subr.bf16.mxu1 %v6004_v0 }
  0x1c   :  { %2686 = vmatprep.subr.bf16.mxu0 %v6004_v0 }
  0x1e   :  { %2398 = vmatpush1.bf16.msra.mxu1 %v5530_v15  ;;  %v5609_v15 = vld [vmem:[%s7715_s0 + $0x200] ss:$36 sps:$4 sm:$0xff]  }
  0x1f   :  { %2687 = vmatpush1.bf16.msra.mxu0 %v6114_v16  ;;  %2399 = vmatprep.subr.bf16.mxu1 %v6004_v0 }
  0x20   :  { %2688 = vmatprep.subr.bf16.mxu0 %v6004_v0 }
  0x22   :  { %2400 = vmatpush1.bf16.msra.mxu1 %v5532_v17  ;;  %v5610_v17 = vld [vmem:[%s7714_s1 + $0x170] sm:$0xff]  }
  0x23   :  { %2689 = vmatpush1.bf16.msra.mxu0 %v6125_v18  ;;  %2401 = vmatprep.subr.bf16.mxu1 %v6004_v0 }
  0x24   :  { %2690 = vmatprep.subr.bf16.mxu0 %v6004_v0 }
  0x26   :  { %2402 = vmatpush1.bf16.msra.mxu1 %v5534_v20  ;;  %v5617_v20 = vld [vmem:[%s7715_s0 + $0x240] ss:$36 sps:$4 sm:$0xff]  }
  0x27   :  { %2691 = vmatpush1.bf16.msra.mxu0 %v6142_v22  ;;  %2403 = vmatprep.subr.bf16.mxu1 %v6004_v0 }
  0x28   :  { %2692 = vmatprep.subr.bf16.mxu0 %v6004_v0 }
  0x2a   :  { %2404 = vmatpush1.bf16.msra.mxu1 %v5536_v23  ;;  %v5618_v23 = vld [vmem:[%s7714_s1 + $0x180] sm:$0xff]  }
  0x2b   :  { %2693 = vmatpush1.bf16.msra.mxu0 %v6153_v24  ;;  %2405 = vmatprep.subr.bf16.mxu1 %v6004_v0 }
  0x2c   :  { %2694 = vmatprep.subr.bf16.mxu0 %v6004_v0 }
  0x2e   :  { %2406 = vmatpush1.bf16.msra.mxu1 %v5538_v25  ;;  %v5623_v25 = vld [vmem:[%s7715_s0 + $0x288] ss:$36 sps:$4 sm:$0xff]  }
  0x2f   :  { %2695 = vmatpush1.bf16.msra.mxu0 %v6164_v26  ;;  %2407 = vmatprep.subr.bf16.mxu1 %v6004_v0 }
  0x30   :  { %2696 = vmatprep.subr.bf16.mxu0 %v6004_v0 }
  0x32   :  { %2408 = vmatpush1.bf16.msra.mxu1 %v5540_v27  ;;  %v5624_v27 = vld [vmem:[%s7715_s0 + $0x58] ss:$36 sps:$4 sm:$0xff]  }
  0x33   :  { %2697 = vmatpush1.bf16.msra.mxu0 %v6175_v28  ;;  %2409 = vmatprep.subr.bf16.mxu1 %v6004_v0 }
  0x34   :  { %2698 = vmatprep.subr.bf16.mxu0 %v6004_v0 }
  0x36   :  { %2410 = vmatpush1.bf16.msra.mxu1 %v5542_v29  ;;  %v5627_v29 = vld [vmem:[%s7715_s0 + $0xa4] ss:$36 sps:$4 sm:$0xff]  }
  0x37   :  { %2699 = vmatpush1.bf16.msra.mxu0 %v6186_v30  ;;  %2411 = vmatprep.subr.bf16.mxu1 %v6004_v0 }
  0x38   :  { %2700 = vmatprep.subr.bf16.mxu0 %v6004_v0 }
  0x3a   :  { %2412 = vmatpush1.bf16.msra.mxu1 %v5544_v31  ;;  %v5629_v31 = vld [vmem:[%s7715_s0 + $0x2d0] ss:$36 sps:$4 sm:$0xff]  }
  0x3b   :  { %2701 = vmatpush1.bf16.msra.mxu0 %v6197_v32  ;;  %2413 = vmatprep.subr.bf16.mxu1 %v6004_v0 }
  0x3c   :  { %2702 = vmatprep.subr.bf16.mxu0 %v6004_v0 }
  0x3e   :  { %2414 = vmatpush1.bf16.msra.mxu1 %v5546_v33  ;;  %v5630_v33 = vld [vmem:[%s7715_s0 + $0xa0] ss:$36 sps:$4 sm:$0xff]  }
  0x3f   :  { %2703 = vmatpush1.bf16.msra.mxu0 %v6208_v34  ;;  %5163 = vmatprep.subr.bf16.mxu1 %v6004_v0 }
  0x40   :  { %2961 = vmatprep.subr.bf16.mxu0 %v6004_v0 }
  0x41   :  { %2416 = vmatmul.mubr.bf16.vlgmr.msra.gmra.mrb[0].mxu1 %v5548_v35  ;;  %v5634_v35 = vld [vmem:[%s7715_s0 + $0xec] ss:$36 sps:$4 sm:$0xff]  }
  0x42   :  { %2705 = vmatmul.mubr.bf16.vlgmr.msra.gmra.mrb[0].mxu0 %v5551_v36  ;;  %5179 = vmatpush1.bf16.msra.mxu1 %v6038_v2  ;;  %v5592_v2 = vld [vmem:[%s7715_s0 + $0x168] ss:$36 sps:$4 sm:$0xff]   ;;  %v5670_v36 = vld [vmem:[%s7714_s1 + $0x1a0] sm:$0xff]  }
  0x43   :  { %2962 = vmatpush1.bf16.msra.mxu0 %v5554_v37  ;;  %2423 = vmatprep.mubr.bf16.mxu1 %v5556_v38  ;;  %v5683_v37 = vld [vmem:[%s7714_s1 + $0x1a8] sm:$0xff]   ;;  %v5636_v38 = vld [vmem:[%s7715_s0 + $0x318] ss:$36 sps:$4 sm:$0xff]  }
  0x44   :  { %2963 = vmatprep.subr.bf16.mxu0 %v6004_v0  ;;  %2712 = vmatprep.mubr.bf16.mxu0 %v5558_v39  ;;  %v5637_v39 = vld [vmem:[%s7715_s0 + $0xe8] ss:$36 sps:$4 sm:$0xff]  }
  0x45   :  { %5164 = vmatprep.subr.bf16.mxu1 %v6004_v0 }
  0x46   :  { %5180 = vmatpush1.bf16.msra.mxu1 %v6048_v4  ;;  %v5596_v4 = vld [vmem:[%s7715_s0 + $0x1b4] ss:$36 sps:$4 sm:$0xff]  }
  0x47   :  { %2964 = vmatpush1.bf16.msra.mxu0 %v5555_v40  ;;  %5165 = vmatprep.subr.bf16.mxu1 %v6004_v0  ;;  %v5638_v40 = vld [vmem:[%s7715_s0 + $0x364] ss:$36 sps:$4 sm:$0xff]  }
  0x48   :  { %2965 = vmatprep.subr.bf16.mxu0 %v6004_v0 }
  0x49   :  { %2424 = vmatmul.mubr.bf16.gmra.mrb[4].mxu1 %v5560_v41  ;;  %v5640_v41 = vld [vmem:[%s7715_s0 + $0x134] ss:$36 sps:$4 sm:$0xff]  }
  0x4a   :  { %2713 = vmatmul.mubr.bf16.gmra.mrb[4].mxu0 %v5561_v42  ;;  %2431 = vmatprep.mubr.bf16.mxu1 %v5564_v43  ;;  %v5696_v42 = vld [vmem:[%s7714_s1 + $0x1b0] sm:$0xff]   ;;  %v5709_v43 = vld [vmem:[%s7714_s1 + $0x1b8] sm:$0xff]  }
  0x4b   :  { %2966 = vmatpush1.bf16.msra.mxu0 %v5562_v44  ;;  %2720 = vmatprep.mubr.bf16.mxu0 %v5566_v45  ;;  %v5642_v44 = vld [vmem:[%s7715_s0 + $0x360] ss:$36 sps:$4 sm:$0xff]   ;;  %v5643_v45 = vld [vmem:[%s7715_s0 + $0x130] ss:$36 sps:$4 sm:$0xff]  }
  0x4c   :  { %2967 = vmatprep.subr.bf16.mxu0 %v6004_v0  ;;  %5181 = vmatpush1.bf16.msra.mxu1 %v6059_v6  ;;  %v5598_v6 = vld [vmem:[%s7715_s0 + $0x1bc] ss:$36 sps:$4 sm:$0xff]  }
  0x4d   :  { %5166 = vmatprep.subr.bf16.mxu1 %v6004_v0 }
  0x4f   :  { %2968 = vmatpush1.bf16.msra.mxu0 %v5563_v46  ;;  %v5645_v46 = vld [vmem:[%s7715_s0 + $0x3ac] ss:$36 sps:$4 sm:$0xff]  }
  0x50   :  { %2969 = vmatprep.subr.bf16.mxu0 %v6004_v0  ;;  %5182 = vmatpush1.bf16.msra.mxu1 %v6070_v8  ;;  %v5600_v8 = vld [vmem:[%s7715_s0 + $0x1b0] ss:$36 sps:$4 sm:$0xff]  }
  0x51   :  { %2432 = vmatmul.mubr.bf16.gmra.mrb[8].mxu1 %v5568_v47  ;;  %5167 = vmatprep.subr.bf16.mxu1 %v6004_v0  ;;  %v5647_v47 = vld [vmem:[%s7715_s0 + $0x17c] ss:$36 sps:$4 sm:$0xff]  }
  0x52   :  { %2721 = vmatmul.mubr.bf16.gmra.mrb[8].mxu0 %v5569_v48  ;;  %2439 = vmatprep.mubr.bf16.mxu1 %v5572_v50  ;;  %v5722_v48 = vld [vmem:[%s7714_s1 + $0x1c0] sm:$0xff]   ;;  %v5649_v50 = vld [vmem:[%s7715_s0 + $0x3a8] ss:$36 sps:$4 sm:$0xff]  }
  0x53   :  { %2970 = vmatpush1.bf16.msra.mxu0 %v5570_v49  ;;  %2728 = vmatprep.mubr.bf16.mxu0 %v5574_v51  ;;  %v5735_v49 = vld [vmem:[%s7714_s1 + $0x1c8] sm:$0xff]   ;;  %v5650_v51 = vld [vmem:[%s7715_s0 + $0x178] ss:$36 sps:$4 sm:$0xff]  }
  0x54   :  { %2971 = vmatprep.subr.bf16.mxu0 %v6004_v0  ;;  %5183 = vmatpush1.bf16.msra.mxu1 %v6081_v10  ;;  %v5602_v10 = vld [vmem:[%s7714_s1 + $0x160] sm:$0xff]  }
  0x55   :  { %5168 = vmatprep.subr.bf16.mxu1 %v6004_v0 }
  0x57   :  { %2972 = vmatpush1.bf16.msra.mxu0 %v5571_v52  ;;  %v5651_v52 = vld [vmem:[%s7715_s0 + $0x3f4] ss:$36 sps:$4 sm:$0xff]  }
  0x58   :  { %2973 = vmatprep.subr.bf16.mxu0 %v6004_v0  ;;  %5184 = vmatpush1.bf16.msra.mxu1 %v6092_v12  ;;  %v5606_v12 = vld [vmem:[%s7715_s0 + $0x204] ss:$36 sps:$4 sm:$0xff]  }
  0x59   :  { %2440 = vmatmul.mubr.bf16.gmra.mrb[12].mxu1 %v5576_v53  ;;  %5169 = vmatprep.subr.bf16.mxu1 %v6004_v0  ;;  %v5653_v53 = vld [vmem:[%s7715_s0 + $0x1c4] ss:$36 sps:$4 sm:$0xff]  }
  0x5a   :  { %2729 = vmatmul.mubr.bf16.gmra.mrb[12].mxu0 %v5577_v54  ;;  %2447 = vmatprep.mubr.bf16.mxu1 %v5580_v55  ;;  %v5748_v54 = vld [vmem:[%s7714_s1 + $0x1d0] sm:$0xff]  }
  0x5b   :  { %2974 = vmatpush1.bf16.msra.mxu0 %v5578_v56  ;;  %2736 = vmatprep.mubr.bf16.mxu0 %v5582_v57  ;;  %v5655_v55 = vld [vmem:[%s7715_s0 + $0x3f0] ss:$36 sps:$4 sm:$0xff]   ;;  %v5656_v56 = vld [vmem:[%s7715_s0 + $0x1c0] ss:$36 sps:$4 sm:$0xff]  }
  0x5c   :  { %2975 = vmatprep.subr.bf16.mxu0 %v6004_v0  ;;  %5185 = vmatpush1.bf16.msra.mxu1 %v6103_v14  ;;  %v5608_v14 = vld [vmem:[%s7715_s0 + $0x1f8] ss:$36 sps:$4 sm:$0xff]  }
  0x5d   :  { %5170 = vmatprep.subr.bf16.mxu1 %v6004_v0  ;;  %v5658_v57 = vld [vmem:[%s7715_s0 + $0x43c] ss:$36 sps:$4 sm:$0xff]  }
  0x5f   :  { %2976 = vmatpush1.bf16.msra.mxu0 %v5579_v58  ;;  %v5660_v58 = vld [vmem:[%s7715_s0 + $0x20c] ss:$36 sps:$4 sm:$0xff]  }
  0x60   :  { %2977 = vmatprep.subr.bf16.mxu0 %v6004_v0  ;;  %5186 = vmatpush1.bf16.msra.mxu1 %v6114_v16  ;;  %v5612_v16 = vld [vmem:[%s7715_s0 + $0x244] ss:$36 sps:$4 sm:$0xff]  }
  0x61   :  { %2448 = vmatmul.mubr.bf16.gmra.mrb[16].mxu1 %v5584_v59  ;;  %5171 = vmatprep.subr.bf16.mxu1 %v6004_v0  ;;  %v5662_v59 = vld [vmem:[%s7715_s0 + $0x438] ss:$36 sps:$4 sm:$0xff]  }
  0x62   :  { %2737 = vmatmul.mubr.bf16.gmra.mrb[16].mxu0 %v5585_v60  ;;  %2455 = vmatprep.mubr.bf16.mxu1 %v5588_v62  ;;  %v5663_v60 = vld [vmem:[%s7715_s0 + $0x208] ss:$36 sps:$4 sm:$0xff]   ;;  %v5761_v62 = vld [vmem:[%s7714_s1 + $0x1d8] sm:$0xff]  }
  0x63   :  { %2978 = vmatpush1.bf16.msra.mxu0 %v5586_v61  ;;  %2744 = vmatprep.mubr.bf16.mxu0 %v5590_v63  ;;  %v5664_v61 = vld [vmem:[%s7715_s0 + $0x484] ss:$36 sps:$4 sm:$0xff]   ;;  %v5666_v63 = vld [vmem:[%s7715_s0 + $0x254] ss:$36 sps:$4 sm:$0xff]  }
  0x64   :  { %2979 = vmatprep.subr.bf16.mxu0 %v6004_v0  ;;  %5187 = vmatpush1.bf16.msra.mxu1 %v6125_v18  ;;  %v5616_v18 = vld [vmem:[%s7715_s0 + $0x14] ss:$36 sps:$4 sm:$0xff]  }
  0x65   :  { %5172 = vmatprep.subr.bf16.mxu1 %v6004_v0 }
  0x67   :  { %2980 = vmatpush1.bf16.msra.mxu0 %v5587_v1  ;;  %v5668_v1 = vld [vmem:[%s7715_s0 + $0x480] ss:$36 sps:$4 sm:$0xff]  }
  0x68   :  { %2981 = vmatprep.subr.bf16.mxu0 %v6004_v0  ;;  %5188 = vmatpush1.bf16.msra.mxu1 %v6142_v22  ;;  %v5619_v22 = vld [vmem:[%s7715_s0 + $0x28c] ss:$36 sps:$4 sm:$0xff]  }
  0x69   :  { %2456 = vmatmul.mubr.bf16.gmra.mrb[20].mxu1 %v5592_v2  ;;  %5173 = vmatprep.subr.bf16.mxu1 %v6004_v0  ;;  %v5669_v2 = vld [vmem:[%s7715_s0 + $0x250] ss:$36 sps:$4 sm:$0xff]  }
  0x6a   :  { %2745 = vmatmul.mubr.bf16.gmra.mrb[20].mxu0 %v5593_v3  ;;  %2463 = vmatprep.mubr.bf16.mxu1 %v5596_v4  ;;  %v5671_v3 = vld [vmem:[%s7715_s0 + $0x4cc] ss:$36 sps:$4 sm:$0xff]   ;;  %v5673_v4 = vld [vmem:[%s7715_s0 + $0x29c] ss:$36 sps:$4 sm:$0xff]  }
  0x6b   :  { %2982 = vmatpush1.bf16.msra.mxu0 %v5594_v5  ;;  %2752 = vmatprep.mubr.bf16.mxu0 %v5598_v6  ;;  %v6564_v5 = vld [vmem:[%s7714_s1 + $0x200] sm:$0xff]   ;;  %v5675_v6 = vld [vmem:[%s7715_s0 + $0x4c8] ss:$36 sps:$4 sm:$0xff]  }
  0x6c   :  { %2983 = vmatprep.subr.bf16.mxu0 %v6004_v0  ;;  %5189 = vmatpush1.bf16.msra.mxu1 %v6153_v24  ;;  %v5621_v24 = vld [vmem:[%s7715_s0 + $0x5c] ss:$36 sps:$4 sm:$0xff]  }
  0x6d   :  { %5174 = vmatprep.subr.bf16.mxu1 %v6004_v0 }
  0x6f   :  { %2984 = vmatpush1.bf16.msra.mxu0 %v5595_v7  ;;  %v5676_v7 = vld [vmem:[%s7715_s0 + $0x298] ss:$36 sps:$4 sm:$0xff]  }
  0x70   :  { %2985 = vmatprep.subr.bf16.mxu0 %v6004_v0  ;;  %5190 = vmatpush1.bf16.msra.mxu1 %v6164_v26  ;;  %v5631_v26 = vld [vmem:[%s7714_s1 + $0x188] sm:$0xff]  }
  0x71   :  { %2464 = vmatmul.mubr.bf16.gmra.mrb[24].mxu1 %v5600_v8  ;;  %5175 = vmatprep.subr.bf16.mxu1 %v6004_v0  ;;  %v5677_v8 = vld [vmem:[%s7715_s0 + $0x514] ss:$36 sps:$4 sm:$0xff]  }
  0x72   :  { %2753 = vmatmul.mubr.bf16.gmra.mrb[24].mxu0 %v5601_v9  ;;  %2471 = vmatprep.mubr.bf16.mxu1 %v5604_v11  ;;  %v5775_v9 = vld [vmem:[%s7714_s1 + $0x1e0] sm:$0xff]   ;;  %v5681_v11 = vld [vmem:[%s7715_s0 + $0x510] ss:$36 sps:$4 sm:$0xff]  }
  0x73   :  { %2986 = vmatpush1.bf16.msra.mxu0 %v5602_v10  ;;  %2760 = vmatprep.mubr.bf16.mxu0 %v5606_v12  ;;  %v5679_v10 = vld [vmem:[%s7715_s0 + $0x2e4] ss:$36 sps:$4 sm:$0xff]  }
  0x74   :  { %2987 = vmatprep.subr.bf16.mxu0 %v6004_v0  ;;  %5191 = vmatpush1.bf16.msra.mxu1 %v6175_v28  ;;  %v5625_v28 = vld [vmem:[%s7715_s0 + $0x2d4] ss:$36 sps:$4 sm:$0xff]   ;;  %v5682_v12 = vld [vmem:[%s7715_s0 + $0x2e0] ss:$36 sps:$4 sm:$0xff]  }
  0x75   :  { %5176 = vmatprep.subr.bf16.mxu1 %v6004_v0 }
  0x77   :  { %2988 = vmatpush1.bf16.msra.mxu0 %v5603_v13  ;;  %v5684_v13 = vld [vmem:[%s7715_s0 + $0x55c] ss:$36 sps:$4 sm:$0xff]  }
  0x78   :  { %2989 = vmatprep.subr.bf16.mxu0 %v6004_v0  ;;  %5192 = vmatpush1.bf16.msra.mxu1 %v6186_v30  ;;  %v5644_v30 = vld [vmem:[%s7714_s1 + $0x190] sm:$0xff]  }
  0x79   :  { %2472 = vmatmul.mubr.bf16.gmra.mrb[28].mxu1 %v5608_v14  ;;  %5177 = vmatprep.subr.bf16.mxu1 %v6004_v0  ;;  %v5686_v14 = vld [vmem:[%s7715_s0 + $0x32c] ss:$36 sps:$4 sm:$0xff]  }
  0x7a   :  { %2761 = vmatmul.mubr.bf16.gmra.mrb[28].mxu0 %v5609_v15  ;;  %2479 = vmatprep.mubr.bf16.mxu1 %v5612_v16  ;;  %v5788_v15 = vld [vmem:[%s7714_s1 + $0x1e8] sm:$0xff]   ;;  %v5688_v16 = vld [vmem:[%s7715_s0 + $0x558] ss:$36 sps:$4 sm:$0xff]  }
  0x7b   :  { %2990 = vmatpush1.bf16.msra.mxu0 %v5610_v17  ;;  %2993 = vmatprep.mubr.bf16.mxu0 %v5616_v18  ;;  %v5689_v17 = vld [vmem:[%s7715_s0 + $0x328] ss:$36 sps:$4 sm:$0xff]  }
  0x7c   :  { %2991 = vmatprep.subr.bf16.mxu0 %v6004_v0  ;;  %5193 = vmatpush1.bf16.msra.mxu1 %v6197_v32  ;;  %v5657_v32 = vld [vmem:[%s7714_s1 + $0x198] sm:$0xff]   ;;  %v5690_v18 = vld [vmem:[%s7715_s0 + $0x5a4] ss:$36 sps:$4 sm:$0xff]  }
  0x7d   :  { %5178 = vmatprep.subr.bf16.mxu1 %v6004_v0 }
  0x7f   :  { %2992 = vmatpush1.bf16.msra.mxu0 %v5611_v19  ;;  %v5692_v19 = vld [vmem:[%s7715_s0 + $0x374] ss:$36 sps:$4 sm:$0xff]  }
  0x80   :  { %3250 = vmatprep.subr.bf16.mxu0 %v6004_v0  ;;  %5194 = vmatpush1.bf16.msra.mxu1 %v6208_v34  ;;  %v5632_v34 = vld [vmem:[%s7715_s0 + $0x31c] ss:$36 sps:$4 sm:$0xff]  }
  0x81   :  { %2480 = vmatmul.mubr.bf16.gmra.mrb[32].mxu1 %v5617_v20  ;;  %5083 = vmatprep.subr.bf16.mxu1 %v6564_v5  ;;  %v5694_v20 = vld [vmem:[%s7715_s0 + $0x5a0] ss:$36 sps:$4 sm:$0xff]  }
  0x82   :  { %2994 = vmatmul.mubr.bf16.vlgmr.msra.gmra.mrb[0].mxu0 %v5614_v21  ;;  %2487 = vmatprep.mubr.bf16.mxu1 %v5619_v22  ;;  %v5695_v21 = vld [vmem:[%s7715_s0 + $0x370] ss:$36 sps:$4 sm:$0xff]  }
  0x83   :  { %3251 = vmatpush1.bf16.msra.mxu0 %v5618_v23  ;;  %3001 = vmatprep.mubr.bf16.mxu0 %v5621_v24  ;;  %v5697_v22 = vld [vmem:[%s7715_s0 + $0x5ec] ss:$36 sps:$4 sm:$0xff]   ;;  %v5699_v23 = vld [vmem:[%s7715_s0 + $0x3bc] ss:$36 sps:$4 sm:$0xff]  }
  0x84   :  { %3252 = vmatprep.subr.bf16.mxu0 %v6004_v0  ;;  %v5802_v24 = vld [vmem:[%s7714_s1 + $0x1f0] sm:$0xff]  }
  0x87   :  { %3253 = vmatpush1.bf16.msra.mxu0 %v5631_v26  ;;  %v5702_v26 = vld [vmem:[%s7715_s0 + $0x3b8] ss:$36 sps:$4 sm:$0xff]  }
  0x88   :  { %3254 = vmatprep.subr.bf16.mxu0 %v6004_v0 }
  0x89   :  { %2488 = vmatmul.mubr.bf16.gmra.mrb[36].mxu1 %v5623_v25  ;;  %v5701_v25 = vld [vmem:[%s7715_s0 + $0x5e8] ss:$36 sps:$4 sm:$0xff]  }
  0x8a   :  { %3002 = vmatmul.mubr.bf16.gmra.mrb[4].mxu0 %v5624_v27  ;;  %2495 = vmatprep.mubr.bf16.mxu1 %v5625_v28  ;;  %v5703_v27 = vld [vmem:[%s7715_s0 + $0x634] ss:$36 sps:$4 sm:$0xff]   ;;  %v5705_v28 = vld [vmem:[%s7715_s0 + $0x404] ss:$36 sps:$4 sm:$0xff]  }
  0x8b   :  { %3009 = vmatprep.mubr.bf16.mxu0 %v5627_v29  ;;  %3255 = vmatpush1.bf16.msra.mxu0 %v5644_v30  ;;  %v5708_v29 = vld [vmem:[%s7715_s0 + $0x400] ss:$36 sps:$4 sm:$0xff]  }
  0x8c   :  { %3256 = vmatprep.subr.bf16.mxu0 %v6004_v0  ;;  %v5710_v30 = vld [vmem:[%s7715_s0 + $0x67c] ss:$36 sps:$4 sm:$0xff]  }
  0x8f   :  { %3257 = vmatpush1.bf16.msra.mxu0 %v5657_v32  ;;  %v5816_v32 = vld [vmem:[%s7714_s1 + $0x1f8] sm:$0xff]  }
  0x90   :  { %3258 = vmatprep.subr.bf16.mxu0 %v6004_v0 }
  0x91   :  { %2496 = vmatmul.mubr.bf16.gmra.mrb[40].mxu1 %v5629_v31  ;;  %v5712_v31 = vld [vmem:[%s7715_s0 + $0x44c] ss:$36 sps:$4 sm:$0xff]  }
  0x92   :  { %3010 = vmatmul.mubr.bf16.gmra.mrb[8].mxu0 %v5630_v33  ;;  %2503 = vmatprep.mubr.bf16.mxu1 %v5632_v34  ;;  %v5714_v33 = vld [vmem:[%s7715_s0 + $0x678] ss:$36 sps:$4 sm:$0xff]   ;;  %v5715_v34 = vld [vmem:[%s7715_s0 + $0x448] ss:$36 sps:$4 sm:$0xff]  }
  0x93   :  { %3017 = vmatprep.mubr.bf16.mxu0 %v5634_v35  ;;  %3259 = vmatpush1.bf16.msra.mxu0 %v5670_v36  ;;  %v5716_v35 = vld [vmem:[%s7715_s0 + $0x6c4] ss:$36 sps:$4 sm:$0xff]   ;;  %v5718_v36 = vld [vmem:[%s7715_s0 + $0x494] ss:$36 sps:$4 sm:$0xff]  }
  0x94   :  { %3260 = vmatprep.subr.bf16.mxu0 %v6004_v0 }
  0x97   :  { %3261 = vmatpush1.bf16.msra.mxu0 %v5683_v37  ;;  %v5720_v37 = vld [vmem:[%s7715_s0 + $0x6c0] ss:$36 sps:$4 sm:$0xff]  }
  0x98   :  { %3262 = vmatprep.subr.bf16.mxu0 %v6004_v0 }
  0x99   :  { %2504 = vmatmul.mubr.bf16.gmra.mrb[44].mxu1 %v5636_v38  ;;  %v5721_v38 = vld [vmem:[%s7715_s0 + $0x490] ss:$36 sps:$4 sm:$0xff]  }
  0x9a   :  { %3018 = vmatmul.mubr.bf16.gmra.mrb[12].mxu0 %v5637_v39  ;;  %2511 = vmatprep.mubr.bf16.mxu1 %v5638_v40  ;;  %v5723_v39 = vld [vmem:[%s7715_s0 + $0x70c] ss:$36 sps:$4 sm:$0xff]   ;;  %v5725_v40 = vld [vmem:[%s7715_s0 + $0x4dc] ss:$36 sps:$4 sm:$0xff]  }
  0x9b   :  { %3025 = vmatprep.mubr.bf16.mxu0 %v5640_v41  ;;  %3263 = vmatpush1.bf16.msra.mxu0 %v5696_v42  ;;  %v5727_v41 = vld [vmem:[%s7715_s0 + $0x708] ss:$36 sps:$4 sm:$0xff]   ;;  %v5728_v42 = vld [vmem:[%s7715_s0 + $0x4d8] ss:$36 sps:$4 sm:$0xff]  }
  0x9c   :  { %3264 = vmatprep.subr.bf16.mxu0 %v6004_v0 }
  0x9f   :  { %3265 = vmatpush1.bf16.msra.mxu0 %v5709_v43  ;;  %v5729_v43 = vld [vmem:[%s7715_s0 + $0x754] ss:$36 sps:$4 sm:$0xff]  }
  0xa0   :  { %3266 = vmatprep.subr.bf16.mxu0 %v6004_v0 }
  0xa1   :  { %2512 = vmatmul.mubr.bf16.gmra.mrb[48].mxu1 %v5642_v44  ;;  %v5731_v44 = vld [vmem:[%s7715_s0 + $0x524] ss:$36 sps:$4 sm:$0xff]  }
  0xa2   :  { %3026 = vmatmul.mubr.bf16.gmra.mrb[16].mxu0 %v5643_v45  ;;  %2519 = vmatprep.mubr.bf16.mxu1 %v5645_v46  ;;  %v5733_v45 = vld [vmem:[%s7715_s0 + $0x750] ss:$36 sps:$4 sm:$0xff]   ;;  %v5734_v46 = vld [vmem:[%s7715_s0 + $0x520] ss:$36 sps:$4 sm:$0xff]  }
  0xa3   :  { %3033 = vmatprep.mubr.bf16.mxu0 %v5647_v47  ;;  %3267 = vmatpush1.bf16.msra.mxu0 %v5722_v48  ;;  %v5736_v47 = vld [vmem:[%s7715_s0 + $0x79c] ss:$36 sps:$4 sm:$0xff]   ;;  %v5738_v48 = vld [vmem:[%s7715_s0 + $0x56c] ss:$36 sps:$4 sm:$0xff]  }
  0xa4   :  { %3268 = vmatprep.subr.bf16.mxu0 %v6004_v0 }
  0xa7   :  { %3269 = vmatpush1.bf16.msra.mxu0 %v5735_v49 }
  0xa8   :  { %3270 = vmatprep.subr.bf16.mxu0 %v6004_v0 }
  0xa9   :  { %2520 = vmatmul.mubr.bf16.gmra.mrb[52].mxu1 %v5649_v50 }
  0xaa   :  { %3034 = vmatmul.mubr.bf16.gmra.mrb[20].mxu0 %v5650_v51  ;;  %2527 = vmatprep.mubr.bf16.mxu1 %v5651_v52  ;;  %v5740_v51 = vld [vmem:[%s7715_s0 + $0x798] ss:$36 sps:$4 sm:$0xff]  }
  0xab   :  { %3041 = vmatprep.mubr.bf16.mxu0 %v5653_v53  ;;  %3271 = vmatpush1.bf16.msra.mxu0 %v5748_v54  ;;  %v5741_v53 = vld [vmem:[%s7715_s0 + $0x568] ss:$36 sps:$4 sm:$0xff]  }
  0xac   :  { %3272 = vmatprep.subr.bf16.mxu0 %v6004_v0  ;;  %v5742_v54 = vld [vmem:[%s7715_s0 + $0x7e4] ss:$36 sps:$4 sm:$0xff]  }
  0xaf   :  { %3273 = vmatpush1.bf16.msra.mxu0 %v5761_v62  ;;  %v5749_v62 = vld [vmem:[%s7715_s0 + $0x82c] ss:$36 sps:$4 sm:$0xff]  }
  0xb0   :  { %3274 = vmatprep.subr.bf16.mxu0 %v6004_v0 }
  0xb1   :  { %2528 = vmatmul.mubr.bf16.gmra.mrb[56].mxu1 %v5655_v55 }
  0xb2   :  { %3042 = vmatmul.mubr.bf16.gmra.mrb[24].mxu0 %v5656_v56  ;;  %2535 = vmatprep.mubr.bf16.mxu1 %v5658_v57  ;;  %v5744_v56 = vld [vmem:[%s7715_s0 + $0x5b4] ss:$36 sps:$4 sm:$0xff]  }
  0xb3   :  { %3049 = vmatprep.mubr.bf16.mxu0 %v5660_v58  ;;  %3275 = vmatpush1.bf16.msra.mxu0 %v5775_v9 }
  0xb4   :  { %3276 = vmatprep.subr.bf16.mxu0 %v6004_v0 }
  0xb7   :  { %3277 = vmatpush1.bf16.msra.mxu0 %v5788_v15  ;;  %v5760_v15 = vld [vmem:[%s7715_s0 + $0x640] ss:$36 sps:$4 sm:$0xff]  }
  0xb8   :  { %3278 = vmatprep.subr.bf16.mxu0 %v6004_v0 }
  0xb9   :  { %2536 = vmatmul.mubr.bf16.gmra.mrb[60].mxu1 %v5662_v59  ;;  %v5746_v59 = vld [vmem:[%s7715_s0 + $0x7e0] ss:$36 sps:$4 sm:$0xff]  }
  0xba   :  { %3050 = vmatmul.mubr.bf16.gmra.mrb[28].mxu0 %v5663_v60  ;;  %2543 = vmatprep.mubr.bf16.mxu1 %v5664_v61  ;;  %v5747_v61 = vld [vmem:[%s7715_s0 + $0x5b0] ss:$36 sps:$4 sm:$0xff]  }
  0xbb   :  { %3057 = vmatprep.mubr.bf16.mxu0 %v5666_v63  ;;  %3279 = vmatpush1.bf16.msra.mxu0 %v5802_v24  ;;  %v5770_v24 = vld [vmem:[%s7715_s0 + $0x24c] ss:$36 sps:$4 sm:$0xff]  }
  0xbc   :  { %3280 = vmatprep.subr.bf16.mxu0 %v6004_v0  ;;  %v5707_v0 = vld [vmem:[%s7715_s0 + $0x630] ss:$36 sps:$4 sm:$0xff]  }
  0xbf   :  { %3281 = vmatpush1.bf16.msra.mxu0 %v5816_v32  ;;  %v5776_v32 = vld [vmem:[%s7715_s0 + $0x294] ss:$36 sps:$4 sm:$0xff]  }
  0xc1   :  { %2544 = vmatmul.mubr.bf16.gmra.mrb[64].mxu1 %v5668_v1  ;;  %v5751_v1 = vld [vmem:[%s7715_s0 + $0x5fc] ss:$36 sps:$4 sm:$0xff]  }
  0xc2   :  { %3058 = vmatmul.mubr.bf16.gmra.mrb[32].mxu0 %v5669_v2  ;;  %2551 = vmatprep.mubr.bf16.mxu1 %v5671_v3 }
  0xc3   :  { %3065 = vmatprep.mubr.bf16.mxu0 %v5673_v4  ;;  %v5753_v4 = vld [vmem:[%s7715_s0 + $0x828] ss:$36 sps:$4 sm:$0xff]  }
  0xc9   :  { %2552 = vmatmul.mubr.bf16.gmra.mrb[68].mxu1 %v5675_v6 }
  0xca   :  { %3066 = vmatmul.mubr.bf16.gmra.mrb[36].mxu0 %v5676_v7  ;;  %2559 = vmatprep.mubr.bf16.mxu1 %v5677_v8  ;;  %v5754_v7 = vld [vmem:[%s7715_s0 + $0x5f8] ss:$36 sps:$4 sm:$0xff]  }
  0xcb   :  { %3073 = vmatprep.mubr.bf16.mxu0 %v5679_v10  ;;  %v5755_v8 = vld [vmem:[%s7715_s0 + $0x874] ss:$36 sps:$4 sm:$0xff]   ;;  %v5757_v10 = vld [vmem:[%s7715_s0 + $0x644] ss:$36 sps:$4 sm:$0xff]  }
  0xd1   :  { %2560 = vmatmul.mubr.bf16.gmra.mrb[72].mxu1 %v5681_v11 }
  0xd2   :  { %3074 = vmatmul.mubr.bf16.gmra.mrb[40].mxu0 %v5682_v12  ;;  %2567 = vmatprep.mubr.bf16.mxu1 %v5684_v13  ;;  %v5759_v13 = vld [vmem:[%s7715_s0 + $0x870] ss:$36 sps:$4 sm:$0xff]  }
  0xd3   :  { %3081 = vmatprep.mubr.bf16.mxu0 %v5686_v14 }
  0xd9   :  { %2568 = vmatmul.mubr.bf16.gmra.mrb[76].mxu1 %v5688_v16  ;;  %v5762_v16 = vld [vmem:[%s7715_s0 + $0x8bc] ss:$36 sps:$4 sm:$0xff]  }
  0xda   :  { %3082 = vmatmul.mubr.bf16.gmra.mrb[44].mxu0 %v5689_v17  ;;  %2575 = vmatprep.mubr.bf16.mxu1 %v5690_v18  ;;  %v5764_v18 = vld [vmem:[%s7715_s0 + $0x68c] ss:$36 sps:$4 sm:$0xff]  }
  0xdb   :  { %3089 = vmatprep.mubr.bf16.mxu0 %v5692_v19 }
  0xe1   :  { %2576 = vmatmul.mubr.bf16.gmra.mrb[80].mxu1 %v5694_v20 }
  0xe2   :  { %3090 = vmatmul.mubr.bf16.gmra.mrb[48].mxu0 %v5695_v21  ;;  %2583 = vmatprep.mubr.bf16.mxu1 %v5697_v22  ;;  %v5766_v21 = vld [vmem:[%s7715_s0 + $0x8b8] ss:$36 sps:$4 sm:$0xff]  }
  0xe3   :  { %3097 = vmatprep.mubr.bf16.mxu0 %v5699_v23  ;;  %v5767_v23 = vld [vmem:[%s7715_s0 + $0x688] ss:$36 sps:$4 sm:$0xff]  }
  0xe9   :  { %2584 = vmatmul.mubr.bf16.gmra.mrb[84].mxu1 %v5701_v25 }
  0xea   :  { %3098 = vmatmul.mubr.bf16.gmra.mrb[52].mxu0 %v5702_v26  ;;  %2591 = vmatprep.mubr.bf16.mxu1 %v5703_v27  ;;  %v5771_v26 = vld [vmem:[%s7715_s0 + $0x6d4] ss:$36 sps:$4 sm:$0xff]  }
  0xeb   :  { %3105 = vmatprep.mubr.bf16.mxu0 %v5705_v28 }
  0xf1   :  { %2592 = vmatmul.mubr.bf16.gmra.mrb[88].mxu1 %v5707_v0  ;;  %v5768_v0 = vld [vmem:[%s7715_s0 + $0x248] ss:$36 sps:$4 sm:$0xff]  }
  0xf2   :  { %3106 = vmatmul.mubr.bf16.gmra.mrb[56].mxu0 %v5708_v29  ;;  %2599 = vmatprep.mubr.bf16.mxu1 %v5710_v30  ;;  %v5773_v30 = vld [vmem:[%s7715_s0 + $0x6d0] ss:$36 sps:$4 sm:$0xff]  }
  0xf3   :  { %3113 = vmatprep.mubr.bf16.mxu0 %v5712_v31 }
  0xf9   :  { %2600 = vmatmul.mubr.bf16.gmra.mrb[92].mxu1 %v5714_v33  ;;  %v5778_v33 = vld [vmem:[%s7715_s0 + $0x71c] ss:$36 sps:$4 sm:$0xff]  }
  0xfa   :  { %3114 = vmatmul.mubr.bf16.gmra.mrb[60].mxu0 %v5715_v34  ;;  %2607 = vmatprep.mubr.bf16.mxu1 %v5716_v35  ;;  %v5795_v34 = vld [vmem:[%s7714_s1 + $0x208] sm:$0xff]   ;;  %v5815_v35 = vld [vmem:[%s7714_s1 + $0x210] sm:$0xff]  }
  0xfb   :  { %3121 = vmatprep.mubr.bf16.mxu0 %v5718_v36 }
 0x101   :  { %2608 = vmatmul.mubr.bf16.gmra.mrb[96].mxu1 %v5720_v37 }
 0x102   :  { %3122 = vmatmul.mubr.bf16.gmra.mrb[64].mxu0 %v5721_v38  ;;  %2615 = vmatprep.mubr.bf16.mxu1 %v5723_v39  ;;  %v5780_v38 = vld [vmem:[%s7715_s0 + $0x290] ss:$36 sps:$4 sm:$0xff]  }
 0x103   :  { %3129 = vmatprep.mubr.bf16.mxu0 %v5725_v40  ;;  %v5782_v40 = vld [vmem:[%s7715_s0 + $0x2dc] ss:$36 sps:$4 sm:$0xff]  }
 0x109   :  { %2616 = vmatmul.mubr.bf16.gmra.mrb[100].mxu1 %v5727_v41 }
 0x10a   :  { %3130 = vmatmul.mubr.bf16.gmra.mrb[68].mxu0 %v5728_v42  ;;  %2623 = vmatprep.mubr.bf16.mxu1 %v5729_v43  ;;  %v5784_v42 = vld [vmem:[%s7715_s0 + $0x764] ss:$36 sps:$4 sm:$0xff]   ;;  %v5835_v43 = vld [vmem:[%s7714_s1 + $0x218] sm:$0xff]  }
 0x10b   :  { %3137 = vmatprep.mubr.bf16.mxu0 %v5731_v44 }
 0x111   :  { %2624 = vmatmul.mubr.bf16.gmra.mrb[104].mxu1 %v5733_v45  ;;  %v5854_v45 = vld [vmem:[%s7714_s1 + $0x220] sm:$0xff]  }
 0x112   :  { %3138 = vmatmul.mubr.bf16.gmra.mrb[72].mxu0 %v5734_v46  ;;  %2631 = vmatprep.mubr.bf16.mxu1 %v5736_v47  ;;  %v5786_v47 = vld [vmem:[%s7715_s0 + $0x2d8] ss:$36 sps:$4 sm:$0xff]  }
 0x113   :  { %3145 = vmatprep.mubr.bf16.mxu0 %v5738_v48 }
 0x114   :  { %v6702_v49 = vpop.f32.mrb[0].mxu1 }
 0x115   :  { %v2419_v50 = vpop.f32.mrb[1].mxu1 }
 0x116   :  { %v6707_v52 = vpop.f32.mrb[2].mxu1  ;;  %v5787_v50 = vld [vmem:[%s7715_s0 + $0x760] ss:$36 sps:$4 sm:$0xff]  }
 0x117   :  { %v2422_v55 = vpop.f32.mrb[3].mxu1 }
 0x118   :  { %v5873_v55 = vld [vmem:[%s7714_s1 + $0x228] sm:$0xff]  }
 0x119   :  { %2632 = vmatmul.mubr.bf16.gmra.mrb[108].mxu1 %v5740_v51  ;;  %v5789_v51 = vld [vmem:[%s7715_s0 + $0x324] ss:$36 sps:$4 sm:$0xff]  }
 0x11a   :  { %3146 = vmatmul.mubr.bf16.gmra.mrb[76].mxu0 %v5741_v53  ;;  %2639 = vmatprep.mubr.bf16.mxu1 %v5742_v54  ;;  %v5791_v54 = vld [vmem:[%s7715_s0 + $0x7ac] ss:$36 sps:$4 sm:$0xff]  }
 0x11b   :  { %3153 = vmatprep.mubr.bf16.mxu0 %v5744_v56  ;;  %v5892_v56 = vld [vmem:[%s7714_s1 + $0x230] sm:$0xff]  }
 0x11c   :  { %v6718_v57 = vpop.f32.mrb[4].mxu1 }
 0x11d   :  { %v2427_v58 = vpop.f32.mrb[5].mxu1 }
 0x11e   :  { %v6723_v60 = vpop.f32.mrb[6].mxu1  ;;  %v5793_v58 = vld [vmem:[%s7715_s0 + $0x320] ss:$36 sps:$4 sm:$0xff]  }
 0x11f   :  { %v2430_v63 = vpop.f32.mrb[7].mxu1 }
 0x120   :  { %v5800_v63 = vld [vmem:[%s7715_s0 + $0x368] ss:$36 sps:$4 sm:$0xff]  }
 0x121   :  { %2640 = vmatmul.mubr.bf16.gmra.mrb[112].mxu1 %v5746_v59  ;;  %v5794_v59 = vld [vmem:[%s7715_s0 + $0x7a8] ss:$36 sps:$4 sm:$0xff]  }
 0x122   :  { %3154 = vmatmul.mubr.bf16.gmra.mrb[80].mxu0 %v5747_v61  ;;  %2647 = vmatprep.mubr.bf16.mxu1 %v5749_v62  ;;  %v5796_v61 = vld [vmem:[%s7715_s0 + $0x36c] ss:$36 sps:$4 sm:$0xff]   ;;  %v5798_v62 = vld [vmem:[%s7715_s0 + $0x7f4] ss:$36 sps:$4 sm:$0xff]  }
 0x123   :  { %3161 = vmatprep.mubr.bf16.mxu0 %v5751_v1  ;;  %v5801_v1 = vld [vmem:[%s7715_s0 + $0x7f0] ss:$36 sps:$4 sm:$0xff]  }
 0x124   :  { %v6734_v2 = vpop.f32.mrb[8].mxu1 }
 0x125   :  { %v2435_v3 = vpop.f32.mrb[9].mxu1 }
 0x126   :  { %v6739_v6 = vpop.f32.mrb[10].mxu1  ;;  %v5803_v3 = vld [vmem:[%s7715_s0 + $0x3b4] ss:$36 sps:$4 sm:$0xff]  }
 0x127   :  { %v2438_v9 = vpop.f32.mrb[11].mxu1 }
 0x128   :  { %v5809_v9 = vld [vmem:[%s7715_s0 + $0x3fc] ss:$36 sps:$4 sm:$0xff]  }
 0x129   :  { %2648 = vmatmul.mubr.bf16.gmra.mrb[116].mxu1 %v5753_v4  ;;  %v5805_v4 = vld [vmem:[%s7715_s0 + $0x83c] ss:$36 sps:$4 sm:$0xff]  }
 0x12a   :  { %3162 = vmatmul.mubr.bf16.gmra.mrb[84].mxu0 %v5754_v7  ;;  %2655 = vmatprep.mubr.bf16.mxu1 %v5755_v8  ;;  %v5807_v7 = vld [vmem:[%s7715_s0 + $0x3b0] ss:$36 sps:$4 sm:$0xff]   ;;  %v5808_v8 = vld [vmem:[%s7715_s0 + $0x838] ss:$36 sps:$4 sm:$0xff]  }
 0x12b   :  { %3169 = vmatprep.mubr.bf16.mxu0 %v5757_v10  ;;  %v5811_v10 = vld [vmem:[%s7715_s0 + $0x884] ss:$36 sps:$4 sm:$0xff]  }
 0x12c   :  { %v6750_v11 = vpop.f32.mrb[12].mxu1 }
 0x12d   :  { %v2443_v12 = vpop.f32.mrb[13].mxu1 }
 0x12e   :  { %v6755_v14 = vpop.f32.mrb[14].mxu1  ;;  %v5911_v12 = vld [vmem:[%s7714_s1 + $0x238] sm:$0xff]  }
 0x12f   :  { %v2446_v17 = vpop.f32.mrb[15].mxu1 }
 0x130   :  { %v5819_v17 = vld [vmem:[%s7715_s0 + $0x8cc] ss:$36 sps:$4 sm:$0xff]  }
 0x131   :  { %2656 = vmatmul.mubr.bf16.gmra.mrb[120].mxu1 %v5759_v13  ;;  %v5813_v13 = vld [vmem:[%s7715_s0 + $0x3f8] ss:$36 sps:$4 sm:$0xff]  }
 0x132   :  { %3170 = vmatmul.mubr.bf16.gmra.mrb[88].mxu0 %v5760_v15  ;;  %2663 = vmatprep.mubr.bf16.mxu1 %v5762_v16  ;;  %v5814_v15 = vld [vmem:[%s7715_s0 + $0x880] ss:$36 sps:$4 sm:$0xff]  }
 0x133   :  { %3177 = vmatprep.mubr.bf16.mxu0 %v5764_v18  ;;  %v5817_v16 = vld [vmem:[%s7715_s0 + $0x444] ss:$36 sps:$4 sm:$0xff]  }
 0x134   :  { %v6766_v19 = vpop.f32.mrb[16].mxu1  ;;  %v5821_v18 = vld [vmem:[%s7715_s0 + $0x440] ss:$36 sps:$4 sm:$0xff]  }
 0x135   :  { %v2451_v20 = vpop.f32.mrb[17].mxu1 }
 0x136   :  { %v6771_v22 = vpop.f32.mrb[18].mxu1  ;;  %v5822_v20 = vld [vmem:[%s7715_s0 + $0x8c8] ss:$36 sps:$4 sm:$0xff]  }
 0x137   :  { %v2454_v25 = vpop.f32.mrb[19].mxu1 }
 0x138   :  { %v5825_v25 = vld [vmem:[%s7715_s0 + $0x18] ss:$36 sps:$4 sm:$0xff]  }
 0x139   :  { %2664 = vmatmul.mubr.bf16.gmra.mrb[124].mxu1 %v5766_v21  ;;  %v5823_v21 = vld [vmem:[%s7715_s0 + $0x48c] ss:$36 sps:$4 sm:$0xff]  }
 0x13a   :  { %3178 = vmatmul.mubr.bf16.gmra.mrb[92].mxu0 %v5767_v23  ;;  %2768 = vmatprep.mubr.bf16.mxu1 %v5770_v24  ;;  %v5827_v23 = vld [vmem:[%s7715_s0 + $0x1c] ss:$36 sps:$4 sm:$0xff]   ;;  %v5828_v24 = vld [vmem:[%s7715_s0 + $0x488] ss:$36 sps:$4 sm:$0xff]  }
 0x13b   :  { %3185 = vmatprep.mubr.bf16.mxu0 %v5771_v26  ;;  %v5829_v26 = vld [vmem:[%s7715_s0 + $0x4d4] ss:$36 sps:$4 sm:$0xff]  }
 0x13c   :  { %v6782_v27 = vpop.f32.mrb[20].mxu1 }
 0x13d   :  { %v2459_v28 = vpop.f32.mrb[21].mxu1 }
 0x13e   :  { %v6787_v29 = vpop.f32.mrb[22].mxu1  ;;  %v5831_v28 = vld [vmem:[%s7715_s0 + $0x64] ss:$36 sps:$4 sm:$0xff]  }
 0x13f   :  { %v2462_v31 = vpop.f32.mrb[23].mxu1 }
 0x140   :  { %v5836_v31 = vld [vmem:[%s7715_s0 + $0x51c] ss:$36 sps:$4 sm:$0xff]  }
 0x141   :  { %2769 = vmatmul.mubr.bf16.vlgmr.msra.gmra.mrb[32].mxu1 %v5768_v0  ;;  %v5833_v0 = vld [vmem:[%s7715_s0 + $0x4d0] ss:$36 sps:$4 sm:$0xff]  }
 0x142   :  { %3186 = vmatmul.mubr.bf16.gmra.mrb[96].mxu0 %v5773_v30  ;;  %5084 = vmatpush3.bf16.msra.mxu1 %v6564_v5  ;;  %v5781_v5 = vld [vmem:[%s7715_s0 + $0x718] ss:$36 sps:$4 sm:$0xff]   ;;  %v5834_v30 = vld [vmem:[%s7715_s0 + $0x60] ss:$36 sps:$4 sm:$0xff]  }
 0x143   :  { %2776 = vmatprep.mubr.bf16.mxu1 %v5776_v32  ;;  %3193 = vmatprep.mubr.bf16.mxu0 %v5778_v33  ;;  %v5838_v32 = vld [vmem:[%s7715_s0 + $0xac] ss:$36 sps:$4 sm:$0xff]   ;;  %v5840_v33 = vld [vmem:[%s7715_s0 + $0x518] ss:$36 sps:$4 sm:$0xff]  }
 0x144   :  { %v6805_v36 = vpop.f32.mrb[24].mxu1  ;;  %5085 = vmatprep.subr.bf16.mxu1 %v5795_v34 }
 0x145   :  { %v2467_v37 = vpop.f32.mrb[25].mxu1 }
 0x146   :  { %v6810_v39 = vpop.f32.mrb[26].mxu1  ;;  %5086 = vmatpush3.bf16.msra.mxu1 %v5795_v34  ;;  %v5841_v34 = vld [vmem:[%s7715_s0 + $0xa8] ss:$36 sps:$4 sm:$0xff]   ;;  %v5844_v37 = vld [vmem:[%s7715_s0 + $0xf4] ss:$36 sps:$4 sm:$0xff]  }
 0x147   :  { %v2470_v41 = vpop.f32.mrb[27].mxu1  ;;  %5087 = vmatprep.subr.bf16.mxu1 %v5815_v35 }
 0x148   :  { %v5850_v41 = vld [vmem:[%s7715_s0 + $0x13c] ss:$36 sps:$4 sm:$0xff]  }
 0x149   :  { %2777 = vmatmul.mubr.bf16.gmra.mrb[36].mxu1 %v5780_v38  ;;  %v5846_v38 = vld [vmem:[%s7715_s0 + $0x560] ss:$36 sps:$4 sm:$0xff]  }
 0x14a   :  { %3194 = vmatmul.mubr.bf16.gmra.mrb[100].mxu0 %v5781_v5  ;;  %2784 = vmatprep.mubr.bf16.mxu1 %v5782_v40  ;;  %v5847_v5 = vld [vmem:[%s7715_s0 + $0xf0] ss:$36 sps:$4 sm:$0xff]  }
 0x14b   :  { %3201 = vmatprep.mubr.bf16.mxu0 %v5784_v42  ;;  %5088 = vmatpush3.bf16.msra.mxu1 %v5815_v35  ;;  %v5842_v35 = vld [vmem:[%s7715_s0 + $0x564] ss:$36 sps:$4 sm:$0xff]   ;;  %v5848_v40 = vld [vmem:[%s7715_s0 + $0x5ac] ss:$36 sps:$4 sm:$0xff]  }
 0x14c   :  { %v6824_v44 = vpop.f32.mrb[28].mxu1  ;;  %5089 = vmatprep.subr.bf16.mxu1 %v5835_v43  ;;  %v5852_v42 = vld [vmem:[%s7715_s0 + $0x5a8] ss:$36 sps:$4 sm:$0xff]  }
 0x14d   :  { %v2475_v46 = vpop.f32.mrb[29].mxu1 }
 0x14e   :  { %v6832_v48 = vpop.f32.mrb[30].mxu1  ;;  %v5857_v46 = vld [vmem:[%s7715_s0 + $0x184] ss:$36 sps:$4 sm:$0xff]  }
 0x14f   :  { %v2478_v53 = vpop.f32.mrb[31].mxu1  ;;  %5090 = vmatpush3.bf16.msra.mxu1 %v5835_v43  ;;  %v5853_v43 = vld [vmem:[%s7715_s0 + $0x138] ss:$36 sps:$4 sm:$0xff]  }
 0x150   :  { %5091 = vmatprep.subr.bf16.mxu1 %v5854_v45  ;;  %v5863_v53 = vld [vmem:[%s7715_s0 + $0x1cc] ss:$36 sps:$4 sm:$0xff]  }
 0x151   :  { %2785 = vmatmul.mubr.bf16.gmra.mrb[40].mxu1 %v5786_v47  ;;  %v5859_v47 = vld [vmem:[%s7715_s0 + $0x5f0] ss:$36 sps:$4 sm:$0xff]  }
 0x152   :  { %3202 = vmatmul.mubr.bf16.gmra.mrb[104].mxu0 %v5787_v50  ;;  %2792 = vmatprep.mubr.bf16.mxu1 %v5789_v51  ;;  %v5860_v50 = vld [vmem:[%s7715_s0 + $0x180] ss:$36 sps:$4 sm:$0xff]  }
 0x153   :  { %3209 = vmatprep.mubr.bf16.mxu0 %v5791_v54  ;;  %5092 = vmatpush3.bf16.msra.mxu1 %v5854_v45  ;;  %v5855_v45 = vld [vmem:[%s7715_s0 + $0x5f4] ss:$36 sps:$4 sm:$0xff]   ;;  %v5861_v51 = vld [vmem:[%s7715_s0 + $0x63c] ss:$36 sps:$4 sm:$0xff]  }
 0x154   :  { %5093 = vmatprep.subr.bf16.mxu1 %v5873_v55  ;;  %v5865_v54 = vld [vmem:[%s7715_s0 + $0x638] ss:$36 sps:$4 sm:$0xff]  }
 0x157   :  { %5094 = vmatpush3.bf16.msra.mxu1 %v5873_v55  ;;  %v5866_v55 = vld [vmem:[%s7715_s0 + $0x1c8] ss:$36 sps:$4 sm:$0xff]  }
 0x158   :  { %5095 = vmatprep.subr.bf16.mxu1 %v5892_v56 }
 0x159   :  { %2793 = vmatmul.mubr.bf16.gmra.mrb[44].mxu1 %v5793_v58  ;;  %v5869_v58 = vld [vmem:[%s7715_s0 + $0x214] ss:$36 sps:$4 sm:$0xff]  }
 0x15a   :  { %3210 = vmatmul.mubr.bf16.gmra.mrb[108].mxu0 %v5794_v59  ;;  %2800 = vmatprep.mubr.bf16.mxu1 %v5796_v61  ;;  %v5871_v59 = vld [vmem:[%s7715_s0 + $0x680] ss:$36 sps:$4 sm:$0xff]   ;;  %v5872_v61 = vld [vmem:[%s7715_s0 + $0x210] ss:$36 sps:$4 sm:$0xff]  }
 0x15b   :  { %3217 = vmatprep.mubr.bf16.mxu0 %v5798_v62  ;;  %5096 = vmatpush3.bf16.msra.mxu1 %v5892_v56  ;;  %v5867_v56 = vld [vmem:[%s7715_s0 + $0x684] ss:$36 sps:$4 sm:$0xff]   ;;  %v5874_v62 = vld [vmem:[%s7715_s0 + $0x6cc] ss:$36 sps:$4 sm:$0xff]  }
 0x15c   :  { %5097 = vmatprep.subr.bf16.mxu1 %v5911_v12 }
 0x15f   :  { %5098 = vmatpush3.bf16.msra.mxu1 %v5911_v12  ;;  %v5888_v12 = vld [vmem:[%s7715_s0 + $0x2ec] ss:$36 sps:$4 sm:$0xff]  }
 0x161   :  { %2801 = vmatmul.mubr.bf16.gmra.mrb[48].mxu1 %v5800_v63  ;;  %v5876_v63 = vld [vmem:[%s7715_s0 + $0x25c] ss:$36 sps:$4 sm:$0xff]  }
 0x162   :  { %3218 = vmatmul.mubr.bf16.gmra.mrb[112].mxu0 %v5801_v1  ;;  %2808 = vmatprep.mubr.bf16.mxu1 %v5803_v3  ;;  %v5878_v1 = vld [vmem:[%s7715_s0 + $0x6c8] ss:$36 sps:$4 sm:$0xff]   ;;  %v5879_v3 = vld [vmem:[%s7715_s0 + $0x258] ss:$36 sps:$4 sm:$0xff]  }
 0x163   :  { %3225 = vmatprep.mubr.bf16.mxu0 %v5805_v4  ;;  %v5880_v4 = vld [vmem:[%s7715_s0 + $0x714] ss:$36 sps:$4 sm:$0xff]  }
 0x169   :  { %2809 = vmatmul.mubr.bf16.gmra.mrb[52].mxu1 %v5807_v7  ;;  %v5882_v7 = vld [vmem:[%s7715_s0 + $0x2a4] ss:$36 sps:$4 sm:$0xff]  }
 0x16a   :  { %3226 = vmatmul.mubr.bf16.gmra.mrb[116].mxu0 %v5808_v8  ;;  %2816 = vmatprep.mubr.bf16.mxu1 %v5809_v9  ;;  %v5884_v8 = vld [vmem:[%s7715_s0 + $0x710] ss:$36 sps:$4 sm:$0xff]   ;;  %v5885_v9 = vld [vmem:[%s7715_s0 + $0x2a0] ss:$36 sps:$4 sm:$0xff]  }
 0x16b   :  { %3233 = vmatprep.mubr.bf16.mxu0 %v5811_v10  ;;  %v5886_v10 = vld [vmem:[%s7715_s0 + $0x75c] ss:$36 sps:$4 sm:$0xff]  }
 0x171   :  { %2817 = vmatmul.mubr.bf16.gmra.mrb[56].mxu1 %v5813_v13  ;;  %v5890_v13 = vld [vmem:[%s7715_s0 + $0x758] ss:$36 sps:$4 sm:$0xff]  }
 0x172   :  { %3234 = vmatmul.mubr.bf16.gmra.mrb[120].mxu0 %v5814_v15  ;;  %2824 = vmatprep.mubr.bf16.mxu1 %v5817_v16  ;;  %v5891_v15 = vld [vmem:[%s7715_s0 + $0x2e8] ss:$36 sps:$4 sm:$0xff]  }
 0x173   :  { %3241 = vmatprep.mubr.bf16.mxu0 %v5819_v17  ;;  %v5893_v16 = vld [vmem:[%s7715_s0 + $0x7a4] ss:$36 sps:$4 sm:$0xff]   ;;  %v5895_v17 = vld [vmem:[%s7715_s0 + $0x334] ss:$36 sps:$4 sm:$0xff]  }
 0x179   :  { %2825 = vmatmul.mubr.bf16.gmra.mrb[60].mxu1 %v5821_v18  ;;  %v5897_v18 = vld [vmem:[%s7715_s0 + $0x7a0] ss:$36 sps:$4 sm:$0xff]  }
 0x17a   :  { %3242 = vmatmul.mubr.bf16.gmra.mrb[124].mxu0 %v5822_v20  ;;  %2832 = vmatprep.mubr.bf16.mxu1 %v5823_v21  ;;  %v5898_v20 = vld [vmem:[%s7715_s0 + $0x330] ss:$36 sps:$4 sm:$0xff]  }
 0x17b   :  { %3282 = vmatprep.mubr.bf16.mxu0 %v5827_v23  ;;  %v5899_v21 = vld [vmem:[%s7715_s0 + $0x7ec] ss:$36 sps:$4 sm:$0xff]   ;;  %v5901_v23 = vld [vmem:[%s7715_s0 + $0x37c] ss:$36 sps:$4 sm:$0xff]  }
 0x181   :  { %2833 = vmatmul.mubr.bf16.gmra.mrb[64].mxu1 %v5828_v24  ;;  %v5903_v24 = vld [vmem:[%s7715_s0 + $0x7e8] ss:$36 sps:$4 sm:$0xff]  }
 0x182   :  { %3283 = vmatmul.mubr.bf16.vlgmr.msra.gmra.mrb[0].mxu0 %v5825_v25  ;;  %2840 = vmatprep.mubr.bf16.mxu1 %v5829_v26  ;;  %v5904_v25 = vld [vmem:[%s7715_s0 + $0x378] ss:$36 sps:$4 sm:$0xff]  }
 0x183   :  { %3290 = vmatprep.mubr.bf16.mxu0 %v5831_v28  ;;  %v5905_v26 = vld [vmem:[%s7715_s0 + $0x834] ss:$36 sps:$4 sm:$0xff]   ;;  %v5907_v28 = vld [vmem:[%s7715_s0 + $0x3c4] ss:$36 sps:$4 sm:$0xff]  }
 0x189   :  { %2841 = vmatmul.mubr.bf16.gmra.mrb[68].mxu1 %v5833_v0  ;;  %v5909_v0 = vld [vmem:[%s7715_s0 + $0x830] ss:$36 sps:$4 sm:$0xff]  }
 0x18a   :  { %3291 = vmatmul.mubr.bf16.gmra.mrb[4].mxu0 %v5834_v30  ;;  %2848 = vmatprep.mubr.bf16.mxu1 %v5836_v31  ;;  %v5910_v30 = vld [vmem:[%s7715_s0 + $0x3c0] ss:$36 sps:$4 sm:$0xff]  }
 0x18b   :  { %3298 = vmatprep.mubr.bf16.mxu0 %v5838_v32  ;;  %v5912_v31 = vld [vmem:[%s7715_s0 + $0x87c] ss:$36 sps:$4 sm:$0xff]   ;;  %v5914_v32 = vld [vmem:[%s7715_s0 + $0x40c] ss:$36 sps:$4 sm:$0xff]  }
 0x191   :  { %2849 = vmatmul.mubr.bf16.gmra.mrb[72].mxu1 %v5840_v33  ;;  %v5916_v33 = vld [vmem:[%s7715_s0 + $0x878] ss:$36 sps:$4 sm:$0xff]  }
 0x192   :  { %3299 = vmatmul.mubr.bf16.gmra.mrb[8].mxu0 %v5841_v34  ;;  %2856 = vmatprep.mubr.bf16.mxu1 %v5842_v35  ;;  %v5917_v34 = vld [vmem:[%s7715_s0 + $0x408] ss:$36 sps:$4 sm:$0xff]  }
 0x193   :  { %3306 = vmatprep.mubr.bf16.mxu0 %v5844_v37  ;;  %v5918_v35 = vld [vmem:[%s7715_s0 + $0x8c4] ss:$36 sps:$4 sm:$0xff]   ;;  %v5920_v37 = vld [vmem:[%s7715_s0 + $0x454] ss:$36 sps:$4 sm:$0xff]  }
 0x199   :  { %2857 = vmatmul.mubr.bf16.gmra.mrb[76].mxu1 %v5846_v38  ;;  %v5922_v38 = vld [vmem:[%s7715_s0 + $0x8c0] ss:$36 sps:$4 sm:$0xff]  }
 0x19a   :  { %3307 = vmatmul.mubr.bf16.gmra.mrb[12].mxu0 %v5847_v5  ;;  %2864 = vmatprep.mubr.bf16.mxu1 %v5848_v40  ;;  %v5923_v5 = vld [vmem:[%s7715_s0 + $0x450] ss:$36 sps:$4 sm:$0xff]   ;;  %v5926_v40 = vld [vmem:[%s7715_s0 + $0x20] ss:$36 sps:$4 sm:$0xff]  }
 0x19b   :  { %3314 = vmatprep.mubr.bf16.mxu0 %v5850_v41  ;;  %v5924_v41 = vld [vmem:[%s7715_s0 + $0x49c] ss:$36 sps:$4 sm:$0xff]  }
 0x1a1   :  { %2865 = vmatmul.mubr.bf16.gmra.mrb[80].mxu1 %v5852_v42  ;;  %v5928_v42 = vld [vmem:[%s7715_s0 + $0x68] ss:$36 sps:$4 sm:$0xff]  }
 0x1a2   :  { %3315 = vmatmul.mubr.bf16.gmra.mrb[16].mxu0 %v5853_v43  ;;  %2872 = vmatprep.mubr.bf16.mxu1 %v5855_v45  ;;  %v5927_v43 = vld [vmem:[%s7715_s0 + $0x498] ss:$36 sps:$4 sm:$0xff]   ;;  %v5931_v45 = vld [vmem:[%s7715_s0 + $0xb0] ss:$36 sps:$4 sm:$0xff]  }
 0x1a3   :  { %3322 = vmatprep.mubr.bf16.mxu0 %v5857_v46  ;;  %v5929_v46 = vld [vmem:[%s7715_s0 + $0x4e4] ss:$36 sps:$4 sm:$0xff]  }
 0x1a9   :  { %2873 = vmatmul.mubr.bf16.gmra.mrb[84].mxu1 %v5859_v47  ;;  %v5933_v47 = vld [vmem:[%s7715_s0 + $0xf8] ss:$36 sps:$4 sm:$0xff]  }
 0x1aa   :  { %3323 = vmatmul.mubr.bf16.gmra.mrb[20].mxu0 %v5860_v50  ;;  %2880 = vmatprep.mubr.bf16.mxu1 %v5861_v51  ;;  %v5932_v50 = vld [vmem:[%s7715_s0 + $0x4e0] ss:$36 sps:$4 sm:$0xff]  }
 0x1ab   :  { %3330 = vmatprep.mubr.bf16.mxu0 %v5863_v53  ;;  %v5936_v51 = vld [vmem:[%s7715_s0 + $0x140] ss:$36 sps:$4 sm:$0xff]   ;;  %v5934_v53 = vld [vmem:[%s7715_s0 + $0x52c] ss:$36 sps:$4 sm:$0xff]  }
 0x1b1   :  { %2881 = vmatmul.mubr.bf16.gmra.mrb[88].mxu1 %v5865_v54  ;;  %v5938_v54 = vld [vmem:[%s7715_s0 + $0x188] ss:$36 sps:$4 sm:$0xff]  }
 0x1b2   :  { %3331 = vmatmul.mubr.bf16.gmra.mrb[24].mxu0 %v5866_v55  ;;  %2888 = vmatprep.mubr.bf16.mxu1 %v5867_v56  ;;  %v5937_v55 = vld [vmem:[%s7715_s0 + $0x528] ss:$36 sps:$4 sm:$0xff]   ;;  %v5941_v56 = vld [vmem:[%s7715_s0 + $0x1d0] ss:$36 sps:$4 sm:$0xff]  }
 0x1b3   :  { %3338 = vmatprep.mubr.bf16.mxu0 %v5869_v58  ;;  %v5939_v58 = vld [vmem:[%s7715_s0 + $0x574] ss:$36 sps:$4 sm:$0xff]  }
 0x1b9   :  { %2889 = vmatmul.mubr.bf16.gmra.mrb[92].mxu1 %v5871_v59 }
 0x1ba   :  { %3339 = vmatmul.mubr.bf16.gmra.mrb[28].mxu0 %v5872_v61  ;;  %2896 = vmatprep.mubr.bf16.mxu1 %v5874_v62  ;;  %v5943_v62 = vld [vmem:[%s7715_s0 + $0x218] ss:$36 sps:$4 sm:$0xff]  }
 0x1bb   :  { %3346 = vmatprep.mubr.bf16.mxu0 %v5876_v63 }
 0x1c1   :  { %2897 = vmatmul.mubr.bf16.gmra.mrb[96].mxu1 %v5878_v1  ;;  %v5942_v1 = vld [vmem:[%s7715_s0 + $0x570] ss:$36 sps:$4 sm:$0xff]  }
 0x1c2   :  { %3347 = vmatmul.mubr.bf16.gmra.mrb[32].mxu0 %v5879_v3  ;;  %2904 = vmatprep.mubr.bf16.mxu1 %v5880_v4  ;;  %v5946_v3 = vld [vmem:[%s7715_s0 + $0x260] ss:$36 sps:$4 sm:$0xff]  }
 0x1c3   :  { %3354 = vmatprep.mubr.bf16.mxu0 %v5882_v7  ;;  %v5944_v7 = vld [vmem:[%s7715_s0 + $0x5bc] ss:$36 sps:$4 sm:$0xff]  }
 0x1c9   :  { %2905 = vmatmul.mubr.bf16.gmra.mrb[100].mxu1 %v5884_v8 }
 0x1ca   :  { %3355 = vmatmul.mubr.bf16.gmra.mrb[36].mxu0 %v5885_v9  ;;  %2912 = vmatprep.mubr.bf16.mxu1 %v5886_v10  ;;  %v5948_v10 = vld [vmem:[%s7715_s0 + $0x2a8] ss:$36 sps:$4 sm:$0xff]  }
 0x1cb   :  { %3362 = vmatprep.mubr.bf16.mxu0 %v5888_v12 }
 0x1d1   :  { %2913 = vmatmul.mubr.bf16.gmra.mrb[104].mxu1 %v5890_v13  ;;  %v5947_v13 = vld [vmem:[%s7715_s0 + $0x5b8] ss:$36 sps:$4 sm:$0xff]  }
 0x1d2   :  { %3363 = vmatmul.mubr.bf16.gmra.mrb[40].mxu0 %v5891_v15  ;;  %2920 = vmatprep.mubr.bf16.mxu1 %v5893_v16  ;;  %v5951_v15 = vld [vmem:[%s7715_s0 + $0x2f0] ss:$36 sps:$4 sm:$0xff]  }
 0x1d3   :  { %3370 = vmatprep.mubr.bf16.mxu0 %v5895_v17  ;;  %v5949_v17 = vld [vmem:[%s7715_s0 + $0x604] ss:$36 sps:$4 sm:$0xff]  }
 0x1d9   :  { %2921 = vmatmul.mubr.bf16.gmra.mrb[108].mxu1 %v5897_v18 }
 0x1da   :  { %3371 = vmatmul.mubr.bf16.gmra.mrb[44].mxu0 %v5898_v20  ;;  %2928 = vmatprep.mubr.bf16.mxu1 %v5899_v21  ;;  %v5953_v21 = vld [vmem:[%s7715_s0 + $0x338] ss:$36 sps:$4 sm:$0xff]  }
 0x1db   :  { %3378 = vmatprep.mubr.bf16.mxu0 %v5901_v23 }
 0x1e1   :  { %2929 = vmatmul.mubr.bf16.gmra.mrb[112].mxu1 %v5903_v24  ;;  %v5952_v24 = vld [vmem:[%s7715_s0 + $0x600] ss:$36 sps:$4 sm:$0xff]  }
 0x1e2   :  { %3379 = vmatmul.mubr.bf16.gmra.mrb[48].mxu0 %v5904_v25  ;;  %2936 = vmatprep.mubr.bf16.mxu1 %v5905_v26  ;;  %v5956_v25 = vld [vmem:[%s7715_s0 + $0x380] ss:$36 sps:$4 sm:$0xff]  }
 0x1e3   :  { %3386 = vmatprep.mubr.bf16.mxu0 %v5907_v28  ;;  %v5954_v28 = vld [vmem:[%s7715_s0 + $0x64c] ss:$36 sps:$4 sm:$0xff]  }
 0x1e9   :  { %2937 = vmatmul.mubr.bf16.gmra.mrb[116].mxu1 %v5909_v0 }
 0x1ea   :  { %3387 = vmatmul.mubr.bf16.gmra.mrb[52].mxu0 %v5910_v30  ;;  %2944 = vmatprep.mubr.bf16.mxu1 %v5912_v31  ;;  %v5958_v31 = vld [vmem:[%s7715_s0 + $0x3c8] ss:$36 sps:$4 sm:$0xff]  }
 0x1eb   :  { %3394 = vmatprep.mubr.bf16.mxu0 %v5914_v32 }
 0x1f1   :  { %2945 = vmatmul.mubr.bf16.gmra.mrb[120].mxu1 %v5916_v33  ;;  %v5957_v33 = vld [vmem:[%s7715_s0 + $0x648] ss:$36 sps:$4 sm:$0xff]  }
 0x1f2   :  { %3395 = vmatmul.mubr.bf16.gmra.mrb[56].mxu0 %v5917_v34  ;;  %2952 = vmatprep.mubr.bf16.mxu1 %v5918_v35  ;;  %v5961_v34 = vld [vmem:[%s7715_s0 + $0x410] ss:$36 sps:$4 sm:$0xff]  }
 0x1f3   :  { %3402 = vmatprep.mubr.bf16.mxu0 %v5920_v37  ;;  %v5959_v37 = vld [vmem:[%s7715_s0 + $0x694] ss:$36 sps:$4 sm:$0xff]  }
 0x1f9   :  { %2953 = vmatmul.mubr.bf16.gmra.mrb[124].mxu1 %v5922_v38 }
 0x1fa   :  { %3403 = vmatmul.mubr.bf16.gmra.mrb[60].mxu0 %v5923_v5  ;;  %5099 = vmatprep.mubr.bf16.mxu1 %v5926_v40  ;;  %v5963_v40 = vld [vmem:[%s7715_s0 + $0x458] ss:$36 sps:$4 sm:$0xff]  }
 0x1fb   :  { %3410 = vmatprep.mubr.bf16.mxu0 %v5924_v41 }
 0x201   :  { %5100 = vmatmul.mubr.bf16.vlgmr.msra.gmra.mrb[128].mxu1 %v5928_v42  ;;  %v5962_v42 = vld [vmem:[%s7715_s0 + $0x690] ss:$36 sps:$4 sm:$0xff]  }
 0x202   :  { %3411 = vmatmul.mubr.bf16.gmra.mrb[64].mxu0 %v5927_v43  ;;  %5103 = vmatprep.mubr.bf16.mxu1 %v5931_v45  ;;  %v5966_v43 = vld [vmem:[%s7715_s0 + $0x4a0] ss:$36 sps:$4 sm:$0xff]  }
 0x203   :  { %3418 = vmatprep.mubr.bf16.mxu0 %v5929_v46  ;;  %v5964_v46 = vld [vmem:[%s7715_s0 + $0x6dc] ss:$36 sps:$4 sm:$0xff]  }
 0x209   :  { %5104 = vmatmul.mubr.bf16.gmra.mrb[132].mxu1 %v5933_v47 }
 0x20a   :  { %3419 = vmatmul.mubr.bf16.gmra.mrb[68].mxu0 %v5932_v50  ;;  %5107 = vmatprep.mubr.bf16.mxu1 %v5936_v51  ;;  %v5968_v51 = vld [vmem:[%s7715_s0 + $0x4e8] ss:$36 sps:$4 sm:$0xff]  }
 0x20b   :  { %3426 = vmatprep.mubr.bf16.mxu0 %v5934_v53 }
 0x211   :  { %5108 = vmatmul.mubr.bf16.gmra.mrb[136].mxu1 %v5938_v54  ;;  %v5967_v54 = vld [vmem:[%s7715_s0 + $0x6d8] ss:$36 sps:$4 sm:$0xff]  }
 0x212   :  { %3427 = vmatmul.mubr.bf16.gmra.mrb[72].mxu0 %v5937_v55  ;;  %5111 = vmatprep.mubr.bf16.mxu1 %v5941_v56  ;;  %v5971_v55 = vld [vmem:[%s7715_s0 + $0x530] ss:$36 sps:$4 sm:$0xff]  }
 0x213   :  { %3434 = vmatprep.mubr.bf16.mxu0 %v5939_v58  ;;  %v5969_v58 = vld [vmem:[%s7715_s0 + $0x724] ss:$36 sps:$4 sm:$0xff]  }
 0x214   :  { %v7140_v59 = vpop.f32.mrb[32].mxu1 }
 0x215   :  { %v2772_v61 = vpop.f32.mrb[33].mxu1 }
 0x216   :  { %v7145_v63 = vpop.f32.mrb[34].mxu1 }
 0x217   :  { %v2775_v4 = vpop.f32.mrb[35].mxu1 }
 0x218   :  { %v5972_v4 = vld [vmem:[%s7715_s0 + $0x720] ss:$36 sps:$4 sm:$0xff]  }
 0x219   :  { %5112 = vmatmul.mubr.bf16.gmra.mrb[140].mxu1 %v5943_v62 }
 0x21a   :  { %3435 = vmatmul.mubr.bf16.gmra.mrb[76].mxu0 %v5942_v1  ;;  %5115 = vmatprep.mubr.bf16.mxu1 %v5946_v3  ;;  %v5973_v1 = vld [vmem:[%s7715_s0 + $0x578] ss:$36 sps:$4 sm:$0xff]  }
 0x21b   :  { %3442 = vmatprep.mubr.bf16.mxu0 %v5944_v7  ;;  %v5976_v7 = vld [vmem:[%s7715_s0 + $0x5c0] ss:$36 sps:$4 sm:$0xff]  }
 0x21c   :  { %v7156_v8 = vpop.f32.mrb[36].mxu1 }
 0x21d   :  { %v2780_v9 = vpop.f32.mrb[37].mxu1 }
 0x21e   :  { %v7161_v12 = vpop.f32.mrb[38].mxu1 }
 0x21f   :  { %v2783_v16 = vpop.f32.mrb[39].mxu1 }
 0x220   :  { %v5978_v16 = vld [vmem:[%s7715_s0 + $0x608] ss:$36 sps:$4 sm:$0xff]  }
 0x221   :  { %5116 = vmatmul.mubr.bf16.gmra.mrb[144].mxu1 %v5948_v10  ;;  %v5974_v10 = vld [vmem:[%s7715_s0 + $0x76c] ss:$36 sps:$4 sm:$0xff]  }
 0x222   :  { %3443 = vmatmul.mubr.bf16.gmra.mrb[80].mxu0 %v5947_v13  ;;  %5119 = vmatprep.mubr.bf16.mxu1 %v5951_v15 }
 0x223   :  { %3450 = vmatprep.mubr.bf16.mxu0 %v5949_v17 }
 0x224   :  { %v7172_v18 = vpop.f32.mrb[40].mxu1 }
 0x225   :  { %v2788_v20 = vpop.f32.mrb[41].mxu1 }
 0x226   :  { %v7177_v23 = vpop.f32.mrb[42].mxu1  ;;  %v5977_v20 = vld [vmem:[%s7715_s0 + $0x768] ss:$36 sps:$4 sm:$0xff]  }
 0x227   :  { %v2791_v26 = vpop.f32.mrb[43].mxu1 }
 0x229   :  { %5120 = vmatmul.mubr.bf16.gmra.mrb[148].mxu1 %v5953_v21  ;;  %v5981_v21 = vld [vmem:[%s7715_s0 + $0x650] ss:$36 sps:$4 sm:$0xff]  }
 0x22a   :  { %3451 = vmatmul.mubr.bf16.gmra.mrb[84].mxu0 %v5952_v24  ;;  %5123 = vmatprep.mubr.bf16.mxu1 %v5956_v25  ;;  %v5979_v25 = vld [vmem:[%s7715_s0 + $0x7b4] ss:$36 sps:$4 sm:$0xff]  }
 0x22b   :  { %3458 = vmatprep.mubr.bf16.mxu0 %v5954_v28 }
 0x22c   :  { %v7188_v0 = vpop.f32.mrb[44].mxu1 }
 0x22d   :  { %v2796_v30 = vpop.f32.mrb[45].mxu1 }
 0x22e   :  { %v7193_v32 = vpop.f32.mrb[46].mxu1 }
 0x22f   :  { %v2799_v35 = vpop.f32.mrb[47].mxu1 }
 0x231   :  { %5124 = vmatmul.mubr.bf16.gmra.mrb[152].mxu1 %v5958_v31  ;;  %v5983_v31 = vld [vmem:[%s7715_s0 + $0x698] ss:$36 sps:$4 sm:$0xff]  }
 0x232   :  { %3459 = vmatmul.mubr.bf16.gmra.mrb[88].mxu0 %v5957_v33  ;;  %5127 = vmatprep.mubr.bf16.mxu1 %v5961_v34 }
 0x233   :  { %3466 = vmatprep.mubr.bf16.mxu0 %v5959_v37  ;;  %v5982_v37 = vld [vmem:[%s7715_s0 + $0x7b0] ss:$36 sps:$4 sm:$0xff]  }
 0x234   :  { %v7204_v38 = vpop.f32.mrb[48].mxu1 }
 0x235   :  { %v2804_v5 = vpop.f32.mrb[49].mxu1 }
 0x236   :  { %v7209_v41 = vpop.f32.mrb[50].mxu1  ;;  %v5986_v5 = vld [vmem:[%s7715_s0 + $0x6e0] ss:$36 sps:$4 sm:$0xff]  }
 0x237   :  { %v2807_v45 = vpop.f32.mrb[51].mxu1 }
 0x239   :  { %5128 = vmatmul.mubr.bf16.gmra.mrb[156].mxu1 %v5963_v40 }
 0x23a   :  { %3467 = vmatmul.mubr.bf16.gmra.mrb[92].mxu0 %v5962_v42  ;;  %5131 = vmatprep.mubr.bf16.mxu1 %v5966_v43  ;;  %v5984_v43 = vld [vmem:[%s7715_s0 + $0x7fc] ss:$36 sps:$4 sm:$0xff]  }
 0x23b   :  { %3474 = vmatprep.mubr.bf16.mxu0 %v5964_v46 }
 0x23c   :  { %v7220_v47 = vpop.f32.mrb[52].mxu1 }
 0x23d   :  { %v2812_v50 = vpop.f32.mrb[53].mxu1 }
 0x23e   :  { %v7225_v53 = vpop.f32.mrb[54].mxu1 }
 0x23f   :  { %v2815_v56 = vpop.f32.mrb[55].mxu1 }
 0x241   :  { %5132 = vmatmul.mubr.bf16.gmra.mrb[160].mxu1 %v5968_v51 }
 0x242   :  { %3475 = vmatmul.mubr.bf16.gmra.mrb[96].mxu0 %v5967_v54  ;;  %5135 = vmatprep.mubr.bf16.mxu1 %v5971_v55  ;;  %v5988_v54 = vld [vmem:[%s7715_s0 + $0x728] ss:$36 sps:$4 sm:$0xff]  }
 0x243   :  { %3482 = vmatprep.mubr.bf16.mxu0 %v5969_v58 }
 0x244   :  { %v7236_v61 = vpop.f32.mrb[56].mxu1 }
 0x245   :  { %v2820_v62 = vpop.f32.mrb[57].mxu1 }
 0x246   :  { %v7241_v3 = vpop.f32.mrb[58].mxu1  ;;  %v5991_v62 = vld [vmem:[%s7715_s0 + $0x770] ss:$36 sps:$4 sm:$0xff]  }
 0x247   :  { %v2823_v9 = vpop.f32.mrb[59].mxu1 }
 0x249   :  { %5136 = vmatmul.mubr.bf16.gmra.mrb[164].mxu1 %v5973_v1 }
 0x24a   :  { %3483 = vmatmul.mubr.bf16.gmra.mrb[100].mxu0 %v5972_v4  ;;  %5139 = vmatprep.mubr.bf16.mxu1 %v5976_v7  ;;  %v5989_v7 = vld [vmem:[%s7715_s0 + $0x844] ss:$36 sps:$4 sm:$0xff]  }
 0x24b   :  { %3490 = vmatprep.mubr.bf16.mxu0 %v5974_v10 }
 0x24c   :  { %v7252_v13 = vpop.f32.mrb[60].mxu1 }
 0x24d   :  { %v2828_v15 = vpop.f32.mrb[61].mxu1 }
 0x24e   :  { %v7257_v17 = vpop.f32.mrb[62].mxu1 }
 0x24f   :  { %v2831_v24 = vpop.f32.mrb[63].mxu1 }
 0x251   :  { %5140 = vmatmul.mubr.bf16.gmra.mrb[168].mxu1 %v5978_v16 }
 0x252   :  { %3491 = vmatmul.mubr.bf16.gmra.mrb[104].mxu0 %v5977_v20  ;;  %5143 = vmatprep.mubr.bf16.mxu1 %v5981_v21  ;;  %v5993_v20 = vld [vmem:[%s7715_s0 + $0x7b8] ss:$36 sps:$4 sm:$0xff]  }
 0x253   :  { %3498 = vmatprep.mubr.bf16.mxu0 %v5979_v25 }
 0x254   :  { %v7268_v26 = vpop.f32.mrb[64].mxu1 }
 0x255   :  { %v3284_v28 = vpop.f32.mrb[0].mxu0  ;;  %v2836_v30 = vpop.f32.mrb[65].mxu1 }
 0x256   :  { %v7274_v33 = vadd.f32 %v3284_v28, %v6702_v49  ;;  %v3286_v34 = vpop.f32.mrb[1].mxu0  ;;  %v7276_v35 = vpop.f32.mrb[66].mxu1  ;;  %v5996_v28 = vld [vmem:[%s7715_s0 + $0x800] ss:$36 sps:$4 sm:$0xff]  }
 0x257   :  { %v3287_v40 = vpop.f32.mrb[2].mxu0  ;;  %v2839_v42 = vpop.f32.mrb[67].mxu1  ;;  %v5994_v34 = vld [vmem:[%s7715_s0 + $0x88c] ss:$36 sps:$4 sm:$0xff]  }
 0x258   :  { %v7288_v49 = vadd.f32 %v3287_v40, %v6707_v52  ;;  %v3289_v45 = vpop.f32.mrb[3].mxu0  ;;  %v5987_v52 = vld [vmem:[%s7715_s0 + $0x7f8] ss:$36 sps:$4 sm:$0xff]  }
 0x259   :  { %5144 = vmatmul.mubr.bf16.gmra.mrb[172].mxu1 %v5983_v31 }
 0x25a   :  { %3499 = vmatmul.mubr.bf16.gmra.mrb[108].mxu0 %v5982_v37  ;;  %5147 = vmatprep.mubr.bf16.mxu1 %v5986_v5 }
 0x25b   :  { %3506 = vmatprep.mubr.bf16.mxu0 %v5984_v43  ;;  %v5998_v43 = vld [vmem:[%s7715_s0 + $0x848] ss:$36 sps:$4 sm:$0xff]  }
 0x25c   :  { %v7290_v46 = vpop.f32.mrb[68].mxu1 }
 0x25d   :  { %v3292_v50 = vpop.f32.mrb[4].mxu0  ;;  %v2844_v51 = vpop.f32.mrb[69].mxu1 }
 0x25e   :  { %v7296_v55 = vadd.f32 %v3292_v50, %v6718_v57  ;;  %v3294_v56 = vpop.f32.mrb[5].mxu0  ;;  %v7298_v58 = vpop.f32.mrb[70].mxu1 }
 0x25f   :  { %v3295_v1 = vpop.f32.mrb[6].mxu0  ;;  %v2847_v4 = vpop.f32.mrb[71].mxu1 }
 0x260   :  { %v7310_v57 = vadd.f32 %v3295_v1, %v6723_v60  ;;  %v3297_v9 = vpop.f32.mrb[7].mxu0  ;;  %v5992_v60 = vld [vmem:[%s7715_s0 + $0x840] ss:$36 sps:$4 sm:$0xff]  }
 0x261   :  { %5148 = vmatmul.mubr.bf16.gmra.mrb[176].mxu1 %v5988_v54  ;;  %v6001_v54 = vld [vmem:[%s7715_s0 + $0x890] ss:$36 sps:$4 sm:$0xff]  }
 0x262   :  { %3507 = vmatmul.mubr.bf16.gmra.mrb[112].mxu0 %v5987_v52  ;;  %5151 = vmatprep.mubr.bf16.mxu1 %v5991_v62  ;;  %v5999_v62 = vld [vmem:[%s7715_s0 + $0x8d4] ss:$36 sps:$4 sm:$0xff]  }
 0x263   :  { %3514 = vmatprep.mubr.bf16.mxu0 %v5989_v7 }
 0x264   :  { %v7312_v10 = vpop.f32.mrb[72].mxu1 }
 0x265   :  { %v3300_v15 = vpop.f32.mrb[8].mxu0  ;;  %v2852_v16 = vpop.f32.mrb[73].mxu1 }
 0x266   :  { %v7318_v21 = vadd.f32 %v3300_v15, %v6734_v2  ;;  %v3302_v24 = vpop.f32.mrb[9].mxu0  ;;  %v7320_v25 = vpop.f32.mrb[74].mxu1  ;;  %v6003_v15 = vld [vmem:[%s7715_s0 + $0x8d8] ss:$36 sps:$4 sm:$0xff]  }
 0x267   :  { %v3303_v30 = vpop.f32.mrb[10].mxu0  ;;  %v2855_v31 = vpop.f32.mrb[75].mxu1 }
 0x268   :  { %v7332_v2 = vadd.f32 %v3303_v30, %v6739_v6  ;;  %v3305_v37 = vpop.f32.mrb[11].mxu0  ;;  %v5997_v6 = vld [vmem:[%s7715_s0 + $0x888] ss:$36 sps:$4 sm:$0xff]  }
 0x269   :  { %5152 = vmatmul.mubr.bf16.gmra.mrb[180].mxu1 %v5993_v20 }
 0x26a   :  { %3515 = vmatmul.mubr.bf16.gmra.mrb[116].mxu0 %v5992_v60  ;;  %5155 = vmatprep.mubr.bf16.mxu1 %v5996_v28 }
 0x26b   :  { %3522 = vmatprep.mubr.bf16.mxu0 %v5994_v34 }
 0x26c   :  { %v7334_v5 = vpop.f32.mrb[76].mxu1 }
 0x26d   :  { %v3308_v40 = vpop.f32.mrb[12].mxu0  ;;  %v2860_v42 = vpop.f32.mrb[77].mxu1 }
 0x26e   :  { %v7340_v45 = vadd.f32 %v3308_v40, %v6750_v11  ;;  %v3310_v50 = vpop.f32.mrb[13].mxu0  ;;  %v7342_v51 = vpop.f32.mrb[78].mxu1 }
 0x26f   :  { %v3311_v56 = vpop.f32.mrb[14].mxu0  ;;  %v2863_v52 = vpop.f32.mrb[79].mxu1 }
 0x270   :  { %v7354_v11 = vadd.f32 %v3311_v56, %v6755_v14  ;;  %v3313_v1 = vpop.f32.mrb[15].mxu0  ;;  %v6002_v14 = vld [vmem:[%s7715_s0 + $0x8d0] ss:$36 sps:$4 sm:$0xff]  }
 0x271   :  { %5156 = vmatmul.mubr.bf16.gmra.mrb[184].mxu1 %v5998_v43 }
 0x272   :  { %3523 = vmatmul.mubr.bf16.gmra.mrb[120].mxu0 %v5997_v6  ;;  %5159 = vmatprep.mubr.bf16.mxu1 %v6001_v54 }
 0x273   :  { %3530 = vmatprep.mubr.bf16.mxu0 %v5999_v62 }
 0x274   :  { %v7356_v4 = vpop.f32.mrb[80].mxu1 }
 0x275   :  { %v3316_v7 = vpop.f32.mrb[16].mxu0  ;;  %v2868_v9 = vpop.f32.mrb[81].mxu1 }
 0x276   :  { %v7362_v16 = vadd.f32 %v3316_v7, %v6766_v19  ;;  %v3318_v20 = vpop.f32.mrb[17].mxu0  ;;  %v7364_v24 = vpop.f32.mrb[82].mxu1 }
 0x277   :  { %v3319_v60 = vpop.f32.mrb[18].mxu0  ;;  %v2871_v28 = vpop.f32.mrb[83].mxu1 }
 0x278   :  { %v7370_v30 = vadd.f32 %v3319_v60, %v6771_v22  ;;  %v3321_v31 = vpop.f32.mrb[19].mxu0 }
 0x279   :  { %5160 = vmatmul.mubr.bf16.gmra.mrb[188].mxu1 %v6003_v15 }
 0x27a   :  { %3531 = vmatmul.mubr.bf16.gmra.mrb[124].mxu0 %v6002_v14 }
 0x27c   :  { %v7372_v34 = vpop.f32.mrb[84].mxu1 }
 0x27d   :  { %v3324_v37 = vpop.f32.mrb[20].mxu0  ;;  %v2876_v19 = vpop.f32.mrb[85].mxu1 }
 0x27e   :  { %v7375_v40 = vadd.f32 %v3324_v37, %v6782_v27  ;;  %v3326_v42 = vpop.f32.mrb[21].mxu0  ;;  %v7377_v43 = vpop.f32.mrb[86].mxu1 }
 0x27f   :  { %v3327_v50 = vpop.f32.mrb[22].mxu0  ;;  %v2879_v6 = vpop.f32.mrb[87].mxu1 }
 0x280   :  { %v7380_v54 = vadd.f32 %v3327_v50, %v6787_v29  ;;  %v3329_v22 = vpop.f32.mrb[23].mxu0 }
 0x284   :  { %v7382_v56 = vpop.f32.mrb[88].mxu1 }
 0x285   :  { %v3332_v52 = vpop.f32.mrb[24].mxu0  ;;  %v2884_v62 = vpop.f32.mrb[89].mxu1 }
 0x286   :  { %v7385_v1 = vadd.f32 %v3332_v52, %v6805_v36  ;;  %v3334_v7 = vpop.f32.mrb[25].mxu0  ;;  %v7387_v9 = vpop.f32.mrb[90].mxu1 }
 0x287   :  { %v3335_v27 = vpop.f32.mrb[26].mxu0  ;;  %v2887_v15 = vpop.f32.mrb[91].mxu1 }
 0x288   :  { %v7390_v20 = vadd.f32 %v3335_v27, %v6810_v39  ;;  %v3337_v14 = vpop.f32.mrb[27].mxu0 }
 0x28c   :  { %v7392_v60 = vpop.f32.mrb[92].mxu1 }
 0x28d   :  { %v3340_v29 = vpop.f32.mrb[28].mxu0  ;;  %v2892_v28 = vpop.f32.mrb[93].mxu1 }
 0x28e   :  { %v7395_v31 = vadd.f32 %v3340_v29, %v6824_v44  ;;  %v3342_v37 = vpop.f32.mrb[29].mxu0  ;;  %v7397_v19 = vpop.f32.mrb[94].mxu1 }
 0x28f   :  { %v3343_v36 = vpop.f32.mrb[30].mxu0  ;;  %v2895_v42 = vpop.f32.mrb[95].mxu1 }
 0x290   :  { %v7400_v50 = vadd.f32 %v3343_v36, %v6832_v48  ;;  %v3345_v6 = vpop.f32.mrb[31].mxu0 }
 0x294   :  { %v7402_v22 = vpop.f32.mrb[96].mxu1 }
 0x295   :  { %7719 = vst [vmem:[#allocation2_spill] sm:$0xff] %v7402_v22  ;;  %v3348_v39 = vpop.f32.mrb[32].mxu0  ;;  %v2900_v52 = vpop.f32.mrb[97].mxu1 }
 0x296   :  { %v7405_v62 = vadd.f32 %v3348_v39, %v7140_v59  ;;  %v3350_v7 = vpop.f32.mrb[33].mxu0  ;;  %v7407_v27 = vpop.f32.mrb[98].mxu1 }
 0x297   :  { %7720 = vst [vmem:[#allocation3_spill] sm:$0xff] %v7407_v27  ;;  %v3351_v44 = vpop.f32.mrb[34].mxu0  ;;  %v2903_v15 = vpop.f32.mrb[99].mxu1 }
 0x298   :  { %v7410_v14 = vadd.f32 %v3351_v44, %v7145_v63  ;;  %v3353_v29 = vpop.f32.mrb[35].mxu0 }
 0x29c   :  { %v7412_v28 = vpop.f32.mrb[100].mxu1 }
 0x29d   :  { %7721 = vst [vmem:[#allocation4_spill] sm:$0xff] %v7412_v28  ;;  %v3356_v48 = vpop.f32.mrb[36].mxu0  ;;  %v2908_v37 = vpop.f32.mrb[101].mxu1 }
 0x29e   :  { %v7415_v36 = vadd.f32 %v3356_v48, %v7156_v8  ;;  %v3358_v42 = vpop.f32.mrb[37].mxu0  ;;  %v7417_v6 = vpop.f32.mrb[102].mxu1 }
 0x29f   :  { %7722 = vst [vmem:[#allocation5_spill] sm:$0xff] %v7417_v6  ;;  %v3359_v59 = vpop.f32.mrb[38].mxu0  ;;  %v2911_v39 = vpop.f32.mrb[103].mxu1 }
 0x2a0   :  { %v7420_v52 = vadd.f32 %v3359_v59, %v7161_v12  ;;  %v3361_v7 = vpop.f32.mrb[39].mxu0 }
 0x2a4   :  { %v7422_v15 = vpop.f32.mrb[104].mxu1 }
 0x2a5   :  { %7723 = vst [vmem:[#allocation6_spill] sm:$0xff] %v7422_v15  ;;  %v3364_v63 = vpop.f32.mrb[40].mxu0  ;;  %v2916_v44 = vpop.f32.mrb[105].mxu1 }
 0x2a6   :  { %v7425_v29 = vadd.f32 %v3364_v63, %v7172_v18  ;;  %v3366_v37 = vpop.f32.mrb[41].mxu0  ;;  %v7427_v28 = vpop.f32.mrb[106].mxu1 }
 0x2a7   :  { %7724 = vst [vmem:[#allocation7_spill] sm:$0xff] %v7427_v28  ;;  %v3367_v8 = vpop.f32.mrb[42].mxu0  ;;  %v2919_v48 = vpop.f32.mrb[107].mxu1 }
 0x2a8   :  { %v7430_v42 = vadd.f32 %v3367_v8, %v7177_v23  ;;  %v3369_v39 = vpop.f32.mrb[43].mxu0 }
 0x2ac   :  { %v7432_v6 = vpop.f32.mrb[108].mxu1 }
 0x2ad   :  { %7725 = vst [vmem:[#allocation8_spill] sm:$0xff] %v7432_v6  ;;  %v3372_v12 = vpop.f32.mrb[44].mxu0  ;;  %v2924_v59 = vpop.f32.mrb[109].mxu1 }
 0x2ae   :  { %v7435_v7 = vadd.f32 %v3372_v12, %v7188_v0  ;;  %v3374_v44 = vpop.f32.mrb[45].mxu0  ;;  %v7437_v15 = vpop.f32.mrb[110].mxu1 }
 0x2af   :  { %7726 = vst [vmem:[#allocation9_spill] sm:$0xff] %v7437_v15  ;;  %v3375_v18 = vpop.f32.mrb[46].mxu0  ;;  %v2927_v63 = vpop.f32.mrb[111].mxu1 }
 0x2b0   :  { %v7440_v37 = vadd.f32 %v3375_v18, %v7193_v32  ;;  %v3377_v48 = vpop.f32.mrb[47].mxu0 }
 0x2b4   :  { %v7442_v28 = vpop.f32.mrb[112].mxu1 }
 0x2b5   :  { %7727 = vst [vmem:[#allocation10_spill] sm:$0xff] %v7442_v28  ;;  %v3380_v23 = vpop.f32.mrb[48].mxu0  ;;  %v2932_v8 = vpop.f32.mrb[113].mxu1 }
 0x2b6   :  { %v7445_v39 = vadd.f32 %v3380_v23, %v7204_v38  ;;  %v3382_v59 = vpop.f32.mrb[49].mxu0  ;;  %v7447_v6 = vpop.f32.mrb[114].mxu1 }
 0x2b7   :  { %7728 = vst [vmem:[#allocation11_spill] sm:$0xff] %v7447_v6  ;;  %v3383_v0 = vpop.f32.mrb[50].mxu0  ;;  %v2935_v12 = vpop.f32.mrb[115].mxu1 }
 0x2b8   :  { %v7450_v44 = vadd.f32 %v3383_v0, %v7209_v41  ;;  %v3385_v63 = vpop.f32.mrb[51].mxu0 }
 0x2bc   :  { %v7452_v15 = vpop.f32.mrb[116].mxu1 }
 0x2bd   :  { %7729 = vst [vmem:[#allocation12_spill] sm:$0xff] %v7452_v15  ;;  %v3388_v32 = vpop.f32.mrb[52].mxu0  ;;  %v2940_v18 = vpop.f32.mrb[117].mxu1 }
 0x2be   :  { %v7455_v48 = vadd.f32 %v3388_v32, %v7220_v47  ;;  %v3390_v8 = vpop.f32.mrb[53].mxu0  ;;  %v7457_v28 = vpop.f32.mrb[118].mxu1 }
 0x2bf   :  { %7730 = vst [vmem:[#allocation13_spill] sm:$0xff] %v7457_v28  ;;  %v3391_v38 = vpop.f32.mrb[54].mxu0  ;;  %v2943_v23 = vpop.f32.mrb[119].mxu1 }
 0x2c0   :  { %v7460_v59 = vadd.f32 %v3391_v38, %v7225_v53  ;;  %v3393_v12 = vpop.f32.mrb[55].mxu0 }
 0x2c4   :  { %v7462_v6 = vpop.f32.mrb[120].mxu1 }
 0x2c5   :  { %7731 = vst [vmem:[#allocation14_spill] sm:$0xff] %v7462_v6  ;;  %v3396_v41 = vpop.f32.mrb[56].mxu0  ;;  %v2948_v0 = vpop.f32.mrb[121].mxu1 }
 0x2c6   :  { %v7465_v63 = vadd.f32 %v3396_v41, %v7236_v61  ;;  %v3398_v18 = vpop.f32.mrb[57].mxu0  ;;  %v7467_v15 = vpop.f32.mrb[122].mxu1 }
 0x2c7   :  { %7732 = vst [vmem:[#allocation15_spill] sm:$0xff] %v7467_v15  ;;  %v3399_v47 = vpop.f32.mrb[58].mxu0  ;;  %v2951_v32 = vpop.f32.mrb[123].mxu1 }
 0x2c8   :  { %v7470_v8 = vadd.f32 %v3399_v47, %v7241_v3  ;;  %v3401_v23 = vpop.f32.mrb[59].mxu0 }
 0x2cc   :  { %v7472_v28 = vpop.f32.mrb[124].mxu1 }
 0x2cd   :  { %7733 = vst [vmem:[#allocation16_spill] sm:$0xff] %v7472_v28  ;;  %v3404_v53 = vpop.f32.mrb[60].mxu0  ;;  %v2956_v38 = vpop.f32.mrb[125].mxu1 }
 0x2ce   :  { %v7475_v12 = vadd.f32 %v3404_v53, %v7252_v13  ;;  %v3406_v0 = vpop.f32.mrb[61].mxu0  ;;  %v7477_v6 = vpop.f32.mrb[126].mxu1 }
 0x2cf   :  { %7734 = vst [vmem:[#allocation17_spill] sm:$0xff] %v7477_v6  ;;  %v3407_v61 = vpop.f32.mrb[62].mxu0  ;;  %v2959_v41 = vpop.f32.mrb[127].mxu1 }
 0x2d0   :  { %v7480_v18 = vadd.f32 %v3407_v61, %v7257_v17  ;;  %v3409_v32 = vpop.f32.mrb[63].mxu0 }
 0x2d4   :  { %v5101_v15 = vpop.f32.mrb[128].mxu1 }
 0x2d5   :  { %v3412_v3 = vpop.f32.mrb[64].mxu0  ;;  %v3582_v47 = vadd.f32 %v7296_v55, %v5101_v15  ;;  %v3573_v23 = vpop.f32.mrb[129].mxu1 }
 0x2d6   :  { %v7484_v28 = vadd.f32 %v3412_v3, %v7268_v26  ;;  %v3414_v38 = vpop.f32.mrb[65].mxu0  ;;  %v3574_v13 = vadd.f32 %v7274_v33, %v3573_v23  ;;  %v5102_v53 = vpop.f32.mrb[130].mxu1 }
 0x2d7   :  { %v3415_v0 = vpop.f32.mrb[66].mxu0  ;;  %v3585_v6 = vadd.f32 %v7310_v57, %v5102_v53  ;;  %v3576_v41 = vpop.f32.mrb[131].mxu1  ;;  %v4219_v33 = vmul.f32 %v3582_v47, %v3582_v47 }
 0x2d8   :  { %7735 = vst [vmem:[#allocation18_spill] sm:$0xff] %v7484_v28  ;;  %v7489_v17 = vadd.f32 %v3415_v0, %v7276_v35  ;;  %v3417_v61 = vpop.f32.mrb[67].mxu0  ;;  %v3577_v32 = vadd.f32 %v7288_v49, %v3576_v41  ;;  %v4217_v55 = vmul.f32 %v3574_v13, %v3574_v13 }
 0x2d9   :  { %v4860_v27 = vpack.c.bf16 %v3585_v6, %v3582_v47  ;;  %v4220_v23 = vmul.f32 %v3585_v6, %v3585_v6 }
 0x2da   :  { %7736 = vst [vmem:[#allocation19_spill] sm:$0xff] %v7489_v17  ;;  %v4855_v15 = vpack.c.bf16 %v3577_v32, %v3574_v13  ;;  %v4148_v22 = vadd.f32 %v3577_v32, %v3574_v13  ;;  %v4218_v26 = vmul.f32 %v3577_v32, %v3577_v32 }
 0x2db   :  { %5012 = vst [vmem:[%s7716_s2 + $0x8] sm:$0xff] %v4860_v27  }
 0x2dc   :  { %4856 = vst [vmem:[%s7716_s2] sm:$0xff] %v4855_v15   ;;  %v4149_v57 = vadd.f32 %v4148_v22, %v3582_v47  ;;  %v4281_v35 = vadd.f32 %v4218_v26, %v4217_v55  ;;  %v5105_v3 = vpop.f32.mrb[132].mxu1 }
 0x2dd   :  { %v3420_v38 = vpop.f32.mrb[68].mxu0  ;;  %v3598_v49 = vadd.f32 %v7340_v45, %v5105_v3  ;;  %v3589_v53 = vpop.f32.mrb[133].mxu1 }
 0x2de   :  { %v4282_v0 = vadd.f32 %v4281_v35, %v4219_v33  ;;  %v7500_v13 = vadd.f32 %v3420_v38, %v7290_v46  ;;  %v3422_v41 = vpop.f32.mrb[69].mxu0  ;;  %v3590_v27 = vadd.f32 %v7318_v21, %v3589_v53  ;;  %v4150_v61 = vadd.f32 %v4149_v57, %v3585_v6  ;;  %v5106_v32 = vpop.f32.mrb[134].mxu1 }
 0x2df   :  { %v3423_v17 = vpop.f32.mrb[70].mxu0  ;;  %v3601_v15 = vadd.f32 %v7354_v11, %v5106_v32  ;;  %v3592_v22 = vpop.f32.mrb[135].mxu1  ;;  %v4223_v3 = vmul.f32 %v3598_v49, %v3598_v49 }
 0x2e0   :  { %v4151_v47 = vadd.f32 %v4150_v61, %v3590_v27  ;;  %v4221_v55 = vmul.f32 %v3590_v27, %v3590_v27  ;;  %v4283_v26 = vadd.f32 %v4282_v0, %v4220_v23  ;;  %v7505_v28 = vadd.f32 %v3423_v17, %v7298_v58  ;;  %v3425_v45 = vpop.f32.mrb[71].mxu0 }
 0x2e1   :  { %v4870_v33 = vpack.c.bf16 %v3601_v15, %v3598_v49  ;;  %v3593_v46 = vadd.f32 %v7332_v2, %v3592_v22  ;;  %v4224_v61 = vmul.f32 %v3601_v15, %v3601_v15 }
 0x2e2   :  { %v4284_v35 = vadd.f32 %v4283_v26, %v4221_v55 }
 0x2e3   :  { %5014 = vst [vmem:[%s7716_s2 + $0x18] sm:$0xff] %v4870_v33   ;;  %v4865_v21 = vpack.c.bf16 %v3593_v46, %v3590_v27  ;;  %v4152_v6 = vadd.f32 %v4151_v47, %v3593_v46  ;;  %v4222_v57 = vmul.f32 %v3593_v46, %v3593_v46 }
 0x2e4   :  { %v5109_v11 = vpop.f32.mrb[136].mxu1 }
 0x2e5   :  { %5013 = vst [vmem:[%s7716_s2 + $0x10] sm:$0xff] %v4865_v21   ;;  %v4153_v58 = vadd.f32 %v4152_v6, %v3598_v49  ;;  %v4285_v17 = vadd.f32 %v4284_v35, %v4222_v57  ;;  %v3428_v23 = vpop.f32.mrb[72].mxu0  ;;  %v3614_v38 = vadd.f32 %v7375_v40, %v5109_v11  ;;  %v3605_v2 = vpop.f32.mrb[137].mxu1 }
 0x2e6   :  { %v7516_v53 = vadd.f32 %v3428_v23, %v7312_v10  ;;  %v3430_v0 = vpop.f32.mrb[73].mxu0  ;;  %v3606_v41 = vadd.f32 %v7362_v16, %v3605_v2  ;;  %v5110_v27 = vpop.f32.mrb[138].mxu1 }
 0x2e7   :  { %v4286_v32 = vadd.f32 %v4285_v17, %v4223_v3  ;;  %v4154_v22 = vadd.f32 %v4153_v58, %v3601_v15  ;;  %v3431_v47 = vpop.f32.mrb[74].mxu0  ;;  %v3617_v55 = vadd.f32 %v7380_v54, %v5110_v27  ;;  %v3608_v26 = vpop.f32.mrb[139].mxu1  ;;  %v4227_v54 = vmul.f32 %v3614_v38, %v3614_v38 }
 0x2e8   :  { %v4225_v49 = vmul.f32 %v3606_v41, %v3606_v41  ;;  %v7521_v45 = vadd.f32 %v3431_v47, %v7320_v25  ;;  %v3433_v40 = vpop.f32.mrb[75].mxu0  ;;  %v3609_v33 = vadd.f32 %v7370_v30, %v3608_v26 }
 0x2e9   :  { %v4155_v10 = vadd.f32 %v4154_v22, %v3606_v41  ;;  %v4287_v46 = vadd.f32 %v4286_v32, %v4224_v61  ;;  %v4880_v35 = vpack.c.bf16 %v3617_v55, %v3614_v38 }
 0x2ea   :  { %v4875_v21 = vpack.c.bf16 %v3609_v33, %v3606_v41  ;;  %v4226_v16 = vmul.f32 %v3609_v33, %v3609_v33  ;;  %v4228_v41 = vmul.f32 %v3617_v55, %v3617_v55 }
 0x2eb   :  { %v4288_v6 = vadd.f32 %v4287_v46, %v4225_v49  ;;  %5016 = vst [vmem:[%s7716_s2 + $0x28] sm:$0xff] %v4880_v35   ;;  %v4156_v15 = vadd.f32 %v4155_v10, %v3609_v33 }
 0x2ec   :  { %5015 = vst [vmem:[%s7716_s2 + $0x20] sm:$0xff] %v4875_v21   ;;  %v5113_v25 = vpop.f32.mrb[140].mxu1 }
 0x2ed   :  { %v4157_v57 = vadd.f32 %v4156_v15, %v3614_v38  ;;  %v4289_v11 = vadd.f32 %v4288_v6, %v4226_v16  ;;  %v3436_v30 = vpop.f32.mrb[76].mxu0  ;;  %v3630_v3 = vadd.f32 %v7395_v31, %v5113_v25  ;;  %v3621_v58 = vpop.f32.mrb[141].mxu1 }
 0x2ee   :  { %v7532_v17 = vadd.f32 %v3436_v30, %v7334_v5  ;;  %v3438_v23 = vpop.f32.mrb[77].mxu0  ;;  %v3622_v2 = vadd.f32 %v7385_v1, %v3621_v58  ;;  %v5114_v0 = vpop.f32.mrb[142].mxu1 }
 0x2ef   :  { %v4290_v27 = vadd.f32 %v4289_v11, %v4227_v54  ;;  %v4158_v61 = vadd.f32 %v4157_v57, %v3617_v55  ;;  %v3439_v32 = vpop.f32.mrb[78].mxu0  ;;  %v3633_v22 = vadd.f32 %v7400_v50, %v5114_v0  ;;  %v3624_v47 = vpop.f32.mrb[143].mxu1  ;;  %v4231_v50 = vmul.f32 %v3630_v3, %v3630_v3 }
 0x2f0   :  { %v4229_v38 = vmul.f32 %v3622_v2, %v3622_v2  ;;  %v7537_v26 = vadd.f32 %v3439_v32, %v7342_v51  ;;  %v3441_v31 = vpop.f32.mrb[79].mxu0  ;;  %v3625_v49 = vadd.f32 %v7390_v20, %v3624_v47 }
 0x2f1   :  { %v4159_v5 = vadd.f32 %v4158_v61, %v3622_v2  ;;  %v4291_v40 = vadd.f32 %v4290_v27, %v4228_v41  ;;  %v4890_v33 = vpack.c.bf16 %v3633_v22, %v3630_v3  ;;  %v4232_v11 = vmul.f32 %v3633_v22, %v3633_v22 }
 0x2f2   :  { %v4885_v10 = vpack.c.bf16 %v3625_v49, %v3622_v2  ;;  %v4230_v1 = vmul.f32 %v3625_v49, %v3625_v49 }
 0x2f3   :  { %v4292_v46 = vadd.f32 %v4291_v40, %v4229_v38  ;;  %5018 = vst [vmem:[%s7716_s2 + $0x38] sm:$0xff] %v4890_v33   ;;  %v4160_v55 = vadd.f32 %v4159_v5, %v3625_v49 }
 0x2f4   :  { %5017 = vst [vmem:[%s7716_s2 + $0x30] sm:$0xff] %v4885_v10   ;;  %v5117_v51 = vpop.f32.mrb[144].mxu1 }
 0x2f5   :  { %v4161_v35 = vadd.f32 %v4160_v55, %v3630_v3  ;;  %v4293_v21 = vadd.f32 %v4292_v46, %v4230_v1  ;;  %v3444_v20 = vpop.f32.mrb[80].mxu0  ;;  %v3646_v16 = vadd.f32 %v7415_v36, %v5117_v51  ;;  %v3637_v6 = vpop.f32.mrb[145].mxu1 }
 0x2f6   :  { %v7548_v15 = vadd.f32 %v3444_v20, %v7356_v4  ;;  %v3446_v25 = vpop.f32.mrb[81].mxu0  ;;  %v3638_v54 = vadd.f32 %v7405_v62, %v3637_v6  ;;  %v5118_v57 = vpop.f32.mrb[146].mxu1 }
 0x2f7   :  { %v4294_v30 = vadd.f32 %v4293_v21, %v4231_v50  ;;  %v4162_v58 = vadd.f32 %v4161_v35, %v3633_v22  ;;  %v3447_v23 = vpop.f32.mrb[82].mxu0  ;;  %v3649_v2 = vadd.f32 %v7420_v52, %v5118_v57  ;;  %v3640_v0 = vpop.f32.mrb[147].mxu1  ;;  %v4235_v52 = vmul.f32 %v3646_v16, %v3646_v16 }
 0x2f8   :  { %v4233_v3 = vmul.f32 %v3638_v54, %v3638_v54  ;;  %v7553_v41 = vadd.f32 %v3447_v23, %v7364_v24  ;;  %v3449_v36 = vpop.f32.mrb[83].mxu0  ;;  %v3641_v27 = vadd.f32 %v7410_v14, %v3640_v0 }
 0x2f9   :  { %v4163_v4 = vadd.f32 %v4162_v58, %v3638_v54  ;;  %v4295_v61 = vadd.f32 %v4294_v30, %v4232_v11  ;;  %v4900_v32 = vpack.c.bf16 %v3649_v2, %v3646_v16  ;;  %v4236_v55 = vmul.f32 %v3649_v2, %v3649_v2 }
 0x2fa   :  { %v4895_v47 = vpack.c.bf16 %v3641_v27, %v3638_v54  ;;  %v4234_v62 = vmul.f32 %v3641_v27, %v3641_v27 }
 0x2fb   :  { %v4296_v38 = vadd.f32 %v4295_v61, %v4233_v3  ;;  %5020 = vst [vmem:[%s7716_s2 + $0x48] sm:$0xff] %v4900_v32   ;;  %v4164_v22 = vadd.f32 %v4163_v4, %v3641_v27 }
 0x2fc   :  { %5019 = vst [vmem:[%s7716_s2 + $0x40] sm:$0xff] %v4895_v47   ;;  %v5121_v24 = vpop.f32.mrb[148].mxu1 }
 0x2fd   :  { %v4165_v31 = vadd.f32 %v4164_v22, %v3646_v16  ;;  %v4297_v49 = vadd.f32 %v4296_v38, %v4234_v62  ;;  %v3452_v14 = vpop.f32.mrb[84].mxu0  ;;  %v3662_v5 = vadd.f32 %v7435_v7, %v5121_v24  ;;  %v3653_v40 = vpop.f32.mrb[149].mxu1 }
 0x2fe   :  { %v7564_v33 = vadd.f32 %v3452_v14, %v7372_v34  ;;  %v3454_v10 = vpop.f32.mrb[85].mxu0  ;;  %v3654_v1 = vadd.f32 %v7425_v29, %v3653_v40  ;;  %v5122_v46 = vpop.f32.mrb[150].mxu1 }
 0x2ff   :  { %v4298_v51 = vadd.f32 %v4297_v49, %v4235_v52  ;;  %v4166_v50 = vadd.f32 %v4165_v31, %v3649_v2  ;;  %v3455_v35 = vpop.f32.mrb[86].mxu0  ;;  %v3665_v21 = vadd.f32 %v7440_v37, %v5122_v46  ;;  %v3656_v20 = vpop.f32.mrb[151].mxu1  ;;  %v4239_v37 = vmul.f32 %v3662_v5, %v3662_v5 }
 0x300   :  { %v4237_v16 = vmul.f32 %v3654_v1, %v3654_v1  ;;  %v7569_v6 = vadd.f32 %v3455_v35, %v7377_v43  ;;  %v3457_v7 = vpop.f32.mrb[87].mxu0  ;;  %v3657_v25 = vadd.f32 %v7430_v42, %v3656_v20 }
 0x301   :  { %v4167_v34 = vadd.f32 %v4166_v50, %v3654_v1  ;;  %v4299_v54 = vadd.f32 %v4298_v51, %v4236_v55  ;;  %v4910_v57 = vpack.c.bf16 %v3665_v21, %v3662_v5  ;;  %v4240_v32 = vmul.f32 %v3665_v21, %v3665_v21 }
 0x302   :  { %v4905_v11 = vpack.c.bf16 %v3657_v25, %v3654_v1  ;;  %v4238_v29 = vmul.f32 %v3657_v25, %v3657_v25 }
 0x303   :  { %v4300_v30 = vadd.f32 %v4299_v54, %v4237_v16  ;;  %5022 = vst [vmem:[%s7716_s2 + $0x58] sm:$0xff] %v4910_v57   ;;  %v4168_v58 = vadd.f32 %v4167_v34, %v3657_v25 }
 0x304   :  { %5021 = vst [vmem:[%s7716_s2 + $0x50] sm:$0xff] %v4905_v11   ;;  %v5125_v43 = vpop.f32.mrb[152].mxu1 }
 0x305   :  { %v4169_v23 = vadd.f32 %v4168_v58, %v3662_v5  ;;  %v4301_v2 = vadd.f32 %v4300_v30, %v4238_v29  ;;  %v3460_v42 = vpop.f32.mrb[88].mxu0  ;;  %v3678_v0 = vadd.f32 %v7455_v48, %v5125_v43  ;;  %v3669_v3 = vpop.f32.mrb[153].mxu1 }
 0x306   :  { %v7580_v36 = vadd.f32 %v3460_v42, %v7382_v56  ;;  %v3462_v27 = vpop.f32.mrb[89].mxu0  ;;  %v3670_v4 = vadd.f32 %v7445_v39, %v3669_v3  ;;  %v5126_v61 = vpop.f32.mrb[154].mxu1 }
 0x307   :  { %v4302_v47 = vadd.f32 %v4301_v2, %v4239_v37  ;;  %v4170_v62 = vadd.f32 %v4169_v23, %v3665_v21  ;;  %v3463_v38 = vpop.f32.mrb[90].mxu0  ;;  %v3681_v22 = vadd.f32 %v7460_v59, %v5126_v61  ;;  %v3672_v24 = vpop.f32.mrb[155].mxu1  ;;  %v4243_v59 = vmul.f32 %v3678_v0, %v3678_v0  ;;  %v7737_v61 = vld [vmem:[#allocation2_spill] sm:$0xff] }
 0x308   :  { %v4241_v52 = vmul.f32 %v3670_v4, %v3670_v4  ;;  %v7585_v31 = vadd.f32 %v3463_v38, %v7387_v9  ;;  %v3465_v48 = vpop.f32.mrb[91].mxu0  ;;  %v3673_v49 = vadd.f32 %v7450_v44, %v3672_v24 }
 0x309   :  { %v4171_v56 = vadd.f32 %v4170_v62, %v3670_v4  ;;  %v4303_v14 = vadd.f32 %v4302_v47, %v4240_v32  ;;  %v4920_v5 = vpack.c.bf16 %v3681_v22, %v3678_v0  ;;  %v4244_v7 = vmul.f32 %v3681_v22, %v3681_v22  ;;  %v7738_v62 = vld [vmem:[#allocation18_spill] sm:$0xff] }
 0x30a   :  { %v4915_v40 = vpack.c.bf16 %v3673_v49, %v3670_v4  ;;  %v4242_v39 = vmul.f32 %v3673_v49, %v3673_v49 }
 0x30b   :  { %v4304_v10 = vadd.f32 %v4303_v14, %v4241_v52  ;;  %5024 = vst [vmem:[%s7716_s2 + $0x68] sm:$0xff] %v4920_v5   ;;  %v4172_v1 = vadd.f32 %v4171_v56, %v3673_v49 }
 0x30c   :  { %5023 = vst [vmem:[%s7716_s2 + $0x60] sm:$0xff] %v4915_v40   ;;  %v5129_v9 = vpop.f32.mrb[156].mxu1  ;;  %v7739_v40 = vld [vmem:[#allocation3_spill] sm:$0xff] }
 0x30d   :  { %v4173_v46 = vadd.f32 %v4172_v1, %v3678_v0  ;;  %v4305_v55 = vadd.f32 %v4304_v10, %v4242_v39  ;;  %v3468_v44 = vpop.f32.mrb[92].mxu0  ;;  %v3694_v51 = vadd.f32 %v7475_v12, %v5129_v9  ;;  %v3685_v50 = vpop.f32.mrb[157].mxu1  ;;  %v7740_v10 = vld [vmem:[#allocation19_spill] sm:$0xff] }
 0x30e   :  { %v7596_v35 = vadd.f32 %v3468_v44, %v7392_v60  ;;  %v3470_v21 = vpop.f32.mrb[93].mxu0  ;;  %v3686_v20 = vadd.f32 %v7465_v63, %v3685_v50  ;;  %v5130_v16 = vpop.f32.mrb[158].mxu1 }
 0x30f   :  { %v4306_v25 = vadd.f32 %v4305_v55, %v4243_v59  ;;  %v4174_v34 = vadd.f32 %v4173_v46, %v3681_v22  ;;  %v3471_v54 = vpop.f32.mrb[94].mxu0  ;;  %v3697_v57 = vadd.f32 %v7480_v18, %v5130_v16  ;;  %v3688_v11 = vpop.f32.mrb[159].mxu1  ;;  %v4247_v18 = vmul.f32 %v3694_v51, %v3694_v51 }
 0x310   :  { %v4245_v29 = vmul.f32 %v3686_v20, %v3686_v20  ;;  %v7601_v30 = vadd.f32 %v3471_v54, %v7397_v19  ;;  %v3473_v12 = vpop.f32.mrb[95].mxu0  ;;  %v3689_v58 = vadd.f32 %v7470_v8, %v3688_v11  ;;  %v7741_v54 = vld [vmem:[#allocation4_spill] sm:$0xff] }
 0x311   :  { %v4175_v60 = vadd.f32 %v4174_v34, %v3686_v20  ;;  %v4307_v43 = vadd.f32 %v4306_v25, %v4244_v7  ;;  %v4930_v37 = vpack.c.bf16 %v3697_v57, %v3694_v51  ;;  %v4248_v24 = vmul.f32 %v3697_v57, %v3697_v57 }
 0x312   :  { %v4925_v23 = vpack.c.bf16 %v3689_v58, %v3686_v20  ;;  %v4246_v63 = vmul.f32 %v3689_v58, %v3689_v58 }
 0x313   :  { %v4308_v2 = vadd.f32 %v4307_v43, %v4245_v29  ;;  %5026 = vst [vmem:[%s7716_s2 + $0x78] sm:$0xff] %v4930_v37   ;;  %v4176_v42 = vadd.f32 %v4175_v60, %v3689_v58 }
 0x314   :  { %5025 = vst [vmem:[%s7716_s2 + $0x70] sm:$0xff] %v4925_v23   ;;  %v5133_v19 = vpop.f32.mrb[160].mxu1 }
 0x315   :  { %v4177_v0 = vadd.f32 %v4176_v42, %v3694_v51  ;;  %v4309_v3 = vadd.f32 %v4308_v2, %v4246_v63  ;;  %v3476_v8 = vpop.f32.mrb[96].mxu0  ;;  %v3710_v27 = vadd.f32 %v7500_v13, %v5133_v19  ;;  %v3701_v4 = vpop.f32.mrb[161].mxu1  ;;  %v7742_v42 = vld [vmem:[#allocation5_spill] sm:$0xff] }
 0x316   :  { %v7612_v32 = vadd.f32 %v3476_v8, %v7737_v61  ;;  %v3478_v47 = vpop.f32.mrb[97].mxu0  ;;  %v3702_v38 = vadd.f32 %v7738_v62, %v3701_v4  ;;  %v5134_v22 = vpop.f32.mrb[162].mxu1 }
 0x317   :  { %v4310_v52 = vadd.f32 %v4309_v3, %v4247_v18  ;;  %v4178_v48 = vadd.f32 %v4177_v0, %v3697_v57  ;;  %v3479_v49 = vpop.f32.mrb[98].mxu0  ;;  %v3713_v56 = vadd.f32 %v7505_v28, %v5134_v22  ;;  %v3704_v14 = vpop.f32.mrb[163].mxu1  ;;  %v4251_v21 = vmul.f32 %v3710_v27, %v3710_v27 }
 0x318   :  { %v4249_v5 = vmul.f32 %v3702_v38, %v3702_v38  ;;  %v7617_v39 = vadd.f32 %v3479_v49, %v7739_v40  ;;  %v3481_v13 = vpop.f32.mrb[99].mxu0  ;;  %v3705_v1 = vadd.f32 %v7740_v10, %v3704_v14 }
 0x319   :  { %v4179_v9 = vadd.f32 %v4178_v48, %v3702_v38  ;;  %v4311_v59 = vadd.f32 %v4310_v52, %v4248_v24  ;;  %v4940_v46 = vpack.c.bf16 %v3713_v56, %v3710_v27  ;;  %v4252_v58 = vmul.f32 %v3713_v56, %v3713_v56  ;;  %v7743_v52 = vld [vmem:[#allocation6_spill] sm:$0xff] }
 0x31a   :  { %v4935_v55 = vpack.c.bf16 %v3705_v1, %v3702_v38  ;;  %v4250_v44 = vmul.f32 %v3705_v1, %v3705_v1 }
 0x31b   :  { %v4312_v51 = vadd.f32 %v4311_v59, %v4249_v5  ;;  %5028 = vst [vmem:[%s7716_s2 + $0x88] sm:$0xff] %v4940_v46   ;;  %v4180_v50 = vadd.f32 %v4179_v9, %v3705_v1  ;;  %v7744_v46 = vld [vmem:[#allocation7_spill] sm:$0xff] }
 0x31c   :  { %5027 = vst [vmem:[%s7716_s2 + $0x80] sm:$0xff] %v4935_v55   ;;  %v5137_v28 = vpop.f32.mrb[164].mxu1 }
 0x31d   :  { %v4181_v20 = vadd.f32 %v4180_v50, %v3710_v27  ;;  %v4313_v16 = vadd.f32 %v4312_v51, %v4250_v44  ;;  %v3484_v7 = vpop.f32.mrb[100].mxu0  ;;  %v3726_v25 = vadd.f32 %v7532_v17, %v5137_v28  ;;  %v3717_v34 = vpop.f32.mrb[165].mxu1 }
 0x31e   :  { %v7628_v57 = vadd.f32 %v3484_v7, %v7741_v54  ;;  %v3486_v11 = vpop.f32.mrb[101].mxu0  ;;  %v3718_v29 = vadd.f32 %v7516_v53, %v3717_v34  ;;  %v5138_v12 = vpop.f32.mrb[166].mxu1 }
 0x31f   :  { %v4314_v60 = vadd.f32 %v4313_v16, %v4251_v21  ;;  %v4182_v43 = vadd.f32 %v4181_v20, %v3713_v56  ;;  %v3487_v37 = vpop.f32.mrb[102].mxu0  ;;  %v3729_v23 = vadd.f32 %v7537_v26, %v5138_v12  ;;  %v3720_v63 = vpop.f32.mrb[167].mxu1  ;;  %v4255_v47 = vmul.f32 %v3726_v25, %v3726_v25 }
 0x320   :  { %v4253_v2 = vmul.f32 %v3718_v29, %v3718_v29  ;;  %v7633_v19 = vadd.f32 %v3487_v37, %v7742_v42  ;;  %v3489_v17 = vpop.f32.mrb[103].mxu0  ;;  %v3721_v18 = vadd.f32 %v7521_v45, %v3720_v63 }
 0x321   :  { %v4183_v0 = vadd.f32 %v4182_v43, %v3718_v29  ;;  %v4315_v3 = vadd.f32 %v4314_v60, %v4252_v58  ;;  %v4950_v8 = vpack.c.bf16 %v3729_v23, %v3726_v25  ;;  %v4256_v5 = vmul.f32 %v3729_v23, %v3729_v23 }
 0x322   :  { %v4945_v27 = vpack.c.bf16 %v3721_v18, %v3718_v29  ;;  %v4254_v53 = vmul.f32 %v3721_v18, %v3721_v18  ;;  %v7745_v29 = vld [vmem:[#allocation8_spill] sm:$0xff] }
 0x323   :  { %v4316_v4 = vadd.f32 %v4315_v3, %v4253_v2  ;;  %5030 = vst [vmem:[%s7716_s2 + $0x98] sm:$0xff] %v4950_v8   ;;  %v4184_v61 = vadd.f32 %v4183_v0, %v3721_v18  ;;  %v7746_v0 = vld [vmem:[#allocation9_spill] sm:$0xff] }
 0x324   :  { %5029 = vst [vmem:[%s7716_s2 + $0x90] sm:$0xff] %v4945_v27   ;;  %v5141_v26 = vpop.f32.mrb[168].mxu1 }
 0x325   :  { %v4185_v62 = vadd.f32 %v4184_v61, %v3726_v25  ;;  %v4317_v38 = vadd.f32 %v4316_v4, %v4254_v53  ;;  %v3492_v45 = vpop.f32.mrb[104].mxu0  ;;  %v3742_v22 = vadd.f32 %v7564_v33, %v5141_v26  ;;  %v3733_v24 = vpop.f32.mrb[169].mxu1 }
 0x326   :  { %v7644_v48 = vadd.f32 %v3492_v45, %v7743_v52  ;;  %v3494_v49 = vpop.f32.mrb[105].mxu0  ;;  %v3734_v56 = vadd.f32 %v7548_v15, %v3733_v24  ;;  %v5142_v14 = vpop.f32.mrb[170].mxu1  ;;  %v7747_v52 = vld [vmem:[#allocation10_spill] sm:$0xff] }
 0x327   :  { %v4318_v40 = vadd.f32 %v4317_v38, %v4255_v47  ;;  %v4186_v13 = vadd.f32 %v4185_v62, %v3729_v23  ;;  %v3495_v10 = vpop.f32.mrb[106].mxu0  ;;  %v3745_v1 = vadd.f32 %v7569_v6, %v5142_v14  ;;  %v3736_v9 = vpop.f32.mrb[171].mxu1  ;;  %v4259_v7 = vmul.f32 %v3742_v22, %v3742_v22 }
 0x328   :  { %v4257_v59 = vmul.f32 %v3734_v56, %v3734_v56  ;;  %v7649_v55 = vadd.f32 %v3495_v10, %v7744_v46  ;;  %v3497_v33 = vpop.f32.mrb[107].mxu0  ;;  %v3737_v44 = vadd.f32 %v7553_v41, %v3736_v9 }
 0x329   :  { %v4187_v51 = vadd.f32 %v4186_v13, %v3734_v56  ;;  %v4319_v50 = vadd.f32 %v4318_v40, %v4256_v5  ;;  %v4960_v28 = vpack.c.bf16 %v3745_v1, %v3742_v22  ;;  %v4260_v37 = vmul.f32 %v3745_v1, %v3745_v1  ;;  %v7748_v33 = vld [vmem:[#allocation11_spill] sm:$0xff] }
 0x32a   :  { %v4955_v21 = vpack.c.bf16 %v3737_v44, %v3734_v56  ;;  %v4258_v15 = vmul.f32 %v3737_v44, %v3737_v44 }
 0x32b   :  { %v4320_v20 = vadd.f32 %v4319_v50, %v4257_v59  ;;  %5032 = vst [vmem:[%s7716_s2 + $0xa8] sm:$0xff] %v4960_v28   ;;  %v4188_v16 = vadd.f32 %v4187_v51, %v3737_v44 }
 0x32c   :  { %5031 = vst [vmem:[%s7716_s2 + $0xa0] sm:$0xff] %v4955_v21   ;;  %v5145_v6 = vpop.f32.mrb[172].mxu1 }
 0x32d   :  { %v4189_v25 = vadd.f32 %v4188_v16, %v3742_v22  ;;  %v4321_v34 = vadd.f32 %v4320_v20, %v4258_v15  ;;  %v3500_v41 = vpop.f32.mrb[108].mxu0  ;;  %v3758_v54 = vadd.f32 %v7596_v35, %v5145_v6  ;;  %v3749_v11 = vpop.f32.mrb[173].mxu1 }
 0x32e   :  { %v5249_v12 = vadd.f32 %v3500_v41, %v7745_v29  ;;  %v3502_v58 = vpop.f32.mrb[109].mxu0  ;;  %v3750_v60 = vadd.f32 %v7580_v36, %v3749_v11  ;;  %v5146_v43 = vpop.f32.mrb[174].mxu1 }
 0x32f   :  { %v4322_v23 = vadd.f32 %v4321_v34, %v4259_v7  ;;  %v4190_v63 = vadd.f32 %v4189_v25, %v3745_v1  ;;  %v3503_v2 = vpop.f32.mrb[110].mxu0  ;;  %v3761_v42 = vadd.f32 %v7601_v30, %v5146_v43  ;;  %v3752_v17 = vpop.f32.mrb[175].mxu1  ;;  %v4263_v62 = vmul.f32 %v3758_v54, %v3758_v54 }
 0x330   :  { %v4261_v18 = vmul.f32 %v3750_v60, %v3750_v60  ;;  %v5250_v3 = vadd.f32 %v3503_v2, %v7746_v0  ;;  %v3505_v8 = vpop.f32.mrb[111].mxu0  ;;  %v3753_v35 = vadd.f32 %v7585_v31, %v3752_v17 }
 0x331   :  { %v4191_v27 = vadd.f32 %v4190_v63, %v3750_v60  ;;  %v4323_v53 = vadd.f32 %v4322_v23, %v4260_v37  ;;  %v4970_v4 = vpack.c.bf16 %v3761_v42, %v3758_v54  ;;  %v4264_v40 = vmul.f32 %v3761_v42, %v3761_v42 }
 0x332   :  { %v4965_v61 = vpack.c.bf16 %v3753_v35, %v3750_v60  ;;  %v4262_v26 = vmul.f32 %v3753_v35, %v3753_v35 }
 0x333   :  { %v4324_v36 = vadd.f32 %v4323_v53, %v4261_v18  ;;  %5034 = vst [vmem:[%s7716_s2 + $0xb8] sm:$0xff] %v4970_v4   ;;  %v4192_v47 = vadd.f32 %v4191_v27, %v3753_v35  ;;  %v7750_v18 = vld [vmem:[#allocation13_spill] sm:$0xff] }
 0x334   :  { %5033 = vst [vmem:[%s7716_s2 + $0xb0] sm:$0xff] %v4965_v61   ;;  %v5149_v30 = vpop.f32.mrb[176].mxu1 }
 0x335   :  { %v4193_v38 = vadd.f32 %v4192_v47, %v3758_v54  ;;  %v4325_v45 = vadd.f32 %v4324_v36, %v4262_v26  ;;  %v3508_v31 = vpop.f32.mrb[112].mxu0  ;;  %v3774_v22 = vadd.f32 %v7628_v57, %v5149_v30  ;;  %v3765_v24 = vpop.f32.mrb[177].mxu1  ;;  %v7749_v54 = vld [vmem:[#allocation12_spill] sm:$0xff] }
 0x336   :  { %v5251_v49 = vadd.f32 %v3508_v31, %v7747_v52  ;;  %v3510_v56 = vpop.f32.mrb[113].mxu0  ;;  %v3766_v14 = vadd.f32 %v7612_v32, %v3765_v24  ;;  %v5150_v5 = vpop.f32.mrb[178].mxu1 }
 0x337   :  { %v4326_v13 = vadd.f32 %v4325_v45, %v4263_v62  ;;  %v4194_v10 = vadd.f32 %v4193_v38, %v3761_v42  ;;  %v3511_v1 = vpop.f32.mrb[114].mxu0  ;;  %v3777_v9 = vadd.f32 %v7633_v19, %v5150_v5  ;;  %v3768_v59 = vpop.f32.mrb[179].mxu1  ;;  %v4267_v6 = vmul.f32 %v3774_v22, %v3774_v22  ;;  %v7751_v45 = vld [vmem:[#allocation14_spill] sm:$0xff] }
 0x338   :  { %v4265_v46 = vmul.f32 %v3766_v14, %v3766_v14  ;;  %v5252_v44 = vadd.f32 %v3511_v1, %v7748_v33  ;;  %v3513_v51 = vpop.f32.mrb[115].mxu0  ;;  %v3769_v57 = vadd.f32 %v7617_v39, %v3768_v59 }
 0x339   :  { %v4195_v50 = vadd.f32 %v4194_v10, %v3766_v14  ;;  %v4327_v28 = vadd.f32 %v4326_v13, %v4264_v40  ;;  %v4980_v21 = vpack.c.bf16 %v3777_v9, %v3774_v22  ;;  %v4268_v43 = vmul.f32 %v3777_v9, %v3777_v9 }
 0x33a   :  { %v4975_v15 = vpack.c.bf16 %v3769_v57, %v3766_v14  ;;  %v4266_v20 = vmul.f32 %v3769_v57, %v3769_v57 }
 0x33b   :  { %v4328_v32 = vadd.f32 %v4327_v28, %v4265_v46  ;;  %5036 = vst [vmem:[%s7716_s2 + $0xc8] sm:$0xff] %v4980_v21   ;;  %v4196_v16 = vadd.f32 %v4195_v50, %v3769_v57 }
 0x33c   :  { %5035 = vst [vmem:[%s7716_s2 + $0xc0] sm:$0xff] %v4975_v15   ;;  %v5153_v19 = vpop.f32.mrb[180].mxu1 }
 0x33d   :  { %v4197_v7 = vadd.f32 %v4196_v16, %v3774_v22  ;;  %v4329_v25 = vadd.f32 %v4328_v32, %v4266_v20  ;;  %v3516_v39 = vpop.f32.mrb[116].mxu0  ;;  %v3790_v34 = vadd.f32 %v5249_v12, %v5153_v19  ;;  %v3781_v41 = vpop.f32.mrb[181].mxu1 }
 0x33e   :  { %v5253_v11 = vadd.f32 %v3516_v39, %v7749_v54  ;;  %v3518_v29 = vpop.f32.mrb[117].mxu0  ;;  %v3782_v58 = vadd.f32 %v7644_v48, %v3781_v41  ;;  %v5154_v60 = vpop.f32.mrb[182].mxu1 }
 0x33f   :  { %v4330_v37 = vadd.f32 %v4329_v25, %v4267_v6  ;;  %v4198_v23 = vadd.f32 %v4197_v7, %v3777_v9  ;;  %v3519_v63 = vpop.f32.mrb[118].mxu0  ;;  %v3793_v2 = vadd.f32 %v5250_v3, %v5154_v60  ;;  %v3784_v42 = vpop.f32.mrb[183].mxu1  ;;  %v4271_v36 = vmul.f32 %v3790_v34, %v3790_v34  ;;  %v7752_v9 = vld [vmem:[#allocation15_spill] sm:$0xff]  ;;  %v7753_v7 = vld [vmem:[#allocation16_spill] sm:$0xff] }
 0x340   :  { %v4269_v17 = vmul.f32 %v3782_v58, %v3782_v58  ;;  %v5254_v0 = vadd.f32 %v3519_v63, %v7750_v18  ;;  %v3521_v8 = vpop.f32.mrb[119].mxu0  ;;  %v3785_v35 = vadd.f32 %v7649_v55, %v3784_v42 }
 0x341   :  { %v4199_v12 = vadd.f32 %v4198_v23, %v3782_v58  ;;  %v4331_v27 = vadd.f32 %v4330_v37, %v4268_v43  ;;  %v4990_v53 = vpack.c.bf16 %v3793_v2, %v3790_v34  ;;  %v4272_v56 = vmul.f32 %v3793_v2, %v3793_v2  ;;  %v7754_v23 = vld [vmem:[#allocation17_spill] sm:$0xff] }
 0x342   :  { %v4985_v4 = vpack.c.bf16 %v3785_v35, %v3782_v58  ;;  %v4270_v61 = vmul.f32 %v3785_v35, %v3785_v35 }
 0x343   :  { %v4332_v26 = vadd.f32 %v4331_v27, %v4269_v17  ;;  %5038 = vst [vmem:[%s7716_s2 + $0xd8] sm:$0xff] %v4990_v53   ;;  %v4200_v48 = vadd.f32 %v4199_v12, %v3785_v35 }
 0x344   :  { %5037 = vst [vmem:[%s7716_s2 + $0xd0] sm:$0xff] %v4985_v4   ;;  %v5157_v3 = vpop.f32.mrb[184].mxu1 }
 0x345   :  { %v4201_v47 = vadd.f32 %v4200_v48, %v3790_v34  ;;  %v4333_v30 = vadd.f32 %v4332_v26, %v4270_v61  ;;  %v3524_v55 = vpop.f32.mrb[120].mxu0  ;;  %v3806_v62 = vadd.f32 %v5253_v11, %v5157_v3  ;;  %v3797_v38 = vpop.f32.mrb[185].mxu1 }
 0x346   :  { %v5255_v31 = vadd.f32 %v3524_v55, %v7751_v45  ;;  %v3526_v22 = vpop.f32.mrb[121].mxu0  ;;  %v3798_v24 = vadd.f32 %v5251_v49, %v3797_v38  ;;  %v5158_v52 = vpop.f32.mrb[186].mxu1 }
 0x347   :  { %v4334_v14 = vadd.f32 %v4333_v30, %v4271_v36  ;;  %v4202_v5 = vadd.f32 %v4201_v47, %v3793_v2  ;;  %v3527_v40 = vpop.f32.mrb[122].mxu0  ;;  %v3809_v13 = vadd.f32 %v5254_v0, %v5158_v52  ;;  %v3800_v10 = vpop.f32.mrb[187].mxu1  ;;  %v4275_v32 = vmul.f32 %v3806_v62, %v3806_v62 }
 0x348   :  { %v4273_v1 = vmul.f32 %v3798_v24, %v3798_v24  ;;  %v5256_v59 = vadd.f32 %v3527_v40, %v7752_v9  ;;  %v3529_v46 = vpop.f32.mrb[123].mxu0  ;;  %v3801_v33 = vadd.f32 %v5252_v44, %v3800_v10 }
 0x349   :  { %v4203_v51 = vadd.f32 %v4202_v5, %v3798_v24  ;;  %v4335_v57 = vadd.f32 %v4334_v14, %v4272_v56  ;;  %v5000_v50 = vpack.c.bf16 %v3809_v13, %v3806_v62  ;;  %v4276_v54 = vmul.f32 %v3809_v13, %v3809_v13 }
 0x34a   :  { %v4995_v28 = vpack.c.bf16 %v3801_v33, %v3798_v24  ;;  %v4274_v21 = vmul.f32 %v3801_v33, %v3801_v33 }
 0x34b   :  { %v4336_v15 = vadd.f32 %v4335_v57, %v4273_v1  ;;  %5040 = vst [vmem:[%s7716_s2 + $0xe8] sm:$0xff] %v5000_v50   ;;  %v4204_v49 = vadd.f32 %v4203_v51, %v3801_v33 }
 0x34c   :  { %5039 = vst [vmem:[%s7716_s2 + $0xe0] sm:$0xff] %v4995_v28   ;;  %v5161_v20 = vpop.f32.mrb[188].mxu1 }
 0x34d   :  { %v4205_v16 = vadd.f32 %v4204_v49, %v3806_v62  ;;  %v4337_v19 = vadd.f32 %v4336_v15, %v4274_v21  ;;  %v3532_v44 = vpop.f32.mrb[124].mxu0  ;;  %v3813_v6 = vpop.f32.mrb[189].mxu1 }
 0x34e   :  { %v5257_v25 = vadd.f32 %v3532_v44, %v7753_v7  ;;  %v3534_v39 = vpop.f32.mrb[125].mxu0  ;;  %v3814_v34 = vadd.f32 %v5255_v31, %v3813_v6  ;;  %v5162_v41 = vpop.f32.mrb[190].mxu1 }
 0x34f   :  { %v4338_v11 = vadd.f32 %v4337_v19, %v4275_v32  ;;  %v4206_v29 = vadd.f32 %v4205_v16, %v3809_v13  ;;  %v3535_v58 = vpop.f32.mrb[126].mxu0  ;;  %v3816_v60 = vpop.f32.mrb[191].mxu1 }
 0x350   :  { %v3822_v43 = vadd.f32 %v5257_v25, %v5161_v20  ;;  %v4277_v37 = vmul.f32 %v3814_v34, %v3814_v34  ;;  %v5258_v63 = vadd.f32 %v3535_v58, %v7754_v23  ;;  %v3537_v2 = vpop.f32.mrb[127].mxu0  ;;  %v3817_v42 = vadd.f32 %v5256_v59, %v3816_v60 }
 0x351   :  { %v4207_v17 = vadd.f32 %v4206_v29, %v3814_v34  ;;  %v4339_v18 = vadd.f32 %v4338_v11, %v4276_v54 }
 0x352   :  { %v3825_v0 = vadd.f32 %v5258_v63, %v5162_v41  ;;  %v5005_v8 = vpack.c.bf16 %v3817_v42, %v3814_v34  ;;  %v4278_v35 = vmul.f32 %v3817_v42, %v3817_v42  ;;  %v4279_v4 = vmul.f32 %v3822_v43, %v3822_v43 }
 0x353   :  { %v4340_v12 = vadd.f32 %v4339_v18, %v4277_v37  ;;  %v4208_v27 = vadd.f32 %v4207_v17, %v3817_v42 }
 0x354   :  { %v5010_v53 = vpack.c.bf16 %v3825_v0, %v3822_v43  ;;  %5041 = vst [vmem:[%s7716_s2 + $0xf0] sm:$0xff] %v5005_v8   ;;  %v4280_v48 = vmul.f32 %v3825_v0, %v3825_v0 }
 0x355   :  { %v4209_v61 = vadd.f32 %v4208_v27, %v3822_v43  ;;  %v4341_v26 = vadd.f32 %v4340_v12, %v4278_v35 }
 0x356   :  { %5042 = vst [vmem:[%s7716_s2 + $0xf8] sm:$0xff] %v5010_v53  }
 0x357   :  { %v4210_v3 = vadd.f32 %v4209_v61, %v3825_v0  ;;  %v4342_v36 = vadd.f32 %v4341_v26, %v4279_v4 }
 0x359   :  { %v4211_v47 = vrot.slane %v4210_v3, 4  ;;  %v4343_v30 = vadd.f32 %v4342_v36, %v4280_v48 }
 0x35b   :  { %v4212_v55 = vadd.f32 %v4211_v47, %v4210_v3  ;;  %v4344_v62 = vrot.slane %v4343_v30, 4 }
 0x35d   :  { %v4213_v38 = vrot.slane %v4212_v55, 2  ;;  %v4345_v45 = vadd.f32 %v4344_v62, %v4343_v30 }
 0x35f   :  { %v4214_v31 = vadd.f32 %v4213_v38, %v4212_v55  ;;  %v4346_v22 = vrot.slane %v4345_v45, 2 }
 0x361   :  { %v4215_v24 = vrot.slane %v4214_v31, 1  ;;  %v4347_v52 = vadd.f32 %v4346_v22, %v4345_v45 }
 0x363   :  { %v4216_v56 = vadd.f32 %v4215_v24, %v4214_v31  ;;  %v4348_v14 = vrot.slane %v4347_v52, 1 }
 0x365   :  { %v4349_v5 = vadd.f32 %v4348_v14, %v4347_v52  ;;  %4350 = vst [vmem:[%s7717_s3] sm:$0xff] %v4216_v56 }
 0x367   :  { %4351 = vst [vmem:[%s7718_s4] sm:$0xff] %v4349_v5 }

</bundles_post_ra>
